<compile_context>
chip_gen: v5e
topology: v5e:2x2
jax: 0.10.0
libtpu: 0.0.40
codegen_flags: <defaults>
</compile_context>

<pallas_src>
import math
from functools import partial

import jax
import jax.numpy as jnp
from jax.experimental import pallas as pl
from jax.experimental.pallas import tpu as pltpu


def encoder_block_kernel(
    xq_ref, xf_ref,
    g1_ref, be1_ref, g2_ref, be2_ref,
    wq_ref, bq_ref, wkv_ref, bkv_ref, wo_ref, bo_ref,
    w1_ref, bf1_ref, w2_ref, bf2_ref,
    y_ref, probs_ref,
    *, n_heads,
):
    xq = xq_ref[0]                      # (tq, E) f32 : query-tile rows of x
    xf = xf_ref[0]                      # (N,  E) f32 : full sequence (for K/V)
    tq, E = xq.shape
    N = xf.shape[0]
    H = n_heads
    D = E // H
    eps = jnp.float32(1e-6)

    def layernorm(v, g_ref, b_ref):
        mu = jnp.mean(v, axis=-1, keepdims=True)
        var = jnp.mean((v - mu) ** 2, axis=-1, keepdims=True)
        return (v - mu) * jax.lax.rsqrt(var + eps) * g_ref[...] + b_ref[...]

    def matmul(a, w_ref, b_ref):
        # bf16 MXU inputs, f32 accumulation, f32 bias epilogue.
        return jnp.dot(a.astype(jnp.bfloat16), w_ref[...],
                       preferred_element_type=jnp.float32) + b_ref[...]

    # --- attention branch ---
    h_q = layernorm(xq, g1_ref, be1_ref)            # (tq, E)  queries' rows
    h_f = layernorm(xf, g1_ref, be1_ref)            # (N,  E)  full rows for K/V

    q = matmul(h_q, wq_ref, bq_ref)                 # (tq, E)
    kv = matmul(h_f, wkv_ref, bkv_ref)              # (N, 2E)  fused K/V projection
    k = kv[:, :E]
    v = kv[:, E:]

    qh = q.reshape(tq, H, D).astype(jnp.bfloat16)
    kh = k.reshape(N, H, D).astype(jnp.bfloat16)
    vh = v.reshape(N, H, D).astype(jnp.bfloat16)

    scale = jnp.float32(1.0 / math.sqrt(D))
    s = jnp.einsum("qhd,khd->hqk", qh, kh,
                   preferred_element_type=jnp.float32) * scale      # (H, tq, N)
    s = s - jnp.max(s, axis=-1, keepdims=True)
    p = jnp.exp(s)
    p = p * pl.reciprocal(jnp.sum(p, axis=-1, keepdims=True), approx=True)
    probs_ref[0] = p                                # single lane-dense store of all heads

    ctx = jnp.einsum("hqk,khd->qhd", p.astype(jnp.bfloat16), vh,
                     preferred_element_type=jnp.float32).reshape(tq, E)
    attn_out = matmul(ctx, wo_ref, bo_ref)
    x1 = attn_out + xq                              # first residual

    # --- feed-forward branch ---
    h2 = layernorm(x1, g2_ref, be2_ref)
    z = matmul(h2, w1_ref, bf1_ref)
    # exact (erf-based) GELU, matching torch.nn.functional.gelu default
    z = 0.5 * z * (1.0 + jax.lax.erf(z * jnp.float32(1.0 / math.sqrt(2.0))))
    ff = matmul(z, w2_ref, bf2_ref)

    y_ref[0] = x1 + ff                              # second residual
    # TODO(synk): dropout layers are identity at p=0.0 (module default); not implemented.


def encoder_block(x, kp, n_heads, *, seq_tile=None):
    B, N, E = x.shape
    H = n_heads
    assert E % H == 0, "emb_size must be divisible by n_heads"
    M = kp["w1"].shape[1]

    if seq_tile is None:
        seq_tile = 128                               # query-tile size at production seq lengths
    tq = min(seq_tile, N)
    NT = pl.cdiv(N, tq)

    pnames = ["g1", "be1", "g2", "be2", "wq", "bq", "wkv", "bkv",
              "wo", "bo", "w1", "bf1", "w2", "bf2"]
    plist = [kp[n] for n in pnames]

    out_shape = (
        jax.ShapeDtypeStruct((B, N, E), jnp.float32),
        jax.ShapeDtypeStruct((B, H, N, N), jnp.float32),
    )
    out_specs = [
        pl.BlockSpec((1, tq, E), lambda b, qi: (b, qi, 0)),
        pl.BlockSpec((1, H, tq, N), lambda b, qi: (b, 0, qi, 0)),
    ]

    # Advisory cost estimate so XLA can schedule neighboring ops around the custom call.
    flops = 2 * B * N * (4 * E * E + 2 * N * E + 2 * E * M)
    transcendentals = B * (H * N * N + N * M)
    weight_bytes = sum(int(p.size) * p.dtype.itemsize for p in plist)
    bytes_accessed = int(2 * 4 * B * N * E + weight_bytes + 4 * B * N * E + 4 * B * H * N * N)
    cost = pl.CostEstimate(flops=int(flops), transcendentals=int(transcendentals),
                           bytes_accessed=bytes_accessed)

    def weight_spec(shape, single_buffer):
        idx = lambda b, qi, _nd=len(shape): (0,) * _nd
        if single_buffer:
            # Constant block index across the grid -> no prefetch buffer needed.
            return pl.BlockSpec(shape, idx, pipeline_mode=pl.Buffered(1))
        return pl.BlockSpec(shape, idx)

    def build(single_buffer):
        in_specs = [
            pl.BlockSpec((1, tq, E), lambda b, qi: (b, qi, 0)),   # query-tile rows of x
            pl.BlockSpec((1, N, E), lambda b, qi: (b, 0, 0)),     # full sequence (K/V + residual src)
        ]
        in_specs += [weight_spec(p.shape, single_buffer) for p in plist]
        return pl.pallas_call(
            partial(encoder_block_kernel, n_heads=H),
            grid=(B, NT),
            in_specs=in_specs,
            out_specs=out_specs,
            out_shape=out_shape,
            compiler_params=pltpu.CompilerParams(
                dimension_semantics=("parallel", "parallel"),
                vmem_limit_bytes=64 * 1024 * 1024,   # explicit budget (v7x has 64 MiB physical)
            ),
            cost_estimate=cost,
        )

    try:
        return build(single_buffer=True)(x, x, *plist)
    except Exception:
        # pipeline_mode=pl.Buffered(1) is a VMEM-only optimization; if this jax build rejects it,
        # fall back to default double-buffered weight specs (functionally identical).
        return build(single_buffer=False)(x, x, *plist)


# ---------------- deterministic parameter construction ----------------

def xavier_uniform(key, out_f, in_f):
    limit = math.sqrt(6.0 / (in_f + out_f))
    return jax.random.uniform(key, (out_f, in_f), jnp.float32, -limit, limit)


def torch_linear_default(key, out_f, in_f):
    k1, k2 = jax.random.split(key)
    bound = 1.0 / math.sqrt(in_f)
    w = jax.random.uniform(k1, (out_f, in_f), jnp.float32, -bound, bound)
    b = jax.random.uniform(k2, (out_f,), jnp.float32, -bound, bound)
    return w, b


def make_params(key, emb_size, mlp_dim):
    """Canonical f32 parameters, (in, out) layout (mirrors the torch module's init)."""
    E, M = emb_size, mlp_dim
    ks = jax.random.split(key, 8)
    wq, bq = torch_linear_default(ks[0], E, E)
    wk, bk = torch_linear_default(ks[1], E, E)
    wv, bv = torch_linear_default(ks[2], E, E)
    wo, bo = torch_linear_default(ks[3], E, E)
    w1 = xavier_uniform(ks[4], M, E)
    w2 = xavier_uniform(ks[5], E, M)
    bf1 = 1e-6 * jax.random.normal(ks[6], (M,), jnp.float32)
    bf2 = 1e-6 * jax.random.normal(ks[7], (E,), jnp.float32)
    return {
        "g1": jnp.ones((1, E), jnp.float32), "be1": jnp.zeros((1, E), jnp.float32),
        "g2": jnp.ones((1, E), jnp.float32), "be2": jnp.zeros((1, E), jnp.float32),
        "wq": wq.T, "bq": bq.reshape(1, E),
        "wk": wk.T, "bk": bk.reshape(1, E),
        "wv": wv.T, "bv": bv.reshape(1, E),
        "wo": wo.T, "bo": bo.reshape(1, E),
        "w1": w1.T, "bf1": bf1.reshape(1, M),
        "w2": w2.T, "bf2": bf2.reshape(1, E),
    }


def kernel_params(p):
    """bf16 weights (MXU-native) + fused K/V projection; biases and LN params stay f32."""
    bf16 = jnp.bfloat16
    return {
        "g1": p["g1"], "be1": p["be1"], "g2": p["g2"], "be2": p["be2"],
        "wq": p["wq"].astype(bf16), "bq": p["bq"],
        "wkv": jnp.concatenate([p["wk"], p["wv"]], axis=1).astype(bf16),
        "bkv": jnp.concatenate([p["bk"], p["bv"]], axis=1),
        "wo": p["wo"].astype(bf16), "bo": p["bo"],
        "w1": p["w1"].astype(bf16), "bf1": p["bf1"],
        "w2": p["w2"].astype(bf16), "bf2": p["bf2"],
    }


# ---------------- pure-JAX f32 reference for sanity checking ----------------

def reference(x, p, n_heads):
    B, N, E = x.shape
    H = n_heads
    D = E // H

    def ln(v, g, b):
        mu = jnp.mean(v, axis=-1, keepdims=True)
        var = jnp.mean((v - mu) ** 2, axis=-1, keepdims=True)
        return (v - mu) / jnp.sqrt(var + 1e-6) * g + b

    h = ln(x, p["g1"], p["be1"])
    q = (h @ p["wq"] + p["bq"]).reshape(B, N, H, D).transpose(0, 2, 1, 3)
    k = (h @ p["wk"] + p["bk"]).reshape(B, N, H, D).transpose(0, 2, 1, 3)
    v = (h @ p["wv"] + p["bv"]).reshape(B, N, H, D).transpose(0, 2, 1, 3)
    score = jnp.einsum("bhqd,bhkd->bhqk", q, k) / math.sqrt(D)
    probs = jax.nn.softmax(score, axis=-1)
    ctx = jnp.einsum("bhqk,bhkd->bhqd", probs, v).transpose(0, 2, 1, 3).reshape(B, N, E)
    attn = ctx @ p["wo"] + p["bo"]
    x1 = attn + x
    h2 = ln(x1, p["g2"], p["be2"])
    z = jax.nn.gelu(h2 @ p["w1"] + p["bf1"], approximate=False)
    y = x1 + (z @ p["w2"] + p["bf2"])
    return y, probs


if __name__ == "__main__":
    B, N, E, H, M = 2, 8, 32, 4, 64   # batch, seq, emb_size, n_heads, mlp_dim

    key = jax.random.PRNGKey(0)
    kx, kw = jax.random.split(key)
    x = jax.random.normal(kx, (B, N, E), jnp.float32)
    params = make_params(kw, emb_size=E, mlp_dim=M)
    kparams = kernel_params(params)

    y, probs = encoder_block(x, kparams, n_heads=H)
    y = jax.block_until_ready(y)
    probs = jax.block_until_ready(probs)

    y_exp, probs_exp = reference(x, params, H)
    assert y.shape == (B, N, E) and probs.shape == (B, H, N, N)
    # bf16 MXU inputs + approximate reciprocal in the softmax -> looser tolerances than pure f32.
    assert jnp.allclose(y, y_exp, atol=5e-2, rtol=5e-2), "output mismatch vs reference"
    assert jnp.allclose(probs, probs_exp, atol=2e-2, rtol=2e-2), "probs mismatch vs reference"

    print("KERNEL_OK")
</pallas_src>

<mosaic_0001>
module attributes {stable_mosaic.version = 11 : i64} {
  func.func @encoder_block_kernel(%arg0: i32, %arg1: i32, %arg2: memref<1x8x32xf32, #tpu.memory_space<vmem>>, %arg3: memref<1x8x32xf32, #tpu.memory_space<vmem>>, %arg4: memref<1x32xf32, #tpu.memory_space<vmem>>, %arg5: memref<1x32xf32, #tpu.memory_space<vmem>>, %arg6: memref<1x32xf32, #tpu.memory_space<vmem>>, %arg7: memref<1x32xf32, #tpu.memory_space<vmem>>, %arg8: memref<32x32xbf16, #tpu.memory_space<vmem>>, %arg9: memref<1x32xf32, #tpu.memory_space<vmem>>, %arg10: memref<32x64xbf16, #tpu.memory_space<vmem>>, %arg11: memref<1x64xf32, #tpu.memory_space<vmem>>, %arg12: memref<32x32xbf16, #tpu.memory_space<vmem>>, %arg13: memref<1x32xf32, #tpu.memory_space<vmem>>, %arg14: memref<32x64xbf16, #tpu.memory_space<vmem>>, %arg15: memref<1x64xf32, #tpu.memory_space<vmem>>, %arg16: memref<64x32xbf16, #tpu.memory_space<vmem>>, %arg17: memref<1x32xf32, #tpu.memory_space<vmem>>, %arg18: memref<1x8x32xf32, #tpu.memory_space<vmem>>, %arg19: memref<1x4x8x8xf32, #tpu.memory_space<vmem>>) attributes {dimension_semantics = [#tpu.dimension_semantics<parallel>, #tpu.dimension_semantics<parallel>], iteration_bounds = array<i64: 2, 1>, scalar_prefetch = 0 : i64, scratch_operands = 0 : i64, tpu.core_type = #tpu.core_type<tc>, window_params = [{transform_indices = @transform_0, window_bounds = array<i64: 1, 8, 32>}, {transform_indices = @transform_1, window_bounds = array<i64: 1, 8, 32>}, {pipeline_mode = #tpu.pipeline_mode<synchronous>, transform_indices = @transform_2, window_bounds = array<i64: 1, 32>}, {pipeline_mode = #tpu.pipeline_mode<synchronous>, transform_indices = @transform_3, window_bounds = array<i64: 1, 32>}, {pipeline_mode = #tpu.pipeline_mode<synchronous>, transform_indices = @transform_4, window_bounds = array<i64: 1, 32>}, {pipeline_mode = #tpu.pipeline_mode<synchronous>, transform_indices = @transform_5, window_bounds = array<i64: 1, 32>}, {pipeline_mode = #tpu.pipeline_mode<synchronous>, transform_indices = @transform_6, window_bounds = array<i64: 32, 32>}, {pipeline_mode = #tpu.pipeline_mode<synchronous>, transform_indices = @transform_7, window_bounds = array<i64: 1, 32>}, {pipeline_mode = #tpu.pipeline_mode<synchronous>, transform_indices = @transform_8, window_bounds = array<i64: 32, 64>}, {pipeline_mode = #tpu.pipeline_mode<synchronous>, transform_indices = @transform_9, window_bounds = array<i64: 1, 64>}, {pipeline_mode = #tpu.pipeline_mode<synchronous>, transform_indices = @transform_10, window_bounds = array<i64: 32, 32>}, {pipeline_mode = #tpu.pipeline_mode<synchronous>, transform_indices = @transform_11, window_bounds = array<i64: 1, 32>}, {pipeline_mode = #tpu.pipeline_mode<synchronous>, transform_indices = @transform_12, window_bounds = array<i64: 32, 64>}, {pipeline_mode = #tpu.pipeline_mode<synchronous>, transform_indices = @transform_13, window_bounds = array<i64: 1, 64>}, {pipeline_mode = #tpu.pipeline_mode<synchronous>, transform_indices = @transform_14, window_bounds = array<i64: 64, 32>}, {pipeline_mode = #tpu.pipeline_mode<synchronous>, transform_indices = @transform_15, window_bounds = array<i64: 1, 32>}, {transform_indices = @transform_16, window_bounds = array<i64: 1, 8, 32>}, {transform_indices = @transform_17, window_bounds = array<i64: 1, 4, 8, 8>}]} {
    %c0 = arith.constant 0 : index
    %c0_0 = arith.constant 0 : index
    %c0_1 = arith.constant 0 : index
    %0 = vector.load %arg2[%c0, %c0_0, %c0_1] : memref<1x8x32xf32, #tpu.memory_space<vmem>>, vector<1x8x32xf32>
    %1 = vector.shape_cast %0 : vector<1x8x32xf32> to vector<8x32xf32>
    %c0_2 = arith.constant 0 : index
    %c0_3 = arith.constant 0 : index
    %c0_4 = arith.constant 0 : index
    %2 = vector.load %arg3[%c0_2, %c0_3, %c0_4] : memref<1x8x32xf32, #tpu.memory_space<vmem>>, vector<1x8x32xf32>
    %3 = vector.shape_cast %2 : vector<1x8x32xf32> to vector<8x32xf32>
    %cst = arith.constant dense<0.000000e+00> : vector<8xf32>
    %4 = vector.multi_reduction <add>, %1, %cst [1] : vector<8x32xf32> to vector<8xf32>
    %5 = vector.shape_cast %4 : vector<8xf32> to vector<8x1xf32>
    %cst_5 = arith.constant 3.200000e+01 : f32
    %6 = vector.broadcast %cst_5 : f32 to vector<8x1xf32>
    %7 = arith.divf %5, %6 : vector<8x1xf32>
    %8 = vector.broadcast %7 : vector<8x1xf32> to vector<8x32xf32>
    %9 = arith.subf %1, %8 : vector<8x32xf32>
    %10 = arith.mulf %9, %9 : vector<8x32xf32>
    %cst_6 = arith.constant dense<0.000000e+00> : vector<8xf32>
    %11 = vector.multi_reduction <add>, %10, %cst_6 [1] : vector<8x32xf32> to vector<8xf32>
    %12 = vector.shape_cast %11 : vector<8xf32> to vector<8x1xf32>
    %cst_7 = arith.constant 3.200000e+01 : f32
    %13 = vector.broadcast %cst_7 : f32 to vector<8x1xf32>
    %14 = arith.divf %12, %13 : vector<8x1xf32>
    %15 = vector.broadcast %7 : vector<8x1xf32> to vector<8x32xf32>
    %16 = arith.subf %1, %15 : vector<8x32xf32>
    %cst_8 = arith.constant 9.99999997E-7 : f32
    %17 = vector.broadcast %cst_8 : f32 to vector<8x1xf32>
    %18 = arith.addf %14, %17 : vector<8x1xf32>
    %19 = math.rsqrt %18 : vector<8x1xf32>
    %20 = vector.broadcast %19 : vector<8x1xf32> to vector<8x32xf32>
    %21 = arith.mulf %16, %20 : vector<8x32xf32>
    %c0_9 = arith.constant 0 : index
    %c0_10 = arith.constant 0 : index
    %22 = vector.load %arg4[%c0_9, %c0_10] : memref<1x32xf32, #tpu.memory_space<vmem>>, vector<1x32xf32>
    %23 = vector.broadcast %22 : vector<1x32xf32> to vector<8x32xf32>
    %24 = arith.mulf %21, %23 : vector<8x32xf32>
    %c0_11 = arith.constant 0 : index
    %c0_12 = arith.constant 0 : index
    %25 = vector.load %arg5[%c0_11, %c0_12] : memref<1x32xf32, #tpu.memory_space<vmem>>, vector<1x32xf32>
    %26 = vector.broadcast %25 : vector<1x32xf32> to vector<8x32xf32>
    %27 = arith.addf %24, %26 : vector<8x32xf32>
    %cst_13 = arith.constant dense<0.000000e+00> : vector<8xf32>
    %28 = vector.multi_reduction <add>, %3, %cst_13 [1] : vector<8x32xf32> to vector<8xf32>
    %29 = vector.shape_cast %28 : vector<8xf32> to vector<8x1xf32>
    %cst_14 = arith.constant 3.200000e+01 : f32
    %30 = vector.broadcast %cst_14 : f32 to vector<8x1xf32>
    %31 = arith.divf %29, %30 : vector<8x1xf32>
    %32 = vector.broadcast %31 : vector<8x1xf32> to vector<8x32xf32>
    %33 = arith.subf %3, %32 : vector<8x32xf32>
    %34 = arith.mulf %33, %33 : vector<8x32xf32>
    %cst_15 = arith.constant dense<0.000000e+00> : vector<8xf32>
    %35 = vector.multi_reduction <add>, %34, %cst_15 [1] : vector<8x32xf32> to vector<8xf32>
    %36 = vector.shape_cast %35 : vector<8xf32> to vector<8x1xf32>
    %cst_16 = arith.constant 3.200000e+01 : f32
    %37 = vector.broadcast %cst_16 : f32 to vector<8x1xf32>
    %38 = arith.divf %36, %37 : vector<8x1xf32>
    %39 = vector.broadcast %31 : vector<8x1xf32> to vector<8x32xf32>
    %40 = arith.subf %3, %39 : vector<8x32xf32>
    %cst_17 = arith.constant 9.99999997E-7 : f32
    %41 = vector.broadcast %cst_17 : f32 to vector<8x1xf32>
    %42 = arith.addf %38, %41 : vector<8x1xf32>
    %43 = math.rsqrt %42 : vector<8x1xf32>
    %44 = vector.broadcast %43 : vector<8x1xf32> to vector<8x32xf32>
    %45 = arith.mulf %40, %44 : vector<8x32xf32>
    %c0_18 = arith.constant 0 : index
    %c0_19 = arith.constant 0 : index
    %46 = vector.load %arg4[%c0_18, %c0_19] : memref<1x32xf32, #tpu.memory_space<vmem>>, vector<1x32xf32>
    %47 = vector.broadcast %46 : vector<1x32xf32> to vector<8x32xf32>
    %48 = arith.mulf %45, %47 : vector<8x32xf32>
    %c0_20 = arith.constant 0 : index
    %c0_21 = arith.constant 0 : index
    %49 = vector.load %arg5[%c0_20, %c0_21] : memref<1x32xf32, #tpu.memory_space<vmem>>, vector<1x32xf32>
    %50 = vector.broadcast %49 : vector<1x32xf32> to vector<8x32xf32>
    %51 = arith.addf %48, %50 : vector<8x32xf32>
    %52 = arith.truncf %27 : vector<8x32xf32> to vector<8x32xbf16>
    %c0_22 = arith.constant 0 : index
    %c0_23 = arith.constant 0 : index
    %53 = vector.load %arg8[%c0_22, %c0_23] : memref<32x32xbf16, #tpu.memory_space<vmem>>, vector<32x32xbf16>
    %cst_24 = arith.constant dense<0.000000e+00> : vector<8x32xf32>
    %54 = tpu.matmul %52, %53, %cst_24 {dimension_numbers = #tpu.dot_dimension_numbers<[1], [0], [0], [1], [0, 0, 1, 1], [], []>} : vector<8x32xbf16>, vector<32x32xbf16>, vector<8x32xf32> -> vector<8x32xf32>
    %c0_25 = arith.constant 0 : index
    %c0_26 = arith.constant 0 : index
    %55 = vector.load %arg9[%c0_25, %c0_26] : memref<1x32xf32, #tpu.memory_space<vmem>>, vector<1x32xf32>
    %56 = vector.broadcast %55 : vector<1x32xf32> to vector<8x32xf32>
    %57 = arith.addf %54, %56 : vector<8x32xf32>
    %58 = arith.truncf %51 : vector<8x32xf32> to vector<8x32xbf16>
    %c0_27 = arith.constant 0 : index
    %c0_28 = arith.constant 0 : index
    %59 = vector.load %arg10[%c0_27, %c0_28] : memref<32x64xbf16, #tpu.memory_space<vmem>>, vector<32x64xbf16>
    %cst_29 = arith.constant dense<0.000000e+00> : vector<8x64xf32>
    %60 = tpu.matmul %58, %59, %cst_29 {dimension_numbers = #tpu.dot_dimension_numbers<[1], [0], [0], [1], [0, 0, 1, 1], [], []>} : vector<8x32xbf16>, vector<32x64xbf16>, vector<8x64xf32> -> vector<8x64xf32>
    %c0_30 = arith.constant 0 : index
    %c0_31 = arith.constant 0 : index
    %61 = vector.load %arg11[%c0_30, %c0_31] : memref<1x64xf32, #tpu.memory_space<vmem>>, vector<1x64xf32>
    %62 = vector.broadcast %61 : vector<1x64xf32> to vector<8x64xf32>
    %63 = arith.addf %60, %62 : vector<8x64xf32>
    %64 = vector.extract_strided_slice %63 {offsets = [0, 0], sizes = [8, 32], strides = [1, 1]} : vector<8x64xf32> to vector<8x32xf32>
    %65 = vector.extract_strided_slice %63 {offsets = [0, 32], sizes = [8, 32], strides = [1, 1]} : vector<8x64xf32> to vector<8x32xf32>
    %66 = vector.shape_cast %57 : vector<8x32xf32> to vector<8x4x8xf32>
    %67 = arith.truncf %66 : vector<8x4x8xf32> to vector<8x4x8xbf16>
    %68 = vector.shape_cast %64 : vector<8x32xf32> to vector<8x4x8xf32>
    %69 = arith.truncf %68 : vector<8x4x8xf32> to vector<8x4x8xbf16>
    %70 = vector.shape_cast %65 : vector<8x32xf32> to vector<8x4x8xf32>
    %71 = arith.truncf %70 : vector<8x4x8xf32> to vector<8x4x8xbf16>
    "tpu.trace_start"() <{level = 10 : i32, message = "qhd,khd->hqk"}> : () -> ()
    %cst_32 = arith.constant dense<0.000000e+00> : vector<4x8x8xf32>
    %72 = tpu.matmul %67, %69, %cst_32 {dimension_numbers = #tpu.dot_dimension_numbers<[2], [2], [0], [0], [0, 1, 0, 0, 1, 0], [1], [1]>} : vector<8x4x8xbf16>, vector<8x4x8xbf16>, vector<4x8x8xf32> -> vector<4x8x8xf32>
    "tpu.trace_stop"() : () -> ()
    %cst_33 = arith.constant 0.353553385 : f32
    %73 = vector.broadcast %cst_33 : f32 to vector<4x8x8xf32>
    %74 = arith.mulf %72, %73 : vector<4x8x8xf32>
    %cst_34 = arith.constant dense<0xFF800000> : vector<4x8xf32>
    %75 = vector.multi_reduction <maximumf>, %74, %cst_34 [2] : vector<4x8x8xf32> to vector<4x8xf32>
    %76 = vector.shape_cast %75 : vector<4x8xf32> to vector<4x8x1xf32>
    %77 = vector.broadcast %76 : vector<4x8x1xf32> to vector<4x8x8xf32>
    %78 = arith.subf %74, %77 : vector<4x8x8xf32>
    %79 = math.exp %78 : vector<4x8x8xf32>
    %cst_35 = arith.constant dense<0.000000e+00> : vector<4x8xf32>
    %80 = vector.multi_reduction <add>, %79, %cst_35 [2] : vector<4x8x8xf32> to vector<4x8xf32>
    %81 = vector.shape_cast %80 : vector<4x8xf32> to vector<4x8x1xf32>
    %82 = tpu.reciprocal %81 {approx = true} : vector<4x8x1xf32> -> vector<4x8x1xf32>
    %83 = vector.broadcast %82 : vector<4x8x1xf32> to vector<4x8x8xf32>
    %84 = arith.mulf %79, %83 : vector<4x8x8xf32>
    %c0_36 = arith.constant 0 : index
    %c0_37 = arith.constant 0 : index
    %c0_38 = arith.constant 0 : index
    %c0_39 = arith.constant 0 : index
    %85 = vector.load %arg19[%c0_36, %c0_37, %c0_38, %c0_39] : memref<1x4x8x8xf32, #tpu.memory_space<vmem>>, vector<1x4x8x8xf32>
    %86 = vector.shape_cast %85 : vector<1x4x8x8xf32> to vector<4x8x8xf32>
    %87 = vector.shape_cast %84 : vector<4x8x8xf32> to vector<1x4x8x8xf32>
    tpu.vector_store %arg19[%c0_36, %c0_37, %c0_38, %c0_39], %87 {strides = array<i32>} : memref<1x4x8x8xf32, #tpu.memory_space<vmem>>, vector<1x4x8x8xf32>,
    %88 = arith.truncf %84 : vector<4x8x8xf32> to vector<4x8x8xbf16>
    "tpu.trace_start"() <{level = 10 : i32, message = "hqk,khd->qhd"}> : () -> ()
    %cst_40 = arith.constant dense<0.000000e+00> : vector<4x8x8xf32>
    %89 = tpu.matmul %71, %88, %cst_40 {dimension_numbers = #tpu.dot_dimension_numbers<[0], [2], [2], [1], [0, 1, 0, 2, 1, 1], [1], [0]>} : vector<8x4x8xbf16>, vector<4x8x8xbf16>, vector<4x8x8xf32> -> vector<4x8x8xf32>
    %90 = tpu.transpose %89, [2, 0, 1] : vector<4x8x8xf32> -> vector<8x4x8xf32>
    "tpu.trace_stop"() : () -> ()
    %91 = vector.shape_cast %90 : vector<8x4x8xf32> to vector<8x32xf32>
    %92 = arith.truncf %91 : vector<8x32xf32> to vector<8x32xbf16>
    %c0_41 = arith.constant 0 : index
    %c0_42 = arith.constant 0 : index
    %93 = vector.load %arg12[%c0_41, %c0_42] : memref<32x32xbf16, #tpu.memory_space<vmem>>, vector<32x32xbf16>
    %cst_43 = arith.constant dense<0.000000e+00> : vector<8x32xf32>
    %94 = tpu.matmul %92, %93, %cst_43 {dimension_numbers = #tpu.dot_dimension_numbers<[1], [0], [0], [1], [0, 0, 1, 1], [], []>} : vector<8x32xbf16>, vector<32x32xbf16>, vector<8x32xf32> -> vector<8x32xf32>
    %c0_44 = arith.constant 0 : index
    %c0_45 = arith.constant 0 : index
    %95 = vector.load %arg13[%c0_44, %c0_45] : memref<1x32xf32, #tpu.memory_space<vmem>>, vector<1x32xf32>
    %96 = vector.broadcast %95 : vector<1x32xf32> to vector<8x32xf32>
    %97 = arith.addf %94, %96 : vector<8x32xf32>
    %98 = arith.addf %97, %1 : vector<8x32xf32>
    %cst_46 = arith.constant dense<0.000000e+00> : vector<8xf32>
    %99 = vector.multi_reduction <add>, %98, %cst_46 [1] : vector<8x32xf32> to vector<8xf32>
    %100 = vector.shape_cast %99 : vector<8xf32> to vector<8x1xf32>
    %cst_47 = arith.constant 3.200000e+01 : f32
    %101 = vector.broadcast %cst_47 : f32 to vector<8x1xf32>
    %102 = arith.divf %100, %101 : vector<8x1xf32>
    %103 = vector.broadcast %102 : vector<8x1xf32> to vector<8x32xf32>
    %104 = arith.subf %98, %103 : vector<8x32xf32>
    %105 = arith.mulf %104, %104 : vector<8x32xf32>
    %cst_48 = arith.constant dense<0.000000e+00> : vector<8xf32>
    %106 = vector.multi_reduction <add>, %105, %cst_48 [1] : vector<8x32xf32> to vector<8xf32>
    %107 = vector.shape_cast %106 : vector<8xf32> to vector<8x1xf32>
    %cst_49 = arith.constant 3.200000e+01 : f32
    %108 = vector.broadcast %cst_49 : f32 to vector<8x1xf32>
    %109 = arith.divf %107, %108 : vector<8x1xf32>
    %110 = vector.broadcast %102 : vector<8x1xf32> to vector<8x32xf32>
    %111 = arith.subf %98, %110 : vector<8x32xf32>
    %cst_50 = arith.constant 9.99999997E-7 : f32
    %112 = vector.broadcast %cst_50 : f32 to vector<8x1xf32>
    %113 = arith.addf %109, %112 : vector<8x1xf32>
    %114 = math.rsqrt %113 : vector<8x1xf32>
    %115 = vector.broadcast %114 : vector<8x1xf32> to vector<8x32xf32>
    %116 = arith.mulf %111, %115 : vector<8x32xf32>
    %c0_51 = arith.constant 0 : index
    %c0_52 = arith.constant 0 : index
    %117 = vector.load %arg6[%c0_51, %c0_52] : memref<1x32xf32, #tpu.memory_space<vmem>>, vector<1x32xf32>
    %118 = vector.broadcast %117 : vector<1x32xf32> to vector<8x32xf32>
    %119 = arith.mulf %116, %118 : vector<8x32xf32>
    %c0_53 = arith.constant 0 : index
    %c0_54 = arith.constant 0 : index
    %120 = vector.load %arg7[%c0_53, %c0_54] : memref<1x32xf32, #tpu.memory_space<vmem>>, vector<1x32xf32>
    %121 = vector.broadcast %120 : vector<1x32xf32> to vector<8x32xf32>
    %122 = arith.addf %119, %121 : vector<8x32xf32>
    %123 = arith.truncf %122 : vector<8x32xf32> to vector<8x32xbf16>
    %c0_55 = arith.constant 0 : index
    %c0_56 = arith.constant 0 : index
    %124 = vector.load %arg14[%c0_55, %c0_56] : memref<32x64xbf16, #tpu.memory_space<vmem>>, vector<32x64xbf16>
    %cst_57 = arith.constant dense<0.000000e+00> : vector<8x64xf32>
    %125 = tpu.matmul %123, %124, %cst_57 {dimension_numbers = #tpu.dot_dimension_numbers<[1], [0], [0], [1], [0, 0, 1, 1], [], []>} : vector<8x32xbf16>, vector<32x64xbf16>, vector<8x64xf32> -> vector<8x64xf32>
    %c0_58 = arith.constant 0 : index
    %c0_59 = arith.constant 0 : index
    %126 = vector.load %arg15[%c0_58, %c0_59] : memref<1x64xf32, #tpu.memory_space<vmem>>, vector<1x64xf32>
    %127 = vector.broadcast %126 : vector<1x64xf32> to vector<8x64xf32>
    %128 = arith.addf %125, %127 : vector<8x64xf32>
    %cst_60 = arith.constant 5.000000e-01 : f32
    %129 = vector.broadcast %cst_60 : f32 to vector<8x64xf32>
    %130 = arith.mulf %129, %128 : vector<8x64xf32>
    %cst_61 = arith.constant 0.707106769 : f32
    %131 = vector.broadcast %cst_61 : f32 to vector<8x64xf32>
    %132 = arith.mulf %128, %131 : vector<8x64xf32>
    %133 = math.erf %132 : vector<8x64xf32>
    %cst_62 = arith.constant 1.000000e+00 : f32
    %134 = vector.broadcast %cst_62 : f32 to vector<8x64xf32>
    %135 = arith.addf %134, %133 : vector<8x64xf32>
    %136 = arith.mulf %130, %135 : vector<8x64xf32>
    %137 = arith.truncf %136 : vector<8x64xf32> to vector<8x64xbf16>
    %c0_63 = arith.constant 0 : index
    %c0_64 = arith.constant 0 : index
    %138 = vector.load %arg16[%c0_63, %c0_64] : memref<64x32xbf16, #tpu.memory_space<vmem>>, vector<64x32xbf16>
    %cst_65 = arith.constant dense<0.000000e+00> : vector<8x32xf32>
    %139 = tpu.matmul %137, %138, %cst_65 {dimension_numbers = #tpu.dot_dimension_numbers<[1], [0], [0], [1], [0, 0, 1, 1], [], []>} : vector<8x64xbf16>, vector<64x32xbf16>, vector<8x32xf32> -> vector<8x32xf32>
    %c0_66 = arith.constant 0 : index
    %c0_67 = arith.constant 0 : index
    %140 = vector.load %arg17[%c0_66, %c0_67] : memref<1x32xf32, #tpu.memory_space<vmem>>, vector<1x32xf32>
    %141 = vector.broadcast %140 : vector<1x32xf32> to vector<8x32xf32>
    %142 = arith.addf %139, %141 : vector<8x32xf32>
    %143 = arith.addf %98, %142 : vector<8x32xf32>
    %c0_68 = arith.constant 0 : index
    %c0_69 = arith.constant 0 : index
    %c0_70 = arith.constant 0 : index
    %144 = vector.load %arg18[%c0_68, %c0_69, %c0_70] : memref<1x8x32xf32, #tpu.memory_space<vmem>>, vector<1x8x32xf32>
    %145 = vector.shape_cast %144 : vector<1x8x32xf32> to vector<8x32xf32>
    %146 = vector.shape_cast %143 : vector<8x32xf32> to vector<1x8x32xf32>
    tpu.vector_store %arg18[%c0_68, %c0_69, %c0_70], %146 {strides = array<i32>} : memref<1x8x32xf32, #tpu.memory_space<vmem>>, vector<1x8x32xf32>,
    return
  }
  func.func @transform_0(%arg0: i32, %arg1: i32) -> (i32, i32, i32) {
    %c0_i32 = arith.constant 0 : i32
    %c0_i32_0 = arith.constant 0 : i32
    return %arg0, %arg1, %c0_i32 : i32, i32, i32
  }
  func.func @transform_1(%arg0: i32, %arg1: i32) -> (i32, i32, i32) {
    %c0_i32 = arith.constant 0 : i32
    %c0_i32_0 = arith.constant 0 : i32
    %c0_i32_1 = arith.constant 0 : i32
    return %arg0, %c0_i32, %c0_i32_0 : i32, i32, i32
  }
  func.func @transform_2(%arg0: i32, %arg1: i32) -> (i32, i32) {
    %c0_i32 = arith.constant 0 : i32
    %c0_i32_0 = arith.constant 0 : i32
    %c0_i32_1 = arith.constant 0 : i32
    return %c0_i32, %c0_i32_0 : i32, i32
  }
  func.func @transform_3(%arg0: i32, %arg1: i32) -> (i32, i32) {
    %c0_i32 = arith.constant 0 : i32
    %c0_i32_0 = arith.constant 0 : i32
    %c0_i32_1 = arith.constant 0 : i32
    return %c0_i32, %c0_i32_0 : i32, i32
  }
  func.func @transform_4(%arg0: i32, %arg1: i32) -> (i32, i32) {
    %c0_i32 = arith.constant 0 : i32
    %c0_i32_0 = arith.constant 0 : i32
    %c0_i32_1 = arith.constant 0 : i32
    return %c0_i32, %c0_i32_0 : i32, i32
  }
  func.func @transform_5(%arg0: i32, %arg1: i32) -> (i32, i32) {
    %c0_i32 = arith.constant 0 : i32
    %c0_i32_0 = arith.constant 0 : i32
    %c0_i32_1 = arith.constant 0 : i32
    return %c0_i32, %c0_i32_0 : i32, i32
  }
  func.func @transform_6(%arg0: i32, %arg1: i32) -> (i32, i32) {
    %c0_i32 = arith.constant 0 : i32
    %c0_i32_0 = arith.constant 0 : i32
    %c0_i32_1 = arith.constant 0 : i32
    return %c0_i32, %c0_i32_0 : i32, i32
  }
  func.func @transform_7(%arg0: i32, %arg1: i32) -> (i32, i32) {
    %c0_i32 = arith.constant 0 : i32
    %c0_i32_0 = arith.constant 0 : i32
    %c0_i32_1 = arith.constant 0 : i32
    return %c0_i32, %c0_i32_0 : i32, i32
  }
  func.func @transform_8(%arg0: i32, %arg1: i32) -> (i32, i32) {
    %c0_i32 = arith.constant 0 : i32
    %c0_i32_0 = arith.constant 0 : i32
    %c0_i32_1 = arith.constant 0 : i32
    return %c0_i32, %c0_i32_0 : i32, i32
  }
  func.func @transform_9(%arg0: i32, %arg1: i32) -> (i32, i32) {
    %c0_i32 = arith.constant 0 : i32
    %c0_i32_0 = arith.constant 0 : i32
    %c0_i32_1 = arith.constant 0 : i32
    return %c0_i32, %c0_i32_0 : i32, i32
  }
  func.func @transform_10(%arg0: i32, %arg1: i32) -> (i32, i32) {
    %c0_i32 = arith.constant 0 : i32
    %c0_i32_0 = arith.constant 0 : i32
    %c0_i32_1 = arith.constant 0 : i32
    return %c0_i32, %c0_i32_0 : i32, i32
  }
  func.func @transform_11(%arg0: i32, %arg1: i32) -> (i32, i32) {
    %c0_i32 = arith.constant 0 : i32
    %c0_i32_0 = arith.constant 0 : i32
    %c0_i32_1 = arith.constant 0 : i32
    return %c0_i32, %c0_i32_0 : i32, i32
  }
  func.func @transform_12(%arg0: i32, %arg1: i32) -> (i32, i32) {
    %c0_i32 = arith.constant 0 : i32
    %c0_i32_0 = arith.constant 0 : i32
    %c0_i32_1 = arith.constant 0 : i32
    return %c0_i32, %c0_i32_0 : i32, i32
  }
  func.func @transform_13(%arg0: i32, %arg1: i32) -> (i32, i32) {
    %c0_i32 = arith.constant 0 : i32
    %c0_i32_0 = arith.constant 0 : i32
    %c0_i32_1 = arith.constant 0 : i32
    return %c0_i32, %c0_i32_0 : i32, i32
  }
  func.func @transform_14(%arg0: i32, %arg1: i32) -> (i32, i32) {
    %c0_i32 = arith.constant 0 : i32
    %c0_i32_0 = arith.constant 0 : i32
    %c0_i32_1 = arith.constant 0 : i32
    return %c0_i32, %c0_i32_0 : i32, i32
  }
  func.func @transform_15(%arg0: i32, %arg1: i32) -> (i32, i32) {
    %c0_i32 = arith.constant 0 : i32
    %c0_i32_0 = arith.constant 0 : i32
    %c0_i32_1 = arith.constant 0 : i32
    return %c0_i32, %c0_i32_0 : i32, i32
  }
  func.func @transform_16(%arg0: i32, %arg1: i32) -> (i32, i32, i32) {
    %c0_i32 = arith.constant 0 : i32
    %c0_i32_0 = arith.constant 0 : i32
    return %arg0, %arg1, %c0_i32 : i32, i32, i32
  }
  func.func @transform_17(%arg0: i32, %arg1: i32) -> (i32, i32, i32, i32) {
    %c0_i32 = arith.constant 0 : i32
    %c0_i32_0 = arith.constant 0 : i32
    %c0_i32_1 = arith.constant 0 : i32
    return %arg0, %c0_i32, %arg1, %c0_i32_0 : i32, i32, i32, i32
  }
}

module attributes {stable_mosaic.version = 11 : i64} {
  func.func @encoder_block_kernel(%arg0: i32, %arg1: i32, %arg2: memref<1x8x32xf32, #tpu.memory_space<vmem>>, %arg3: memref<1x8x32xf32, #tpu.memory_space<vmem>>, %arg4: memref<1x32xf32, #tpu.memory_space<vmem>>, %arg5: memref<1x32xf32, #tpu.memory_space<vmem>>, %arg6: memref<1x32xf32, #tpu.memory_space<vmem>>, %arg7: memref<1x32xf32, #tpu.memory_space<vmem>>, %arg8: memref<32x32xbf16, #tpu.memory_space<vmem>>, %arg9: memref<1x32xf32, #tpu.memory_space<vmem>>, %arg10: memref<32x64xbf16, #tpu.memory_space<vmem>>, %arg11: memref<1x64xf32, #tpu.memory_space<vmem>>, %arg12: memref<32x32xbf16, #tpu.memory_space<vmem>>, %arg13: memref<1x32xf32, #tpu.memory_space<vmem>>, %arg14: memref<32x64xbf16, #tpu.memory_space<vmem>>, %arg15: memref<1x64xf32, #tpu.memory_space<vmem>>, %arg16: memref<64x32xbf16, #tpu.memory_space<vmem>>, %arg17: memref<1x32xf32, #tpu.memory_space<vmem>>, %arg18: memref<1x8x32xf32, #tpu.memory_space<vmem>>, %arg19: memref<1x4x8x8xf32, #tpu.memory_space<vmem>>) attributes {dimension_semantics = [#tpu.dimension_semantics<parallel>, #tpu.dimension_semantics<parallel>], iteration_bounds = array<i64: 2, 1>, scalar_prefetch = 0 : i64, scratch_operands = 0 : i64, tpu.core_type = #tpu.core_type<tc>, window_params = [{transform_indices = @transform_0, window_bounds = array<i64: 1, 8, 32>}, {transform_indices = @transform_1, window_bounds = array<i64: 1, 8, 32>}, {pipeline_mode = #tpu.pipeline_mode<synchronous>, transform_indices = @transform_2, window_bounds = array<i64: 1, 32>}, {pipeline_mode = #tpu.pipeline_mode<synchronous>, transform_indices = @transform_3, window_bounds = array<i64: 1, 32>}, {pipeline_mode = #tpu.pipeline_mode<synchronous>, transform_indices = @transform_4, window_bounds = array<i64: 1, 32>}, {pipeline_mode = #tpu.pipeline_mode<synchronous>, transform_indices = @transform_5, window_bounds = array<i64: 1, 32>}, {pipeline_mode = #tpu.pipeline_mode<synchronous>, transform_indices = @transform_6, window_bounds = array<i64: 32, 32>}, {pipeline_mode = #tpu.pipeline_mode<synchronous>, transform_indices = @transform_7, window_bounds = array<i64: 1, 32>}, {pipeline_mode = #tpu.pipeline_mode<synchronous>, transform_indices = @transform_8, window_bounds = array<i64: 32, 64>}, {pipeline_mode = #tpu.pipeline_mode<synchronous>, transform_indices = @transform_9, window_bounds = array<i64: 1, 64>}, {pipeline_mode = #tpu.pipeline_mode<synchronous>, transform_indices = @transform_10, window_bounds = array<i64: 32, 32>}, {pipeline_mode = #tpu.pipeline_mode<synchronous>, transform_indices = @transform_11, window_bounds = array<i64: 1, 32>}, {pipeline_mode = #tpu.pipeline_mode<synchronous>, transform_indices = @transform_12, window_bounds = array<i64: 32, 64>}, {pipeline_mode = #tpu.pipeline_mode<synchronous>, transform_indices = @transform_13, window_bounds = array<i64: 1, 64>}, {pipeline_mode = #tpu.pipeline_mode<synchronous>, transform_indices = @transform_14, window_bounds = array<i64: 64, 32>}, {pipeline_mode = #tpu.pipeline_mode<synchronous>, transform_indices = @transform_15, window_bounds = array<i64: 1, 32>}, {transform_indices = @transform_16, window_bounds = array<i64: 1, 8, 32>}, {transform_indices = @transform_17, window_bounds = array<i64: 1, 4, 8, 8>}]} {
    %c0 = arith.constant 0 : index
    %c0_0 = arith.constant 0 : index
    %c0_1 = arith.constant 0 : index
    %0 = vector.load %arg2[%c0, %c0_0, %c0_1] : memref<1x8x32xf32, #tpu.memory_space<vmem>>, vector<1x8x32xf32>
    %1 = vector.shape_cast %0 : vector<1x8x32xf32> to vector<8x32xf32>
    %c0_2 = arith.constant 0 : index
    %c0_3 = arith.constant 0 : index
    %c0_4 = arith.constant 0 : index
    %2 = vector.load %arg3[%c0_2, %c0_3, %c0_4] : memref<1x8x32xf32, #tpu.memory_space<vmem>>, vector<1x8x32xf32>
    %3 = vector.shape_cast %2 : vector<1x8x32xf32> to vector<8x32xf32>
    %cst = arith.constant dense<0.000000e+00> : vector<8xf32>
    %4 = vector.multi_reduction <add>, %1, %cst [1] : vector<8x32xf32> to vector<8xf32>
    %5 = vector.shape_cast %4 : vector<8xf32> to vector<8x1xf32>
    %cst_5 = arith.constant 3.200000e+01 : f32
    %6 = vector.broadcast %cst_5 : f32 to vector<8x1xf32>
    %7 = arith.divf %5, %6 : vector<8x1xf32>
    %8 = vector.broadcast %7 : vector<8x1xf32> to vector<8x32xf32>
    %9 = arith.subf %1, %8 : vector<8x32xf32>
    %10 = arith.mulf %9, %9 : vector<8x32xf32>
    %cst_6 = arith.constant dense<0.000000e+00> : vector<8xf32>
    %11 = vector.multi_reduction <add>, %10, %cst_6 [1] : vector<8x32xf32> to vector<8xf32>
    %12 = vector.shape_cast %11 : vector<8xf32> to vector<8x1xf32>
    %cst_7 = arith.constant 3.200000e+01 : f32
    %13 = vector.broadcast %cst_7 : f32 to vector<8x1xf32>
    %14 = arith.divf %12, %13 : vector<8x1xf32>
    %15 = vector.broadcast %7 : vector<8x1xf32> to vector<8x32xf32>
    %16 = arith.subf %1, %15 : vector<8x32xf32>
    %cst_8 = arith.constant 9.99999997E-7 : f32
    %17 = vector.broadcast %cst_8 : f32 to vector<8x1xf32>
    %18 = arith.addf %14, %17 : vector<8x1xf32>
    %19 = math.rsqrt %18 : vector<8x1xf32>
    %20 = vector.broadcast %19 : vector<8x1xf32> to vector<8x32xf32>
    %21 = arith.mulf %16, %20 : vector<8x32xf32>
    %c0_9 = arith.constant 0 : index
    %c0_10 = arith.constant 0 : index
    %22 = vector.load %arg4[%c0_9, %c0_10] : memref<1x32xf32, #tpu.memory_space<vmem>>, vector<1x32xf32>
    %23 = vector.broadcast %22 : vector<1x32xf32> to vector<8x32xf32>
    %24 = arith.mulf %21, %23 : vector<8x32xf32>
    %c0_11 = arith.constant 0 : index
    %c0_12 = arith.constant 0 : index
    %25 = vector.load %arg5[%c0_11, %c0_12] : memref<1x32xf32, #tpu.memory_space<vmem>>, vector<1x32xf32>
    %26 = vector.broadcast %25 : vector<1x32xf32> to vector<8x32xf32>
    %27 = arith.addf %24, %26 : vector<8x32xf32>
    %cst_13 = arith.constant dense<0.000000e+00> : vector<8xf32>
    %28 = vector.multi_reduction <add>, %3, %cst_13 [1] : vector<8x32xf32> to vector<8xf32>
    %29 = vector.shape_cast %28 : vector<8xf32> to vector<8x1xf32>
    %cst_14 = arith.constant 3.200000e+01 : f32
    %30 = vector.broadcast %cst_14 : f32 to vector<8x1xf32>
    %31 = arith.divf %29, %30 : vector<8x1xf32>
    %32 = vector.broadcast %31 : vector<8x1xf32> to vector<8x32xf32>
    %33 = arith.subf %3, %32 : vector<8x32xf32>
    %34 = arith.mulf %33, %33 : vector<8x32xf32>
    %cst_15 = arith.constant dense<0.000000e+00> : vector<8xf32>
    %35 = vector.multi_reduction <add>, %34, %cst_15 [1] : vector<8x32xf32> to vector<8xf32>
    %36 = vector.shape_cast %35 : vector<8xf32> to vector<8x1xf32>
    %cst_16 = arith.constant 3.200000e+01 : f32
    %37 = vector.broadcast %cst_16 : f32 to vector<8x1xf32>
    %38 = arith.divf %36, %37 : vector<8x1xf32>
    %39 = vector.broadcast %31 : vector<8x1xf32> to vector<8x32xf32>
    %40 = arith.subf %3, %39 : vector<8x32xf32>
    %cst_17 = arith.constant 9.99999997E-7 : f32
    %41 = vector.broadcast %cst_17 : f32 to vector<8x1xf32>
    %42 = arith.addf %38, %41 : vector<8x1xf32>
    %43 = math.rsqrt %42 : vector<8x1xf32>
    %44 = vector.broadcast %43 : vector<8x1xf32> to vector<8x32xf32>
    %45 = arith.mulf %40, %44 : vector<8x32xf32>
    %c0_18 = arith.constant 0 : index
    %c0_19 = arith.constant 0 : index
    %46 = vector.load %arg4[%c0_18, %c0_19] : memref<1x32xf32, #tpu.memory_space<vmem>>, vector<1x32xf32>
    %47 = vector.broadcast %46 : vector<1x32xf32> to vector<8x32xf32>
    %48 = arith.mulf %45, %47 : vector<8x32xf32>
    %c0_20 = arith.constant 0 : index
    %c0_21 = arith.constant 0 : index
    %49 = vector.load %arg5[%c0_20, %c0_21] : memref<1x32xf32, #tpu.memory_space<vmem>>, vector<1x32xf32>
    %50 = vector.broadcast %49 : vector<1x32xf32> to vector<8x32xf32>
    %51 = arith.addf %48, %50 : vector<8x32xf32>
    %52 = arith.truncf %27 : vector<8x32xf32> to vector<8x32xbf16>
    %c0_22 = arith.constant 0 : index
    %c0_23 = arith.constant 0 : index
    %53 = vector.load %arg8[%c0_22, %c0_23] : memref<32x32xbf16, #tpu.memory_space<vmem>>, vector<32x32xbf16>
    %cst_24 = arith.constant dense<0.000000e+00> : vector<8x32xf32>
    %54 = tpu.matmul %52, %53, %cst_24 {dimension_numbers = #tpu.dot_dimension_numbers<[1], [0], [0], [1], [0, 0, 1, 1], [], []>} : vector<8x32xbf16>, vector<32x32xbf16>, vector<8x32xf32> -> vector<8x32xf32>
    %c0_25 = arith.constant 0 : index
    %c0_26 = arith.constant 0 : index
    %55 = vector.load %arg9[%c0_25, %c0_26] : memref<1x32xf32, #tpu.memory_space<vmem>>, vector<1x32xf32>
    %56 = vector.broadcast %55 : vector<1x32xf32> to vector<8x32xf32>
    %57 = arith.addf %54, %56 : vector<8x32xf32>
    %58 = arith.truncf %51 : vector<8x32xf32> to vector<8x32xbf16>
    %c0_27 = arith.constant 0 : index
    %c0_28 = arith.constant 0 : index
    %59 = vector.load %arg10[%c0_27, %c0_28] : memref<32x64xbf16, #tpu.memory_space<vmem>>, vector<32x64xbf16>
    %cst_29 = arith.constant dense<0.000000e+00> : vector<8x64xf32>
    %60 = tpu.matmul %58, %59, %cst_29 {dimension_numbers = #tpu.dot_dimension_numbers<[1], [0], [0], [1], [0, 0, 1, 1], [], []>} : vector<8x32xbf16>, vector<32x64xbf16>, vector<8x64xf32> -> vector<8x64xf32>
    %c0_30 = arith.constant 0 : index
    %c0_31 = arith.constant 0 : index
    %61 = vector.load %arg11[%c0_30, %c0_31] : memref<1x64xf32, #tpu.memory_space<vmem>>, vector<1x64xf32>
    %62 = vector.broadcast %61 : vector<1x64xf32> to vector<8x64xf32>
    %63 = arith.addf %60, %62 : vector<8x64xf32>
    %64 = vector.extract_strided_slice %63 {offsets = [0, 0], sizes = [8, 32], strides = [1, 1]} : vector<8x64xf32> to vector<8x32xf32>
    %65 = vector.extract_strided_slice %63 {offsets = [0, 32], sizes = [8, 32], strides = [1, 1]} : vector<8x64xf32> to vector<8x32xf32>
    %66 = vector.shape_cast %57 : vector<8x32xf32> to vector<8x4x8xf32>
    %67 = arith.truncf %66 : vector<8x4x8xf32> to vector<8x4x8xbf16>
    %68 = vector.shape_cast %64 : vector<8x32xf32> to vector<8x4x8xf32>
    %69 = arith.truncf %68 : vector<8x4x8xf32> to vector<8x4x8xbf16>
    %70 = vector.shape_cast %65 : vector<8x32xf32> to vector<8x4x8xf32>
    %71 = arith.truncf %70 : vector<8x4x8xf32> to vector<8x4x8xbf16>
    "tpu.trace_start"() <{level = 10 : i32, message = "qhd,khd->hqk"}> : () -> ()
    %cst_32 = arith.constant dense<0.000000e+00> : vector<4x8x8xf32>
    %72 = tpu.matmul %67, %69, %cst_32 {dimension_numbers = #tpu.dot_dimension_numbers<[2], [2], [0], [0], [0, 1, 0, 0, 1, 0], [1], [1]>} : vector<8x4x8xbf16>, vector<8x4x8xbf16>, vector<4x8x8xf32> -> vector<4x8x8xf32>
    "tpu.trace_stop"() : () -> ()
    %cst_33 = arith.constant 0.353553385 : f32
    %73 = vector.broadcast %cst_33 : f32 to vector<4x8x8xf32>
    %74 = arith.mulf %72, %73 : vector<4x8x8xf32>
    %cst_34 = arith.constant dense<0xFF800000> : vector<4x8xf32>
    %75 = vector.multi_reduction <maximumf>, %74, %cst_34 [2] : vector<4x8x8xf32> to vector<4x8xf32>
    %76 = vector.shape_cast %75 : vector<4x8xf32> to vector<4x8x1xf32>
    %77 = vector.broadcast %76 : vector<4x8x1xf32> to vector<4x8x8xf32>
    %78 = arith.subf %74, %77 : vector<4x8x8xf32>
    %79 = math.exp %78 : vector<4x8x8xf32>
    %cst_35 = arith.constant dense<0.000000e+00> : vector<4x8xf32>
    %80 = vector.multi_reduction <add>, %79, %cst_35 [2] : vector<4x8x8xf32> to vector<4x8xf32>
    %81 = vector.shape_cast %80 : vector<4x8xf32> to vector<4x8x1xf32>
    %82 = tpu.reciprocal %81 {approx = true} : vector<4x8x1xf32> -> vector<4x8x1xf32>
    %83 = vector.broadcast %82 : vector<4x8x1xf32> to vector<4x8x8xf32>
    %84 = arith.mulf %79, %83 : vector<4x8x8xf32>
    %c0_36 = arith.constant 0 : index
    %c0_37 = arith.constant 0 : index
    %c0_38 = arith.constant 0 : index
    %c0_39 = arith.constant 0 : index
    %85 = vector.load %arg19[%c0_36, %c0_37, %c0_38, %c0_39] : memref<1x4x8x8xf32, #tpu.memory_space<vmem>>, vector<1x4x8x8xf32>
    %86 = vector.shape_cast %85 : vector<1x4x8x8xf32> to vector<4x8x8xf32>
    %87 = vector.shape_cast %84 : vector<4x8x8xf32> to vector<1x4x8x8xf32>
    tpu.vector_store %arg19[%c0_36, %c0_37, %c0_38, %c0_39], %87 {strides = array<i32>} : memref<1x4x8x8xf32, #tpu.memory_space<vmem>>, vector<1x4x8x8xf32>,
    %88 = arith.truncf %84 : vector<4x8x8xf32> to vector<4x8x8xbf16>
    "tpu.trace_start"() <{level = 10 : i32, message = "hqk,khd->qhd"}> : () -> ()
    %cst_40 = arith.constant dense<0.000000e+00> : vector<4x8x8xf32>
    %89 = tpu.matmul %71, %88, %cst_40 {dimension_numbers = #tpu.dot_dimension_numbers<[0], [2], [2], [1], [0, 1, 0, 2, 1, 1], [1], [0]>} : vector<8x4x8xbf16>, vector<4x8x8xbf16>, vector<4x8x8xf32> -> vector<4x8x8xf32>
    %90 = tpu.transpose %89, [2, 0, 1] : vector<4x8x8xf32> -> vector<8x4x8xf32>
    "tpu.trace_stop"() : () -> ()
    %91 = vector.shape_cast %90 : vector<8x4x8xf32> to vector<8x32xf32>
    %92 = arith.truncf %91 : vector<8x32xf32> to vector<8x32xbf16>
    %c0_41 = arith.constant 0 : index
    %c0_42 = arith.constant 0 : index
    %93 = vector.load %arg12[%c0_41, %c0_42] : memref<32x32xbf16, #tpu.memory_space<vmem>>, vector<32x32xbf16>
    %cst_43 = arith.constant dense<0.000000e+00> : vector<8x32xf32>
    %94 = tpu.matmul %92, %93, %cst_43 {dimension_numbers = #tpu.dot_dimension_numbers<[1], [0], [0], [1], [0, 0, 1, 1], [], []>} : vector<8x32xbf16>, vector<32x32xbf16>, vector<8x32xf32> -> vector<8x32xf32>
    %c0_44 = arith.constant 0 : index
    %c0_45 = arith.constant 0 : index
    %95 = vector.load %arg13[%c0_44, %c0_45] : memref<1x32xf32, #tpu.memory_space<vmem>>, vector<1x32xf32>
    %96 = vector.broadcast %95 : vector<1x32xf32> to vector<8x32xf32>
    %97 = arith.addf %94, %96 : vector<8x32xf32>
    %98 = arith.addf %97, %1 : vector<8x32xf32>
    %cst_46 = arith.constant dense<0.000000e+00> : vector<8xf32>
    %99 = vector.multi_reduction <add>, %98, %cst_46 [1] : vector<8x32xf32> to vector<8xf32>
    %100 = vector.shape_cast %99 : vector<8xf32> to vector<8x1xf32>
    %cst_47 = arith.constant 3.200000e+01 : f32
    %101 = vector.broadcast %cst_47 : f32 to vector<8x1xf32>
    %102 = arith.divf %100, %101 : vector<8x1xf32>
    %103 = vector.broadcast %102 : vector<8x1xf32> to vector<8x32xf32>
    %104 = arith.subf %98, %103 : vector<8x32xf32>
    %105 = arith.mulf %104, %104 : vector<8x32xf32>
    %cst_48 = arith.constant dense<0.000000e+00> : vector<8xf32>
    %106 = vector.multi_reduction <add>, %105, %cst_48 [1] : vector<8x32xf32> to vector<8xf32>
    %107 = vector.shape_cast %106 : vector<8xf32> to vector<8x1xf32>
    %cst_49 = arith.constant 3.200000e+01 : f32
    %108 = vector.broadcast %cst_49 : f32 to vector<8x1xf32>
    %109 = arith.divf %107, %108 : vector<8x1xf32>
    %110 = vector.broadcast %102 : vector<8x1xf32> to vector<8x32xf32>
    %111 = arith.subf %98, %110 : vector<8x32xf32>
    %cst_50 = arith.constant 9.99999997E-7 : f32
    %112 = vector.broadcast %cst_50 : f32 to vector<8x1xf32>
    %113 = arith.addf %109, %112 : vector<8x1xf32>
    %114 = math.rsqrt %113 : vector<8x1xf32>
    %115 = vector.broadcast %114 : vector<8x1xf32> to vector<8x32xf32>
    %116 = arith.mulf %111, %115 : vector<8x32xf32>
    %c0_51 = arith.constant 0 : index
    %c0_52 = arith.constant 0 : index
    %117 = vector.load %arg6[%c0_51, %c0_52] : memref<1x32xf32, #tpu.memory_space<vmem>>, vector<1x32xf32>
    %118 = vector.broadcast %117 : vector<1x32xf32> to vector<8x32xf32>
    %119 = arith.mulf %116, %118 : vector<8x32xf32>
    %c0_53 = arith.constant 0 : index
    %c0_54 = arith.constant 0 : index
    %120 = vector.load %arg7[%c0_53, %c0_54] : memref<1x32xf32, #tpu.memory_space<vmem>>, vector<1x32xf32>
    %121 = vector.broadcast %120 : vector<1x32xf32> to vector<8x32xf32>
    %122 = arith.addf %119, %121 : vector<8x32xf32>
    %123 = arith.truncf %122 : vector<8x32xf32> to vector<8x32xbf16>
    %c0_55 = arith.constant 0 : index
    %c0_56 = arith.constant 0 : index
    %124 = vector.load %arg14[%c0_55, %c0_56] : memref<32x64xbf16, #tpu.memory_space<vmem>>, vector<32x64xbf16>
    %cst_57 = arith.constant dense<0.000000e+00> : vector<8x64xf32>
    %125 = tpu.matmul %123, %124, %cst_57 {dimension_numbers = #tpu.dot_dimension_numbers<[1], [0], [0], [1], [0, 0, 1, 1], [], []>} : vector<8x32xbf16>, vector<32x64xbf16>, vector<8x64xf32> -> vector<8x64xf32>
    %c0_58 = arith.constant 0 : index
    %c0_59 = arith.constant 0 : index
    %126 = vector.load %arg15[%c0_58, %c0_59] : memref<1x64xf32, #tpu.memory_space<vmem>>, vector<1x64xf32>
    %127 = vector.broadcast %126 : vector<1x64xf32> to vector<8x64xf32>
    %128 = arith.addf %125, %127 : vector<8x64xf32>
    %cst_60 = arith.constant 5.000000e-01 : f32
    %129 = vector.broadcast %cst_60 : f32 to vector<8x64xf32>
    %130 = arith.mulf %129, %128 : vector<8x64xf32>
    %cst_61 = arith.constant 0.707106769 : f32
    %131 = vector.broadcast %cst_61 : f32 to vector<8x64xf32>
    %132 = arith.mulf %128, %131 : vector<8x64xf32>
    %133 = math.erf %132 : vector<8x64xf32>
    %cst_62 = arith.constant 1.000000e+00 : f32
    %134 = vector.broadcast %cst_62 : f32 to vector<8x64xf32>
    %135 = arith.addf %134, %133 : vector<8x64xf32>
    %136 = arith.mulf %130, %135 : vector<8x64xf32>
    %137 = arith.truncf %136 : vector<8x64xf32> to vector<8x64xbf16>
    %c0_63 = arith.constant 0 : index
    %c0_64 = arith.constant 0 : index
    %138 = vector.load %arg16[%c0_63, %c0_64] : memref<64x32xbf16, #tpu.memory_space<vmem>>, vector<64x32xbf16>
    %cst_65 = arith.constant dense<0.000000e+00> : vector<8x32xf32>
    %139 = tpu.matmul %137, %138, %cst_65 {dimension_numbers = #tpu.dot_dimension_numbers<[1], [0], [0], [1], [0, 0, 1, 1], [], []>} : vector<8x64xbf16>, vector<64x32xbf16>, vector<8x32xf32> -> vector<8x32xf32>
    %c0_66 = arith.constant 0 : index
    %c0_67 = arith.constant 0 : index
    %140 = vector.load %arg17[%c0_66, %c0_67] : memref<1x32xf32, #tpu.memory_space<vmem>>, vector<1x32xf32>
    %141 = vector.broadcast %140 : vector<1x32xf32> to vector<8x32xf32>
    %142 = arith.addf %139, %141 : vector<8x32xf32>
    %143 = arith.addf %98, %142 : vector<8x32xf32>
    %c0_68 = arith.constant 0 : index
    %c0_69 = arith.constant 0 : index
    %c0_70 = arith.constant 0 : index
    %144 = vector.load %arg18[%c0_68, %c0_69, %c0_70] : memref<1x8x32xf32, #tpu.memory_space<vmem>>, vector<1x8x32xf32>
    %145 = vector.shape_cast %144 : vector<1x8x32xf32> to vector<8x32xf32>
    %146 = vector.shape_cast %143 : vector<8x32xf32> to vector<1x8x32xf32>
    tpu.vector_store %arg18[%c0_68, %c0_69, %c0_70], %146 {strides = array<i32>} : memref<1x8x32xf32, #tpu.memory_space<vmem>>, vector<1x8x32xf32>,
    return
  }
  func.func @transform_0(%arg0: i32, %arg1: i32) -> (i32, i32, i32) {
    %c0_i32 = arith.constant 0 : i32
    %c0_i32_0 = arith.constant 0 : i32
    return %arg0, %arg1, %c0_i32 : i32, i32, i32
  }
  func.func @transform_1(%arg0: i32, %arg1: i32) -> (i32, i32, i32) {
    %c0_i32 = arith.constant 0 : i32
    %c0_i32_0 = arith.constant 0 : i32
    %c0_i32_1 = arith.constant 0 : i32
    return %arg0, %c0_i32, %c0_i32_0 : i32, i32, i32
  }
  func.func @transform_2(%arg0: i32, %arg1: i32) -> (i32, i32) {
    %c0_i32 = arith.constant 0 : i32
    %c0_i32_0 = arith.constant 0 : i32
    %c0_i32_1 = arith.constant 0 : i32
    return %c0_i32, %c0_i32_0 : i32, i32
  }
  func.func @transform_3(%arg0: i32, %arg1: i32) -> (i32, i32) {
    %c0_i32 = arith.constant 0 : i32
    %c0_i32_0 = arith.constant 0 : i32
    %c0_i32_1 = arith.constant 0 : i32
    return %c0_i32, %c0_i32_0 : i32, i32
  }
  func.func @transform_4(%arg0: i32, %arg1: i32) -> (i32, i32) {
    %c0_i32 = arith.constant 0 : i32
    %c0_i32_0 = arith.constant 0 : i32
    %c0_i32_1 = arith.constant 0 : i32
    return %c0_i32, %c0_i32_0 : i32, i32
  }
  func.func @transform_5(%arg0: i32, %arg1: i32) -> (i32, i32) {
    %c0_i32 = arith.constant 0 : i32
    %c0_i32_0 = arith.constant 0 : i32
    %c0_i32_1 = arith.constant 0 : i32
    return %c0_i32, %c0_i32_0 : i32, i32
  }
  func.func @transform_6(%arg0: i32, %arg1: i32) -> (i32, i32) {
    %c0_i32 = arith.constant 0 : i32
    %c0_i32_0 = arith.constant 0 : i32
    %c0_i32_1 = arith.constant 0 : i32
    return %c0_i32, %c0_i32_0 : i32, i32
  }
  func.func @transform_7(%arg0: i32, %arg1: i32) -> (i32, i32) {
    %c0_i32 = arith.constant 0 : i32
    %c0_i32_0 = arith.constant 0 : i32
    %c0_i32_1 = arith.constant 0 : i32
    return %c0_i32, %c0_i32_0 : i32, i32
  }
  func.func @transform_8(%arg0: i32, %arg1: i32) -> (i32, i32) {
    %c0_i32 = arith.constant 0 : i32
    %c0_i32_0 = arith.constant 0 : i32
    %c0_i32_1 = arith.constant 0 : i32
    return %c0_i32, %c0_i32_0 : i32, i32
  }
  func.func @transform_9(%arg0: i32, %arg1: i32) -> (i32, i32) {
    %c0_i32 = arith.constant 0 : i32
    %c0_i32_0 = arith.constant 0 : i32
    %c0_i32_1 = arith.constant 0 : i32
    return %c0_i32, %c0_i32_0 : i32, i32
  }
  func.func @transform_10(%arg0: i32, %arg1: i32) -> (i32, i32) {
    %c0_i32 = arith.constant 0 : i32
    %c0_i32_0 = arith.constant 0 : i32
    %c0_i32_1 = arith.constant 0 : i32
    return %c0_i32, %c0_i32_0 : i32, i32
  }
  func.func @transform_11(%arg0: i32, %arg1: i32) -> (i32, i32) {
    %c0_i32 = arith.constant 0 : i32
    %c0_i32_0 = arith.constant 0 : i32
    %c0_i32_1 = arith.constant 0 : i32
    return %c0_i32, %c0_i32_0 : i32, i32
  }
  func.func @transform_12(%arg0: i32, %arg1: i32) -> (i32, i32) {
    %c0_i32 = arith.constant 0 : i32
    %c0_i32_0 = arith.constant 0 : i32
    %c0_i32_1 = arith.constant 0 : i32
    return %c0_i32, %c0_i32_0 : i32, i32
  }
  func.func @transform_13(%arg0: i32, %arg1: i32) -> (i32, i32) {
    %c0_i32 = arith.constant 0 : i32
    %c0_i32_0 = arith.constant 0 : i32
    %c0_i32_1 = arith.constant 0 : i32
    return %c0_i32, %c0_i32_0 : i32, i32
  }
  func.func @transform_14(%arg0: i32, %arg1: i32) -> (i32, i32) {
    %c0_i32 = arith.constant 0 : i32
    %c0_i32_0 = arith.constant 0 : i32
    %c0_i32_1 = arith.constant 0 : i32
    return %c0_i32, %c0_i32_0 : i32, i32
  }
  func.func @transform_15(%arg0: i32, %arg1: i32) -> (i32, i32) {
    %c0_i32 = arith.constant 0 : i32
    %c0_i32_0 = arith.constant 0 : i32
    %c0_i32_1 = arith.constant 0 : i32
    return %c0_i32, %c0_i32_0 : i32, i32
  }
  func.func @transform_16(%arg0: i32, %arg1: i32) -> (i32, i32, i32) {
    %c0_i32 = arith.constant 0 : i32
    %c0_i32_0 = arith.constant 0 : i32
    return %arg0, %arg1, %c0_i32 : i32, i32, i32
  }
  func.func @transform_17(%arg0: i32, %arg1: i32) -> (i32, i32, i32, i32) {
    %c0_i32 = arith.constant 0 : i32
    %c0_i32_0 = arith.constant 0 : i32
    %c0_i32_1 = arith.constant 0 : i32
    return %arg0, %c0_i32, %arg1, %c0_i32_0 : i32, i32, i32, i32
  }
}

</mosaic_0001>

<bundles_post_ra>
// kernel: tpu_custom_call.1
= control target key start
LH: loop header
LB: loop body
LE: loop exit
PB: predicated region body
PF: predicated region fallthrough
CT: control target
= control target key end

     0   :  { %s3864_s0 = inlined_call_operand.vmem [shape: f32[2,8,32], index: 0, kind: input, shape index: {}]   ;;  %s3865_s1 = inlined_call_operand.vmem [shape: f32[2,8,32], index: 1, kind: input, shape index: {}]   ;;  %s3866_s2 = inlined_call_operand.vmem [shape: f32[1,32], index: 2, kind: input, shape index: {}]   ;;  %s3867_s3 = inlined_call_operand.vmem [shape: f32[1,32], index: 3, kind: input, shape index: {}]   ;;  %s3868_s4 = inlined_call_operand.vmem [shape: f32[1,32], index: 4, kind: input, shape index: {}]   ;;  %s3869_s5 = inlined_call_operand.vmem [shape: f32[1,32], index: 5, kind: input, shape index: {}]   ;;  %s3870_s6 = inlined_call_operand.vmem [shape: bf16[32,32], index: 6, kind: input, shape index: {}]   ;;  %s3871_s7 = inlined_call_operand.vmem [shape: f32[1,32], index: 7, kind: input, shape index: {}]   ;;  %s3872_s8 = inlined_call_operand.hbm [shape: bf16[32,64], index: 8, kind: input, shape index: {}]   ;;  %s3873_s9 = inlined_call_operand.vmem [shape: f32[1,64], index: 9, kind: input, shape index: {}]   ;;  %s3874_s10 = inlined_call_operand.hbm [shape: bf16[32,32], index: 10, kind: input, shape index: {}]   ;;  %s3875_s11 = inlined_call_operand.vmem [shape: f32[1,32], index: 11, kind: input, shape index: {}]   ;;  %s3876_s12 = inlined_call_operand.hbm [shape: bf16[32,64], index: 12, kind: input, shape index: {}]   ;;  %s3877_s13 = inlined_call_operand.vmem [shape: f32[1,64], index: 13, kind: input, shape index: {}]   ;;  %s3878_s14 = inlined_call_operand.vmem [shape: bf16[64,32], index: 14, kind: input, shape index: {}]   ;;  %s3879_s15 = inlined_call_operand.vmem [shape: f32[1,32], index: 15, kind: input, shape index: {}]   ;;  %s3880_s16 = inlined_call_operand.hbm [shape: f32[2,8,32], index: 16, kind: output, shape index: {0}]   ;;  %s3881_s17 = inlined_call_operand.hbm [shape: f32[2,4,8,8], index: 17, kind: output, shape index: {1}]  }
   0x1   :  { %3894 = sst [smem:[#allocation23_spill]] %s3864_s0 }
   0x2   :  { %3895 = sst [smem:[#allocation24_spill]] %s3865_s1 }
   0x3   :  { %3896 = sst [smem:[#allocation25_spill]] %s3866_s2 }
   0x4   :  { %3897 = sst [smem:[#allocation26_spill]] %s3867_s3 }
   0x5   :  { %3898 = sst [smem:[#allocation27_spill]] %s3868_s4 }
   0x6   :  { %3899 = sst [smem:[#allocation28_spill]] %s3874_s10 }
   0x7   :  { %3900 = sst [smem:[#allocation29_spill]] %s3879_s15 }
   0x8   :  { %3901 = sst [smem:[#allocation30_spill]] %s3880_s16 }
   0x9   :  { %3902 = sst [smem:[#allocation31_spill]] %s3881_s17 }
   0xa   :  { %23 = vsyncpa [#allocation3], 0 }
   0xb   :  { %24 = vsyncpa [#allocation6], 0 }
   0xc   :  { %25 = vsyncpa [#allocation4], 0 }
   0xd   :  { %27 = vsyncpa [#allocation4 + $0x1], 0 }
   0xe   :  { %28 = vsyncpa [#allocation10], 0 }
   0xf   :  { %30 = vsyncpa [#allocation10 + $0x1], 0  ;;  %s3353_s24 = smov 0   ;;  %s3355_s25 = smov 0  }
  0x10   :  { %s3357_s26 = smov 0   ;;  %s3359_s27 = smov 0  }
  0x11   :  { %s3361_s28 = smov 0   ;;  %s3363_s29 = smov 0  }
  0x12 LB: > { %3903 = sst [smem:[#allocation15_spill]] %s3225_s24  ;;  %s2721_s0 = sadd.s32 4294967295, %s3245_s29   ;;  %s3245_s29 = sphi %s3363_s29, %s36_s29   ;;  %s3241_s28 = sphi %s3361_s28, %s3934_s28   ;;  %s3237_s27 = sphi %s3359_s27, %s3933_s27   ;;  %s3233_s26 = sphi %s3357_s26, %s3932_s26   ;;  %s3229_s25 = sphi %s3355_s25, %s3936_s25   ;;  %s3225_s24 = sphi %s3353_s24, %s3935_s24  }
  0x13   : > { %3904 = sst [smem:[#allocation16_spill]] %s3233_s26  ;;  %s2722_s30 = sadd.s32 4294967294, %s3245_s29  }
  0x14   : > { %3905 = sst [smem:[#allocation17_spill]] %s3241_s28  ;;  %s48_s18 = sadd.s32 1, %s3241_s28 }
  0x15   : > { %3906 = sst [smem:[#allocation18_spill]] %s3245_s29  ;;  %s405_s19 = sadd.s32 1, %s3233_s26 }
  0x16   : > { %p50_p0 = scmp.ge.s32.totalorder %s48_s18, 2  ;;  %p415_p1 = scmp.ne.s32.totalorder %s3233_s26, %s3229_s25 }
  0x17   : > { %p416_p2 = scmp.eq.s32.totalorder %s2721_s0, 1  ;;  %p421_p3 = scmp.ne.s32.totalorder %s3229_s25, %s3225_s24 }
  0x18   : > { %s3938_s18 = smov (%p50_p0, %s48_s18), 0  ;;  %p422_p5 = scmp.eq.s32.totalorder %s2722_s30, 1 }
  0x19   : > { %3907 = sst [smem:[#allocation19_spill]] %s3938_s18  ;;  %p3393_p4 = por %p416_p2, %p415_p1 }
  0x1a   : > { %s400_s20 = ssub.s32 %s3241_s28, %s3938_s18  ;;  %p2723_p6 = scmp.ge.s32.totalorder %s3245_s29, 1 }
  0x1b   : > { %s3908_s1 = scalar_select %p3393_p4, 1, 0 }
  0x1c   : > { %p403_p7 = scmp.eq.s32.totalorder %s400_s20, 0  ;;  %p3400_p8 = por %p422_p5, %p421_p3 }
  0x1d   : > { %3909 = sst [smem:[#allocation20_spill]] %s3908_s1  ;;  %p457_p9 = scmp.lt.s32.totalorder %s3245_s29, 3 }
  0x1e   : > { %s3910_s21 = scalar_select %p3400_p8, 1, 0 }
  0x1f   : > { %s3406_s22 = scalar_select %p403_p7, %s3233_s26, %s405_s19  }
  0x20   : > { %3911 = sst [smem:[#allocation21_spill]] %s3910_s21  ;;  %p3408_p10 = pnand %p2723_p6, %p457_p9 }
  0x21   : > { %3912 = sst [smem:[#allocation22_spill]] %s3406_s22  ;;  %p3412_p11 = scmp.eq.s32.totalorder %s2721_s0, 0 }
  0x22   : > { %p2834_p12 = pneg %p3408_p10  ;;  %s3915_s10 = sld [smem:[#allocation28_spill]] }
  0x23   : > { %s3247_s28 = smov [#allocation5]   ;;  %s3248_s22 = smov 64  }
  0x24   : > { %p3423_p13 = pnand %p3412_p11, %p2834_p12  ;;  %s505_s0 = sshll.u32 %s3247_s28, 4  ;;  %s506_s0 = int_to_ptr.vmem [resolvable:$true] %s505_s0 }
  0x25   : > { %s3249_s26 = smov 4   ;;  %s486_s30 = sshll.u32 %s3872_s8, 4  ;;  %s487_s30 = int_to_ptr.hbm [resolvable:$true] %s486_s30 }
  0x26   : > { %s3250_s20 = smov [#allocation2]   ;;  %s520_s17 = sshll.u32 %s3876_s12, 4  ;;  %s521_s17 = int_to_ptr.hbm [resolvable:$true] %s520_s17 }
  0x27   : > { %s3251_s28 = smov [#allocation7]  }
  0x28   : > { %s503_s18 = sshll.u32 %s3915_s10, 4  ;;  %s488_s10 = sshll.u32 %s3250_s20, 4  ;;  %s504_s18 = int_to_ptr.hbm [resolvable:$true] %s503_s18  ;;  %s489_s10 = int_to_ptr.vmem [resolvable:$true] %s488_s10 }
  0x29   : > { %2840 = dma.hbm_to_vmem [thread:$0]  (!%p3423_p13), %s504_s18, 256, %s506_s0, [#allocation6], %s3248_s22, %s3248_s22, %s3249_s26  }
  0x2a   : > { %2837 = dma.hbm_to_vmem [thread:$0]  (!%p3423_p13), %s487_s30, 256, %s489_s10, [#allocation3], %s3248_s22, %s3248_s22, %s3249_s26  }
  0x2b   : > { %s522_s1 = sshll.u32 %s3251_s28, 4  ;;  %564 = sbr.rel (%p3408_p10) target bundleno = 2780 (0xadc), region = 84  ;;  %s523_s1 = int_to_ptr.vmem [resolvable:$true] %s522_s1 }
  0x2c   : > { %2843 = dma.hbm_to_vmem [thread:$0]  (!%p3423_p13), %s521_s17, 256, %s523_s1, [#allocation6], %s3248_s22, %s3248_s22, %s3249_s26  }
  0x30   : > { %3208 = dma.done.wait (%p3412_p11), [#allocation3], 256  }
  0x31   : > { %3210 = vsyncadd (%p3412_p11), [#allocation3], 4294967040 }
  0x32   : > { %3212 = dma.done.wait (%p3412_p11), [#allocation6], 512  }
  0x33   : > { %3214 = vsyncadd (%p3412_p11), [#allocation6], 4294966784  ;;  %p638_p0 = scmp.lt.s32.totalorder %s3237_s27, 1  ;;  %s3917_s26 = sld [smem:[#allocation24_spill]]  ;;  %vm652_vm0 = vcmask 261120   ;;  %v3252_v4 = vmov 32.0  }
  0x34   : > { %s3918_s21 = sld [smem:[#allocation23_spill]]  ;;  %3010 = vrcp.f32 %v3252_v4  ;;  %v2806_v21 = vld [vmem:[%s3870_s6 + $0x8] sm:$0xff]  ;;  %v2805_v23 = vld [vmem:[%s3870_s6] sm:$0xff]  ;;  %s3254_s18 = smov 120   ;;  %vm801_vm8 = vcmask 1047556   ;;  %vm1468_vm9 = vcmask 1043456  }
  0x35   : > { %s639_s10 = scalar_select %p638_p0, %s3237_s27, 1  ;;  %v2808_v22 = vld [vmem:[#allocation2 + $0x8] sm:$0xff]  ;;  %746 = vmatpush.bf16.msra.mxu0 %v2806_v21  ;;  %v2807_v24 = vld [vmem:[#allocation2] sm:$0xff]  ;;  %vm1464_vm10 = vcmask 64512   ;;  %vm2321_vm11 = vcmask 130048   ;;  %vm2323_vm12 = vcmask 195584  }
  0x36   : > { %783 = vmatpush.bf16.msra.mxu1 %v2808_v22  ;;  %s3919_s2 = sld [smem:[#allocation25_spill]]  ;;  %v3004_v55 = vld [vmem:[%s3873_s9] ss:$0 sm:$0xff]  ;;  %s3255_s1 = smov 104  }
  0x37   : > { %s2734_s15 = sshll.u32 %s639_s10, 3  ;;  %s3920_s3 = sld [smem:[#allocation26_spill]]  ;;  %v3003_v56 = vld [vmem:[%s3871_s7] ss:$0 sm:$0xff] }
  0x38   : > { %s3687_s24 = sand.u32 1, %s3229_s25   ;;  %s3259_s0 = smov 24  }
  0x39   : > { %s648_s29 = scalar_lea.vmem %s3917_s26, %s2734_s15  ;;  %747 = vmatpush.bf16.msra.mxu0 %v2805_v23  ;;  %s2733_s23 = sshll.u32 %s3687_s24, 5 }
  0x3a   : > { %s3457_s22 = scalar_lea.vmem %s3918_s21, %s2734_s15  ;;  %v651_v0 = vld [vmem:[%s648_s29] sm:$0xff]  ;;  %v3011_v5 = vpop.eup %3010  ;;  %784 = vmatpush.bf16.msra.mxu1 %v2807_v24  ;;  %s3253_s29 = smov 112  }
  0x3b   : > { %v650_v1 = vld [vmem:[%s3457_s22] sm:$0xff]  ;;  %v692_v2 = vsel %vm652_vm0, %v651_v0, 0.0  ;;  %v657_v6 = vmul.f32 32.0, %v3011_v5  ;;  %vm661_vm1 = vweird.f32 %v3011_v5  ;;  %s3258_s21 = smov 96   ;;  %s3692_s19 = scalar_lea.vmem [#allocation9], %s2733_s23 }
  0x3c   : > { %v653_v3 = vsel %vm652_vm0, %v650_v1, 0.0  ;;  %693 = vadd.xlane.f32.xlu0 %v692_v2  ;;  %v3001_v43 = vld [vmem:[%s3919_s2] ss:$0 sm:$0xff]  ;;  %v3256_v2 = vmov 1983009808   ;;  %s3260_s30 = smov 16  }
  0x3d   : > { %654 = vadd.xlane.f32.xlu1 %v653_v3  ;;  %v658_v7 = vsub.f32 1.0, %v657_v6  ;;  %v3002_v46 = vld [vmem:[%s3920_s3] ss:$0 sm:$0xff]  ;;  %v806_v3 = vunpack.c.l.s4 %v3256_v2  ;;  %s3893_s20 = smov 8   ;;  %s3921_s4 = sld [smem:[#allocation27_spill]] }
  0x3e   : > { %s2566_s15 = sshll.u32 %s3692_s19, 4  ;;  %s2817_s16 = sshll.u32 %s3237_s27, 5  ;;  %s2567_s15 = int_to_ptr.vmem [resolvable:$true] %s2566_s15 }
  0x3f   : > { %v659_v8 = vmul.f32 %v3011_v5, %v658_v7  ;;  %v3506_v7 = vunpack.c.0.s8 %v806_v3  ;;  %s2538_s23 = scalar_lea.sflag [#allocation10], %s3687_s24 }
  0x41   : > { %v660_v9 = vadd.f32 %v3011_v5, %v659_v8 }
  0x43   : > { %v3462_v10 = vsel %vm661_vm1, %v3011_v5, %v660_v9 }
  0xaf   : > { %v694_v11 = vpop.xlane.xlu0 %693 }
  0xb0   : > { %v655_v12 = vpop.xlane.xlu1 %654  ;;  %v695_v13 = vmul.f32 %v694_v11, %v3462_v10  ;;  %v3257_v11 = vmov 1934713408  }
  0xb1   : > { %v663_v14 = vmul.f32 %v3462_v10, %v655_v12  ;;  %v830_v12 = vunpack.c.l.s4 %v3257_v11 }
  0xb2   : > { %v696_v15 = vsub.f32 %v651_v0, %v695_v13 }
  0xb3   : > { %v664_v16 = vsub.f32 %v650_v1, %v663_v14 }
  0xb4   : > { %v697_v17 = vmul.f32 %v696_v15, %v696_v15 }
  0xb5   : > { %v665_v18 = vmul.f32 %v664_v16, %v664_v16 }
  0xb6   : > { %v698_v19 = vsel %vm652_vm0, %v697_v17, 0.0 }
  0xb7   : > { %v666_v20 = vsel %vm652_vm0, %v665_v18, 0.0  ;;  %699 = vadd.xlane.f32.xlu0 %v698_v19 }
  0xb8   : > { %667 = vadd.xlane.f32.xlu1 %v666_v20  ;;  %v3515_v20 = vunpack.c.0.s8 %v830_v12 }
 0x12a   : > { %v700_v25 = vpop.xlane.xlu0 %699 }
 0x12b   : > { %v668_v26 = vpop.xlane.xlu1 %667  ;;  %v701_v27 = vmul.f32 %v700_v25, %v3462_v10 }
 0x12c   : > { %v669_v28 = vmul.f32 %v668_v26, %v3462_v10 }
 0x12d   : > { %v702_v29 = vadd.f32 1e-06, %v701_v27 }
 0x12e   : > { %v670_v30 = vadd.f32 1e-06, %v669_v28 }
 0x12f   : > { %3012 = vrsqrt.f32 %v702_v29  ;;  %vm709_vm5 = vweird.f32 %v702_v29 }
 0x130   : > { %3014 = vrsqrt.f32 %v670_v30  ;;  %vm677_vm3 = vweird.f32 %v670_v30 }
 0x135   : > { %v3013_v31 = vpop.eup %3012 }
 0x136   : > { %v3015_v32 = vpop.eup %3014  ;;  %v704_v33 = vmul.f32 %v3013_v31, %v702_v29  ;;  %vm710_vm2 = vweird.f32 %v3013_v31 }
 0x137   : > { %v672_v34 = vmul.f32 %v3015_v32, %v670_v30  ;;  %vm678_vm4 = vweird.f32 %v3015_v32  ;;  %vm711_vm6 = vmor %vm709_vm5, %vm710_vm2  ;;  %vm2513_vm5 = vcmask 523264  }
 0x138   : > { %v705_v35 = vmul.f32 %v3013_v31, %v704_v33  ;;  %vm679_vm7 = vmor %vm677_vm3, %vm678_vm4 }
 0x139   : > { %v673_v36 = vmul.f32 %v3015_v32, %v672_v34 }
 0x13a   : > { %v706_v37 = vmul.f32 0.5, %v705_v35 }
 0x13b   : > { %v674_v38 = vmul.f32 0.5, %v673_v36 }
 0x13c   : > { %v707_v39 = vsub.f32 1.5, %v706_v37 }
 0x13d   : > { %v675_v40 = vsub.f32 1.5, %v674_v38 }
 0x13e   : > { %v708_v41 = vmul.f32 %v3013_v31, %v707_v39 }
 0x13f   : > { %v676_v42 = vmul.f32 %v3015_v32, %v675_v40 }
 0x140   : > { %v712_v44 = vsel %vm711_vm6, %v3013_v31, %v708_v41 }
 0x141   : > { %v680_v45 = vsel %vm679_vm7, %v3015_v32, %v676_v42  ;;  %v713_v47 = vmul.f32 %v712_v44, %v696_v15 }
 0x142   : > { %v681_v48 = vmul.f32 %v680_v45, %v664_v16 }
 0x143   : > { %v714_v49 = vmul.f32 %v3001_v43, %v713_v47 }
 0x144   : > { %v686_v50 = vmul.f32 %v3001_v43, %v681_v48 }
 0x145   : > { %v715_v51 = vadd.f32 %v3002_v46, %v714_v49 }
 0x146   : > { %v691_v52 = vadd.f32 %v3002_v46, %v686_v50 }
 0x147   : > { %v753_v53 = vpack.c.bf16 %v715_v51, %v715_v51 }
 0x148   : > { %v716_v54 = vpack.c.bf16 %v691_v52, %v691_v52 }
 0x149   : > { %2753 = vmatmul.msk.bf16.vlgmr.msra.gmra.mxu1 %vm652_vm0, %v753_v53 }
 0x14a   : > { %2744 = vmatmul.msk.bf16.vlgmr.msra.gmra.mxu0 %vm652_vm0, %v716_v54 }
 0x1c6   : > { %v786_v57 = vpop.f32.mrf.mxu1 }
 0x1c7   : > { %v749_v58 = vpop.f32.mrf.mxu0  ;;  %v3490_v59 = vadd.f32 %v3004_v55, %v786_v57 }
 0x1c8   : > { %v3492_v60 = vadd.f32 %v3003_v56, %v749_v58 }
 0x1c9   : > { %869 = vrot.lane.b32.xlu0 %v3490_v59, %s3253_s29  ;;  %v877_v14 = vrot.slane %v3490_v59, 4 }
 0x1ca   : > { %v2924_v61 = vpack.i.bf16 %v3492_v60, %v3490_v59 }
 0x1cc   : > { %2925 = vrot.lane.b32.xlu2 %v2924_v61, %s3254_s18 }
 0x1ce   : > { %v788_v62 = vpop.f32.mrf.mxu1 }
 0x1cf   : > { %v751_v63 = vpop.f32.mrf.mxu0 }
 0x1d1   : > { %794 = vrot.lane.b32.xlu0 %v3492_v60, %s3253_s29  ;;  %s3923_s29 = sld [smem:[#allocation31_spill]] }
 0x1d4   : > { %872 = vrot.lane.b32.xlu2 %v3490_v59, %s3255_s1 }
 0x1d7   : > { %s3924_s18 = smov %s3923_s29 }
 0x1dc   : > { %797 = vrot.lane.b32.xlu2 %v3492_v60, %s3255_s1  ;;  %s2565_s1 = scalar_lea.hbm %s3923_s29, %s2817_s16 }
 0x226   : > { %v3500_v0 = vpop.permute.xlu2 %2925 }
 0x227   : > { %v3503_v1 = vunpack.i.l.bf16 %v3500_v0 }
 0x229   : > { %v889_v5 = vrot.slane %v3503_v1, 4 }
 0x22e   : > { %v873_v4 = vpop.permute.xlu2 %872 }
 0x22f   : > { %v887_v6 = vrot.slane %v873_v4, 4  ;;  %v890_v8 = vsel %vm801_vm8, %v873_v4, %v889_v5 }
 0x230   : > { %v898_v13 = vperm.slane %v890_v8, %v3506_v7 }
 0x231   : > { %v888_v9 = vsel %vm801_vm8, %v887_v6, %v3503_v1 }
 0x232   : > { %v894_v15 = vperm.slane %v888_v9, %v3506_v7  ;;  %v911_v21 = vrot.slane %v898_v13, 4 }
 0x234   : > { %v899_v24 = vrot.slane %v894_v15, 4 }
 0x236   : > { %v3534_v52 = vpop.permute.xlu2 %797 }
 0x23b   : > { %v870_v16 = vpop.permute.xlu0 %869 }
 0x23c   : > { %v875_v17 = vrot.slane %v870_v16, 4  ;;  %v878_v18 = vsel %vm801_vm8, %v870_v16, %v877_v14  ;;  %v2958_v19 = vpack.i.bf16 %v870_v16, %v873_v4 }
 0x23d   : > { %v886_v22 = vperm.slane %v878_v18, %v3506_v7 }
 0x23e   : > { %v876_v23 = vsel %vm801_vm8, %v875_v17, %v3490_v59 }
 0x23f   : > { %v882_v25 = vperm.slane %v876_v23, %v3506_v7  ;;  %v913_v26 = vrot.slane %v886_v22, 4  ;;  %v912_v27 = vsel %vm801_vm8, %v911_v21, %v886_v22 }
 0x240   : > { %v918_v28 = vperm.slane %v912_v27, %v3515_v20 }
 0x241   : > { %v914_v29 = vsel %vm801_vm8, %v898_v13, %v913_v26  ;;  %v900_v30 = vsel %vm801_vm8, %v899_v24, %v882_v25  ;;  %v901_v40 = vrot.slane %v882_v25, 4 }
 0x242   : > { %v927_v31 = vrot.slane %v918_v28, 4  ;;  %v922_v32 = vperm.slane %v914_v29, %v3515_v20  ;;  %v906_v33 = vperm.slane %v900_v30, %v3515_v20  ;;  %v935_v36 = vpack.c.bf16 %v918_v28, %v918_v28 }
 0x243   : > { %v902_v46 = vsel %vm801_vm8, %v894_v15, %v901_v40  ;;  %v3536_v54 = vpop.permute.xlu0 %794 }
 0x244   : > { %v928_v34 = vsel %vm801_vm8, 0.0, %v927_v31  ;;  %v929_v35 = vrot.slane %v922_v32, 4  ;;  %v923_v38 = vrot.slane %v906_v33, 4  ;;  %v937_v41 = vpack.c.bf16 %v922_v32, %v922_v32 }
 0x245   : > { %v936_v37 = vpack.c.bf16 %v928_v34, %v928_v34  ;;  %v931_v44 = vpack.c.bf16 %v906_v33, %v906_v33  ;;  %v910_v47 = vperm.slane %v902_v46, %v3515_v20 }
 0x246   : > { %v930_v39 = vsel %vm801_vm8, 0.0, %v929_v35  ;;  %v924_v43 = vsel %vm801_vm8, 0.0, %v923_v38 }
 0x247   : > { %2932 = vxpose.binary.xlu1.c.b16.start.end [1/2] (short) (narrow) %v936_v37, %v935_v36, 16  ;;  %v938_v42 = vpack.c.bf16 %v930_v39, %v930_v39  ;;  %v932_v45 = vpack.c.bf16 %v924_v43, %v924_v43  ;;  %v925_v48 = vrot.slane %v910_v47, 4  ;;  %v933_v50 = vpack.c.bf16 %v910_v47, %v910_v47 }
 0x249   : > { %2929 = vxpose.binary.xlu0.c.b16.start.end [1/2] (short) (narrow) %v938_v42, %v937_v41, 16  ;;  %v926_v49 = vsel %vm801_vm8, 0.0, %v925_v48 }
 0x24a   : > { %2935 = vxpose.binary.xlu2.c.b16.start.end [1/2] (short) (narrow) %v932_v45, %v931_v44, 16  ;;  %v934_v51 = vpack.c.bf16 %v926_v49, %v926_v49 }
 0x25a   : > { %2938 = vxpose.binary.xlu2.c.b16.start.end [1/2] (short) (narrow) %v934_v51, %v933_v50, 16 }
 0x2c3   : > { %2959 = vrot.lane.b32.xlu2 %v2958_v19, %s3258_s21 }
 0x2eb   : > { %v2936_v53 = vpop.trf.xlu2 }
 0x2f3   : > { %v2937_v55 = vpop.trf.xlu2  ;;  %v2933_v56 = vpop.trf.xlu1 }
 0x2f4   : > { %v1196_v62 = vrot.slane %v2933_v56, 4 }
 0x2f5   : > { %v2930_v57 = vpop.trf.xlu0 }
 0x2f6   : > { %v1202_v58 = vrot.slane %v2930_v57, 4  ;;  %v1197_v5 = vsel %vm801_vm8, %v1196_v62, %v2936_v53  ;;  %v2928_v62 = vunpack.i.h.bf16 %v3500_v0 }
 0x2f7   : > { %v1201_v11 = vperm.slane %v1197_v5, %v3506_v7 }
 0x2f9   : > { %v1210_v28 = vrot.slane %v1201_v11, 4 }
 0x2fb   : > { %v2939_v61 = vpop.trf.xlu2  ;;  %v2934_v3 = vpop.trf.xlu1 }
 0x2fc   : > { %v1203_v63 = vsel %vm801_vm8, %v1202_v58, %v2939_v61  ;;  %v1224_v6 = vrot.slane %v2934_v3, 4  ;;  %v803_v58 = vrot.slane %v3492_v60, 4 }
 0x2fd   : > { %v1207_v2 = vperm.slane %v1203_v63, %v3506_v7  ;;  %v2931_v4 = vpop.trf.xlu0  ;;  %v800_v63 = vrot.slane %v3536_v54, 4 }
 0x2fe   : > { %v1230_v8 = vrot.slane %v2931_v4, 4  ;;  %v1225_v13 = vsel %vm801_vm8, %v1224_v6, %v2937_v55  ;;  %v2953_v55 = vpack.i.bf16 %v3490_v59, %v3503_v1  ;;  %v815_v4 = vrot.slane %v2928_v62, 4 }
 0x2ff   : > { %v1208_v9 = vrot.slane %v1207_v2, 4  ;;  %v1229_v17 = vperm.slane %v1225_v13, %v3506_v7  ;;  %v1211_v30 = vsel %vm801_vm8, %v1207_v2, %v1210_v28  ;;  %v804_v2 = vsel %vm801_vm8, %v3536_v54, %v803_v58 }
 0x300   : > { %v1219_v32 = vperm.slane %v1211_v30, %v3515_v20  ;;  %v812_v3 = vperm.slane %v804_v2, %v3506_v7  ;;  %v802_v59 = vsel %vm801_vm8, %v800_v63, %v3492_v60  ;;  %v813_v1 = vrot.slane %v3534_v52, 4 }
 0x301   : > { %v1209_v15 = vsel %vm801_vm8, %v1208_v9, %v1201_v11  ;;  %v1238_v27 = vrot.slane %v1229_v17, 4  ;;  %v816_v5 = vsel %vm801_vm8, %v3534_v52, %v815_v4 }
 0x302   : > { %v1215_v19 = vperm.slane %v1209_v15, %v3515_v20  ;;  %v1272_v34 = vshrl.u32 %v1219_v32, 16  ;;  %v1222_v46 = vrot.slane %v1219_v32, 4  ;;  %v839_v0 = vrot.slane %v812_v3, 4 }
 0x303   : > { %v2940_v12 = vpop.trf.xlu2  ;;  %v824_v9 = vperm.slane %v816_v5, %v3506_v7  ;;  %v814_v11 = vsel %vm801_vm8, %v813_v1, %v2928_v62 }
 0x304   : > { %v1231_v14 = vsel %vm801_vm8, %v1230_v8, %v2940_v12  ;;  %v1256_v23 = vshrl.u32 %v1215_v19, 16  ;;  %v1220_v38 = vrot.slane %v1215_v19, 4  ;;  %v1223_v48 = vsel %vm801_vm8, 0, %v1222_v46 }
 0x305   : > { %v1235_v16 = vperm.slane %v1231_v14, %v3506_v7  ;;  %v1280_v50 = vshrl.u32 %v1223_v48, 16  ;;  %v808_v8 = vperm.slane %v802_v59, %v3506_v7  ;;  %v840_v12 = vsel %vm801_vm8, %v824_v9, %v839_v0 }
 0x306   : > { %v1221_v40 = vsel %vm801_vm8, 0, %v1220_v38  ;;  %v820_v13 = vperm.slane %v814_v11, %v3506_v7  ;;  %v848_v60 = vperm.slane %v840_v12, %v3515_v20  ;;  %v837_v15 = vrot.slane %v824_v9, 4 }
 0x307   : > { %v1236_v18 = vrot.slane %v1235_v16, 4  ;;  %v1239_v29 = vsel %vm801_vm8, %v1235_v16, %v1238_v27  ;;  %v1264_v42 = vshrl.u32 %v1221_v40, 16  ;;  %v827_v54 = vrot.slane %v808_v8, 4 }
 0x308   : > { %v1247_v31 = vperm.slane %v1239_v29, %v3515_v20  ;;  %v838_v52 = vsel %vm801_vm8, %v837_v15, %v812_v3  ;;  %v863_v30 = vpack.c.bf16 %v848_v60, %v848_v60 }
 0x309   : > { %v1237_v21 = vsel %vm801_vm8, %v1236_v18, %v1229_v17  ;;  %v828_v16 = vsel %vm801_vm8, %v820_v13, %v827_v54  ;;  %v855_v18 = vrot.slane %v848_v60, 4 }
 0x30a   : > { %v1243_v22 = vperm.slane %v1237_v21, %v3515_v20  ;;  %v1273_v33 = vshrl.u32 %v1247_v31, 16  ;;  %v1270_v35 = vpack.i.b16 %v1247_v31, %v1219_v32  ;;  %v1250_v45 = vrot.slane %v1247_v31, 4 }
 0x30b   : > { %v836_v17 = vperm.slane %v828_v16, %v3515_v20  ;;  %v844_v21 = vperm.slane %v838_v52, %v3515_v20 }
 0x30c   : > { %v1257_v24 = vshrl.u32 %v1243_v22, 16  ;;  %v1254_v25 = vpack.i.b16 %v1243_v22, %v1215_v19  ;;  %v1274_v36 = vpack.i.b16 %v1273_v33, %v1272_v34  ;;  %v1248_v37 = vrot.slane %v1243_v22, 4 }
 0x30d   : > { %v1251_v47 = vsel %vm801_vm8, 0, %v1250_v45  ;;  %v825_v19 = vrot.slane %v820_v13, 4  ;;  %v853_v27 = vrot.slane %v844_v21, 4 }
 0x30e   : > { %v1258_v26 = vpack.i.b16 %v1257_v24, %v1256_v23  ;;  %v1249_v39 = vsel %vm801_vm8, 0, %v1248_v37  ;;  %v1281_v49 = vshrl.u32 %v1251_v47, 16  ;;  %v1278_v51 = vpack.i.b16 %v1251_v47, %v1223_v48 }
 0x30f   : > { %v1265_v41 = vshrl.u32 %v1249_v39, 16  ;;  %v1262_v43 = vpack.i.b16 %v1249_v39, %v1221_v40  ;;  %v826_v22 = vsel %vm801_vm8, %v825_v19, %v808_v8  ;;  %v851_v23 = vrot.slane %v836_v17, 4 }
 0x310   : > { %2941 = vxpose.binary.xlu1.c.b16.start.end [1/2] (short) (narrow) %v1258_v26, %v1254_v25, 16  ;;  %v1282_v53 = vpack.i.b16 %v1281_v49, %v1280_v50  ;;  %v856_v24 = vsel %vm801_vm8, 0.0, %v855_v18  ;;  %v832_v26 = vperm.slane %v826_v22, %v3515_v20  ;;  %v854_v32 = vsel %vm801_vm8, 0.0, %v853_v27 }
 0x311   : > { %v1266_v44 = vpack.i.b16 %v1265_v41, %v1264_v42  ;;  %v864_v28 = vpack.c.bf16 %v856_v24, %v856_v24  ;;  %v852_v29 = vsel %vm801_vm8, 0.0, %v851_v23  ;;  %v1022_v37 = vrot.slane %v863_v30, 4 }
 0x312   : > { %v849_v31 = vrot.slane %v832_v26, 4  ;;  %v860_v33 = vpack.c.bf16 %v852_v29, %v852_v29  ;;  %v862_v39 = vpack.c.bf16 %v854_v32, %v854_v32  ;;  %v861_v42 = vpack.c.bf16 %v844_v21, %v844_v21 }
 0x313   : > { %v1042_v34 = vrot.slane %v864_v28, 4  ;;  %v857_v48 = vpack.c.bf16 %v832_v26, %v832_v26 }
 0x314   : > { %v850_v41 = vsel %vm801_vm8, 0.0, %v849_v31  ;;  %v1036_v50 = vrot.slane %v862_v39, 4 }
 0x315   : > { %v1043_v45 = vsel %vm801_vm8, %v1042_v34, %v860_v33  ;;  %v858_v49 = vpack.c.bf16 %v850_v41, %v850_v41 }
 0x316   : > { %v1047_v58 = vperm.slane %v1043_v45, %v3506_v7 }
 0x317   : > { %v1037_v3 = vsel %vm801_vm8, %v1036_v50, %v858_v49 }
 0x318   : > { %v1048_v59 = vrot.slane %v1047_v58, 4  ;;  %v1041_v9 = vperm.slane %v1037_v3, %v3506_v7 }
 0x31a   : > { %v1049_v13 = vsel %vm801_vm8, %v1048_v59, %v1041_v9 }
 0x31b   : > { %v1053_v16 = vperm.slane %v1049_v13, %v3515_v20 }
 0x31d   : > { %v1060_v26 = vshrl.u32 %v1053_v16, 16 }
 0x320   : > { %2944 = vxpose.binary.xlu1.c.b16.start.end [1/2] (short) (narrow) %v1274_v36, %v1270_v35, 16  ;;  %v859_v36 = vpack.c.bf16 %v836_v17, %v836_v17 }
 0x322   : > { %v1023_v47 = vsel %vm801_vm8, %v1022_v37, %v859_v36  ;;  %v2960_v36 = vpop.permute.xlu2 %2959 }
 0x323   : > { %v2961_v39 = vunpack.i.l.bf16 %v2960_v36 }
 0x330   : > { %2947 = vxpose.binary.xlu1.c.b16.start.end [1/2] (short) (narrow) %v1266_v44, %v1262_v43, 16 }
 0x340   : > { %2950 = vxpose.binary.xlu1.c.b16.start.end [1/2] (short) (narrow) %v1282_v53, %v1278_v51, 16  ;;  %v1015_v51 = vrot.slane %v861_v42, 4 }
 0x342   : > { %v1017_v4 = vsel %vm801_vm8, %v1015_v51, %v857_v48 }
 0x343   : > { %v1021_v11 = vperm.slane %v1017_v4, %v3506_v7 }
 0x39a   : > { %2954 = vrot.lane.b32.xlu1 %v2953_v55, %s3258_s21  ;;  %s2568_s21 = sshll.u32 %s2565_s1, 4  ;;  %s2569_s21 = int_to_ptr.hbm [resolvable:$true] %s2568_s21 }
 0x3bc   : > { %v2942_v56 = vpop.trf.xlu1 }
 0x3c4   : > { %v3561_v57 = vpop.trf.xlu1 }
 0x3cc   : > { %v2945_v61 = vpop.trf.xlu1 }
 0x3cd   : > { %v1412_v35 = vrot.slane %v2945_v61, 4 }
 0x3cf   : > { %v1413_v43 = vsel %vm801_vm8, %v1412_v35, %v2942_v56  ;;  %v1027_v56 = vperm.slane %v1023_v47, %v3506_v7 }
 0x3d0   : > { %v1417_v53 = vperm.slane %v1413_v43, %v3506_v7 }
 0x3d1   : > { %v1028_v0 = vrot.slane %v1027_v56, 4 }
 0x3d3   : > { %v1029_v60 = vsel %vm801_vm8, %v1028_v0, %v1021_v11 }
 0x3d4   : > { %v2946_v6 = vpop.trf.xlu1  ;;  %v1033_v17 = vperm.slane %v1029_v60, %v3515_v20 }
 0x3d5   : > { %v1432_v61 = vrot.slane %v2946_v6, 4 }
 0x3d6   : > { %v1058_v31 = vpack.i.b16 %v1053_v16, %v1033_v17  ;;  %v1059_v32 = vshrl.u32 %v1033_v17, 16  ;;  %v1034_v42 = vrot.slane %v1033_v17, 4 }
 0x3d7   : > { %v1433_v1 = vsel %vm801_vm8, %v1432_v61, %v3561_v57 }
 0x3d8   : > { %v1437_v54 = vperm.slane %v1433_v1, %v3506_v7  ;;  %v1061_v35 = vpack.i.b16 %v1060_v26, %v1059_v32  ;;  %v1035_v58 = vsel %vm801_vm8, 0, %v1034_v42 }
 0x3d9   : > { %v1065_v1 = vshrl.u32 %v1035_v58, 16 }
 0x3dc   : > { %v2948_v14 = vpop.trf.xlu1 }
 0x3e4   : > { %v2949_v25 = vpop.trf.xlu1 }
 0x3ec   : > { %v2951_v38 = vpop.trf.xlu1 }
 0x3ed   : > { %v1418_v40 = vrot.slane %v2951_v38, 4  ;;  %v2962_v38 = vunpack.i.h.bf16 %v2960_v36 }
 0x3ef   : > { %v1419_v44 = vsel %vm801_vm8, %v1418_v40, %v2948_v14  ;;  %v1054_v40 = vrot.slane %v1053_v16, 4  ;;  %v951_v43 = vrot.slane %v2962_v38, 4 }
 0x3f0   : > { %v1423_v46 = vperm.slane %v1419_v44, %v3506_v7  ;;  %v963_v44 = vrot.slane %v2961_v39, 4 }
 0x3f1   : > { %v1055_v47 = vsel %vm801_vm8, 0, %v1054_v40 }
 0x3f2   : > { %v1424_v55 = vrot.slane %v1423_v46, 4  ;;  %v1064_v59 = vpack.i.b16 %v1055_v47, %v1035_v58 }
 0x3f4   : > { %v2952_v62 = vpop.trf.xlu1  ;;  %v1425_v63 = vsel %vm801_vm8, %v1424_v55, %v1417_v53 }
 0x3f5   : > { %v1438_v2 = vrot.slane %v2952_v62, 4  ;;  %v1429_v8 = vperm.slane %v1425_v63, %v3515_v20  ;;  %v1066_v62 = vshrl.u32 %v1055_v47, 16 }
 0x3f7   : > { %v1439_v5 = vsel %vm801_vm8, %v1438_v2, %v2949_v25  ;;  %v1430_v14 = vrot.slane %v1429_v8, 4  ;;  %v1455_v52 = vshrl.u32 %v1429_v8, 16  ;;  %v1067_v9 = vpack.i.b16 %v1066_v62, %v1065_v1 }
 0x3f8   : > { %v1443_v6 = vperm.slane %v1439_v5, %v3506_v7 }
 0x3f9   : > { %v1431_v21 = vsel %vm801_vm8, 0, %v1430_v14 }
 0x3fa   : > { %v1444_v12 = vrot.slane %v1443_v6, 4  ;;  %v1461_v28 = vshrl.u32 %v1431_v21, 16 }
 0x3fc   : > { %v1445_v57 = vsel %vm801_vm8, %v1444_v12, %v1437_v54 }
 0x3fd   : > { %v1449_v15 = vperm.slane %v1445_v57, %v3515_v20 }
 0x3ff   : > { %v1454_v18 = vpack.i.b16 %v1449_v15, %v1429_v8  ;;  %v1456_v19 = vshrl.u32 %v1449_v15, 16  ;;  %v1450_v22 = vrot.slane %v1449_v15, 4 }
 0x401   : > { %v1470_v23 = vsel %vm1468_vm9, %v1454_v18, 0  ;;  %v1457_v24 = vpack.i.b16 %v1456_v19, %v1455_v52  ;;  %v1451_v25 = vsel %vm801_vm8, 0, %v1450_v22 }
 0x402   : > { %1479 = vmatpush.bf16.msra.mxu2 %v1470_v23  ;;  %v1460_v27 = vpack.i.b16 %v1451_v25, %v1431_v21  ;;  %v1462_v29 = vshrl.u32 %v1451_v25, 16 }
 0x403   : > { %v1489_v30 = vsel %vm1468_vm9, %v1457_v24, 0 }
 0x404   : > { %1498 = vmatpush.bf16.msra.mxu3 %v1489_v30  ;;  %v1508_v33 = vsel %vm1468_vm9, %v1460_v27, 0  ;;  %v1463_v34 = vpack.i.b16 %v1462_v29, %v1461_v28 }
 0x405   : > { %2754 = vmatmul.msk.bf16.vlgmr.msra.gmra.mxu2 %vm1464_vm10, %v1058_v31 }
 0x406   : > { %1517 = vmatpush.bf16.msrb.mxu2 %v1508_v33  ;;  %v1527_v37 = vsel %vm1468_vm9, %v1463_v34, 0 }
 0x407   : > { %2755 = vmatmul.msk.bf16.vlgmr.msra.gmra.mxu3 %vm1464_vm10, %v1061_v35 }
 0x408   : > { %1536 = vmatpush.bf16.msrb.mxu3 %v1527_v37 }
 0x40c   : > { %v2955_v41 = vpop.permute.xlu1 %2954 }
 0x40d   : > { %v2957_v45 = vunpack.i.h.bf16 %v2955_v41  ;;  %v2956_v46 = vunpack.i.l.bf16 %v2955_v41 }
 0x40f   : > { %v952_v48 = vsel %vm801_vm8, %v951_v43, %v2957_v45  ;;  %v953_v49 = vrot.slane %v2957_v45, 4  ;;  %v964_v50 = vsel %vm801_vm8, %v963_v44, %v2956_v46  ;;  %v965_v51 = vrot.slane %v2956_v46, 4 }
 0x410   : > { %v958_v53 = vperm.slane %v952_v48, %v3506_v7  ;;  %v970_v55 = vperm.slane %v964_v50, %v3506_v7 }
 0x411   : > { %v954_v61 = vsel %vm801_vm8, %v2962_v38, %v953_v49  ;;  %v966_v56 = vsel %vm801_vm8, %v2961_v39, %v965_v51 }
 0x412   : > { %v962_v63 = vperm.slane %v954_v61, %v3506_v7  ;;  %v977_v2 = vrot.slane %v958_v53, 4  ;;  %v974_v3 = vperm.slane %v966_v56, %v3506_v7  ;;  %v975_v4 = vrot.slane %v970_v55, 4 }
 0x414   : > { %v989_v5 = vrot.slane %v962_v63, 4  ;;  %v987_v8 = vrot.slane %v974_v3, 4  ;;  %v976_v0 = vsel %vm801_vm8, %v975_v4, %v958_v53  ;;  %v978_v6 = vsel %vm801_vm8, %v970_v55, %v977_v2 }
 0x415   : > { %2756 = vmatmul.msk.bf16.vlgmr.msrb.gmra.mxu2 %vm1464_vm10, %v1064_v59  ;;  %v982_v11 = vperm.slane %v976_v0, %v3515_v20  ;;  %v986_v36 = vperm.slane %v978_v6, %v3515_v20 }
 0x416   : > { %v988_v54 = vsel %vm801_vm8, %v987_v8, %v962_v63  ;;  %v990_v12 = vsel %vm801_vm8, %v974_v3, %v989_v5 }
 0x417   : > { %2757 = vmatmul.msk.bf16.vlgmr.msrb.gmra.mxu3 %vm1464_vm10, %v1067_v9  ;;  %v999_v13 = vrot.slane %v982_v11, 4  ;;  %v994_v60 = vperm.slane %v988_v54, %v3515_v20  ;;  %v1007_v15 = vpack.c.bf16 %v982_v11, %v982_v11  ;;  %v998_v37 = vperm.slane %v990_v12, %v3515_v20 }
 0x418   : > { %v1001_v38 = vrot.slane %v986_v36, 4  ;;  %v1009_v42 = vpack.c.bf16 %v986_v36, %v986_v36 }
 0x419   : > { %v1000_v14 = vsel %vm801_vm8, 0.0, %v999_v13  ;;  %v1003_v57 = vrot.slane %v994_v60, 4  ;;  %v1011_v17 = vpack.c.bf16 %v994_v60, %v994_v60  ;;  %v1005_v39 = vrot.slane %v998_v37, 4 }
 0x41a   : > { %v1008_v16 = vpack.c.bf16 %v1000_v14, %v1000_v14  ;;  %v1002_v40 = vsel %vm801_vm8, 0.0, %v1001_v38  ;;  %v1013_v44 = vpack.c.bf16 %v998_v37, %v998_v37 }
 0x41b   : > { %v1004_v52 = vsel %vm801_vm8, 0.0, %v1003_v57  ;;  %v1006_v41 = vsel %vm801_vm8, 0.0, %v1005_v39  ;;  %v1010_v43 = vpack.c.bf16 %v1002_v40, %v1002_v40 }
 0x41c   : > { %2966 = vxpose.binary.xlu0.c.b16.start.end [1/2] (short) (narrow) %v1008_v16, %v1007_v15, 16  ;;  %v1012_v18 = vpack.c.bf16 %v1004_v52, %v1004_v52  ;;  %v1014_v45 = vpack.c.bf16 %v1006_v41, %v1006_v41 }
 0x41e   : > { %2963 = vxpose.binary.xlu1.c.b16.start.end [1/2] (short) (narrow) %v1012_v18, %v1011_v17, 16 }
 0x488   : > { %v1481_v19 = vpop.f32.mrf.mxu2 }
 0x489   : > { %v1542_v21 = vmul.f32 0.35355338, %v1481_v19 }
 0x48a   : > { %v1500_v22 = vpop.f32.mrf.mxu3 }
 0x48b   : > { %v1543_v23 = vmul.f32 0.35355338, %v1500_v22  ;;  %v1546_v24 = vsel %vm1464_vm10, %v1542_v21, -inf }
 0x48d   : > { %1547 = vmax.xlane.f32.xlu0 %v1546_v24  ;;  %v1549_v25 = vsel %vm1464_vm10, %v1543_v23, -inf }
 0x48e   : > { %1550 = vmax.xlane.f32.xlu2 %v1549_v25 }
 0x490   : > { %v1483_v26 = vpop.f32.mrf.mxu2 }
 0x492   : > { %v1502_v27 = vpop.f32.mrf.mxu3 }
 0x498   : > { %v1519_v28 = vpop.f32.mrf.mxu2 }
 0x499   : > { %v1544_v29 = vmul.f32 0.35355338, %v1519_v28 }
 0x49a   : > { %v1538_v30 = vpop.f32.mrf.mxu3 }
 0x49b   : > { %v1545_v31 = vmul.f32 0.35355338, %v1538_v30  ;;  %v1552_v32 = vsel %vm1464_vm10, %v1544_v29, -inf }
 0x49c   : > { %1553 = vmax.xlane.f32.xlu0 %v1552_v32 }
 0x49d   : > { %v1555_v33 = vsel %vm1464_vm10, %v1545_v31, -inf }
 0x49e   : > { %1556 = vmax.xlane.f32.xlu2 %v1555_v33 }
 0x4a0   : > { %v1521_v34 = vpop.f32.mrf.mxu2 }
 0x4a2   : > { %v1540_v35 = vpop.f32.mrf.mxu3 }
 0x4c5   : > { %2972 = vxpose.binary.xlu0.c.b16.start.end [1/2] (short) (narrow) %v1010_v43, %v1009_v42, 16 }
 0x4c7   : > { %2969 = vxpose.binary.xlu2.c.b16.start.end [1/2] (short) (narrow) %v1014_v45, %v1013_v44, 16 }
 0x4c8   : > { %v2967_v49 = vpop.trf.xlu0 }
 0x4ca   : > { %v2964_v9 = vpop.trf.xlu1 }
 0x4cb   : > { %v1726_v11 = vrot.slane %v2964_v9, 4 }
 0x4cd   : > { %v1727_v12 = vsel %vm801_vm8, %v1726_v11, %v2967_v49 }
 0x4ce   : > { %v1731_v14 = vperm.slane %v1727_v12, %v3506_v7 }
 0x4d0   : > { %v2968_v53 = vpop.trf.xlu0  ;;  %v1740_v52 = vrot.slane %v1731_v14, 4 }
 0x4d2   : > { %v2965_v13 = vpop.trf.xlu1 }
 0x4d3   : > { %v1754_v57 = vrot.slane %v2965_v13, 4 }
 0x4d5   : > { %v1755_v19 = vsel %vm801_vm8, %v1754_v57, %v2968_v53 }
 0x4d6   : > { %v1759_v24 = vperm.slane %v1755_v19, %v3506_v7 }
 0x4d8   : > { %v1768_v30 = vrot.slane %v1759_v24, 4 }
 0x500   : > { %v1548_v56 = vpop.xlane.xlu0 %1547 }
 0x501   : > { %v1551_v46 = vpop.xlane.xlu2 %1550  ;;  %v1558_v3 = vsub.f32 %v1542_v21, %v1548_v56 }
 0x502   : > { %v1559_v47 = vsub.f32 %v1543_v23, %v1551_v46 }
 0x503   : > { %v1562_v59 = vmul.f32 1.442695, %v1558_v3 }
 0x504   : > { %v1564_v48 = vmul.f32 1.442695, %v1559_v47 }
 0x506   : > { %3016 = vpow2.f32 %v1564_v48 }
 0x50c   : > { %v3651_v50 = vpop.eup %3016 }
 0x50d   : > { %v1573_v51 = vsel %vm1464_vm10, %v3651_v50, 0.0 }
 0x50e   : > { %1574 = vadd.xlane.f32.xlu1 %v1573_v51 }
 0x50f   : > { %v1554_v2 = vpop.xlane.xlu0 %1553 }
 0x510   : > { %v1560_v4 = vsub.f32 %v1544_v29, %v1554_v2 }
 0x511   : > { %v1557_v55 = vpop.xlane.xlu2 %1556 }
 0x512   : > { %v1561_v58 = vsub.f32 %v1545_v31, %v1557_v55  ;;  %v1566_v1 = vmul.f32 1.442695, %v1560_v4 }
 0x514   : > { %v1568_v61 = vmul.f32 1.442695, %v1561_v58 }
 0x516   : > { %3018 = vpow2.f32 %v1568_v61 }
 0x517   : > { %3020 = vpow2.f32 %v1562_v59 }
 0x518   : > { %3022 = vpow2.f32 %v1566_v1 }
 0x51c   : > { %v3655_v62 = vpop.eup %3018 }
 0x51d   : > { %v1579_v63 = vsel %vm1464_vm10, %v3655_v62, 0.0  ;;  %v3659_v5 = vpop.eup %3020 }
 0x51e   : > { %1580 = vadd.xlane.f32.xlu1 %v1579_v63  ;;  %v3661_v8 = vpop.eup %3022  ;;  %v1570_v0 = vsel %vm1464_vm10, %v3659_v5, 0.0 }
 0x51f   : > { %v1576_v6 = vsel %vm1464_vm10, %v3661_v8, 0.0 }
 0x536   : > { %1571 = vadd.xlane.f32.xlu0 %v1570_v0 }
 0x538   : > { %1577 = vadd.xlane.f32.xlu2 %v1576_v6 }
 0x568   : > { %v2970_v54 = vpop.trf.xlu2 }
 0x569   : > { %v1732_v60 = vrot.slane %v2970_v54, 4 }
 0x570   : > { %v2971_v18 = vpop.trf.xlu2 }
 0x571   : > { %v2973_v15 = vpop.trf.xlu0  ;;  %v1760_v23 = vrot.slane %v2971_v18, 4 }
 0x572   : > { %v1733_v16 = vsel %vm801_vm8, %v1732_v60, %v2973_v15 }
 0x573   : > { %v1737_v17 = vperm.slane %v1733_v16, %v3506_v7 }
 0x575   : > { %v1738_v21 = vrot.slane %v1737_v17, 4  ;;  %v1741_v22 = vsel %vm801_vm8, %v1737_v17, %v1740_v52 }
 0x576   : > { %v1749_v26 = vperm.slane %v1741_v22, %v3515_v20 }
 0x577   : > { %v1739_v25 = vsel %vm801_vm8, %v1738_v21, %v1731_v14 }
 0x578   : > { %v1745_v27 = vperm.slane %v1739_v25, %v3515_v20  ;;  %v1752_v32 = vrot.slane %v1749_v26, 4  ;;  %v1802_v38 = vshrl.u32 %v1749_v26, 16 }
 0x579   : > { %v2974_v28 = vpop.trf.xlu0 }
 0x57a   : > { %v1761_v29 = vsel %vm801_vm8, %v1760_v23, %v2974_v28  ;;  %v1750_v35 = vrot.slane %v1745_v27, 4  ;;  %v1753_v41 = vsel %vm801_vm8, 0, %v1752_v32  ;;  %v1786_v9 = vshrl.u32 %v1745_v27, 16 }
 0x57b   : > { %v1765_v31 = vperm.slane %v1761_v29, %v3506_v7  ;;  %v1810_v49 = vshrl.u32 %v1753_v41, 16 }
 0x57c   : > { %v1751_v45 = vsel %vm801_vm8, 0, %v1750_v35 }
 0x57d   : > { %v1766_v33 = vrot.slane %v1765_v31, 4  ;;  %v1769_v34 = vsel %vm801_vm8, %v1765_v31, %v1768_v30  ;;  %v1794_v61 = vshrl.u32 %v1751_v45, 16 }
 0x57e   : > { %v1777_v36 = vperm.slane %v1769_v34, %v3515_v20 }
 0x57f   : > { %v1767_v37 = vsel %vm801_vm8, %v1766_v33, %v1759_v24 }
 0x580   : > { %v1773_v39 = vperm.slane %v1767_v37, %v3515_v20  ;;  %v1803_v40 = vshrl.u32 %v1777_v36, 16  ;;  %v1780_v42 = vrot.slane %v1777_v36, 4  ;;  %v1800_v44 = vpack.i.b16 %v1777_v36, %v1749_v26 }
 0x581   : > { %v1575_v43 = vpop.xlane.xlu1 %1574 }
 0x582   : > { %3024 = vrcp.f32 %v1575_v43  ;;  %v1804_v46 = vpack.i.b16 %v1803_v40, %v1802_v38  ;;  %v1781_v47 = vsel %vm801_vm8, 0, %v1780_v42  ;;  %v1778_v48 = vrot.slane %v1773_v39, 4 }
 0x583   : > { %v1811_v51 = vshrl.u32 %v1781_v47, 16  ;;  %v1808_v55 = vpack.i.b16 %v1781_v47, %v1753_v41  ;;  %v1787_v6 = vshrl.u32 %v1773_v39, 16  ;;  %v1784_v11 = vpack.i.b16 %v1773_v39, %v1745_v27 }
 0x584   : > { %2981 = vxpose.binary.xlu0.c.b16.start.end [1/2] (short) (narrow) %v1804_v46, %v1800_v44, 16  ;;  %v1779_v53 = vsel %vm801_vm8, 0, %v1778_v48 }
 0x585   : > { %v1812_v58 = vpack.i.b16 %v1811_v51, %v1810_v49  ;;  %v1795_v56 = vshrl.u32 %v1779_v53, 16  ;;  %v1792_v63 = vpack.i.b16 %v1779_v53, %v1751_v45  ;;  %v1788_v54 = vpack.i.b16 %v1787_v6, %v1786_v9 }
 0x587   : > { %2975 = vxpose.binary.xlu1.c.b16.start.end [1/2] (short) (narrow) %v1812_v58, %v1808_v55, 16  ;;  %v1796_v2 = vpack.i.b16 %v1795_v56, %v1794_v61 }
 0x588   : > { %v3025_v3 = vpop.eup %3024 }
 0x589   : > { %2978 = vxpose.binary.xlu2.c.b16.start.end [1/2] (short) (narrow) %v1796_v2, %v1792_v63, 16  ;;  %v1587_v4 = vmul.f32 %v3025_v3, %v3651_v50 }
 0x58b   : > { %v1595_v59 = vpack.c.bf16 %v1587_v4, %v1587_v4  ;;  %1591 = vst.msk [vmem:[%s3692_s19 + $0x8] sm:$0xff] %vm1464_vm10, %v1587_v4 }
 0x58d   : > { %v2017_v1 = vsel %vm1464_vm10, %v1595_v59, 0 }
 0x58e   : > { %2026 = vmatpush.bf16.xpose.msrb.mxu1 %v2017_v1 }
 0x591   : > { %v1581_v0 = vpop.xlane.xlu1 %1580 }
 0x592   : > { %3026 = vrcp.f32 %v1581_v0 }
 0x598   : > { %v3027_v12 = vpop.eup %3026 }
 0x599   : > { %2984 = vxpose.binary.xlu2.c.b16.start.end [1/2] (short) (narrow) %v1788_v54, %v1784_v11, 16  ;;  %v1589_v50 = vmul.f32 %v3027_v12, %v3655_v62 }
 0x59b   : > { %v1597_v13 = vpack.c.bf16 %v1589_v50, %v1589_v50  ;;  %1593 = vst.msk [vmem:[%s3692_s19 + $0x18] sm:$0xff] %vm1464_vm10, %v1589_v50 }
 0x59d   : > { %v2055_v60 = vsel %vm1464_vm10, %v1597_v13, 0 }
 0x59e   : > { %2064 = vmatpush.bf16.xpose.msra.mxu3 %v2055_v60 }
 0x5a9   : > { %v1572_v14 = vpop.xlane.xlu0 %1571 }
 0x5aa   : > { %3028 = vrcp.f32 %v1572_v14 }
 0x5ab   : > { %v1578_v57 = vpop.xlane.xlu2 %1577 }
 0x5ac   : > { %3030 = vrcp.f32 %v1578_v57 }
 0x5b0   : > { %v3029_v15 = vpop.eup %3028 }
 0x5b1   : > { %v1586_v16 = vmul.f32 %v3029_v15, %v3659_v5 }
 0x5b2   : > { %v3031_v52 = vpop.eup %3030 }
 0x5b3   : > { %v1594_v17 = vpack.c.bf16 %v1586_v16, %v1586_v16  ;;  %v1588_v18 = vmul.f32 %v3031_v52, %v3661_v8  ;;  %1590 = vst.msk [vmem:[%s3692_s19] sm:$0xff] %vm1464_vm10, %v1586_v16 }
 0x5b5   : > { %v1998_v62 = vsel %vm1464_vm10, %v1594_v17, 0  ;;  %v1596_v19 = vpack.c.bf16 %v1588_v18, %v1588_v18  ;;  %1592 = vst.msk [vmem:[%s3692_s19 + $0x10] sm:$0xff] %vm1464_vm10, %v1588_v18  ;;  %s3147_s19 = scalar_lea.hbm %s3924_s18, 64 }
 0x5b6   : > { %2007 = vmatpush.bf16.xpose.msrb.mxu0 %v1998_v62 }
 0x5b7   : > { %v2036_v21 = vsel %vm1464_vm10, %v1596_v19, 0 }
 0x5b8   : > { %2045 = vmatpush.bf16.xpose.msra.mxu2 %v2036_v21 }
 0x62a   : > { %v2979_v22 = vpop.trf.xlu2 }
 0x630   : > { %v2982_v24 = vpop.trf.xlu0 }
 0x631   : > { %v1942_v27 = vrot.slane %v2982_v24, 4 }
 0x632   : > { %v2980_v23 = vpop.trf.xlu2 }
 0x633   : > { %v2976_v25 = vpop.trf.xlu1 }
 0x634   : > { %v1948_v5 = vrot.slane %v2976_v25, 4 }
 0x636   : > { %v1949_v26 = vsel %vm801_vm8, %v1948_v5, %v2979_v22 }
 0x637   : > { %v1953_v8 = vperm.slane %v1949_v26, %v3506_v7 }
 0x638   : > { %v2983_v34 = vpop.trf.xlu0 }
 0x639   : > { %v1954_v31 = vrot.slane %v1953_v8, 4  ;;  %v1962_v37 = vrot.slane %v2983_v34, 4 }
 0x63a   : > { %v2985_v28 = vpop.trf.xlu2 }
 0x63b   : > { %v1943_v29 = vsel %vm801_vm8, %v1942_v27, %v2985_v28  ;;  %v2977_v30 = vpop.trf.xlu1 }
 0x63c   : > { %v1947_v32 = vperm.slane %v1943_v29, %v3506_v7  ;;  %v1968_v33 = vrot.slane %v2977_v30, 4 }
 0x63e   : > { %v1955_v35 = vsel %vm801_vm8, %v1954_v31, %v1947_v32  ;;  %v1969_v36 = vsel %vm801_vm8, %v1968_v33, %v2980_v23 }
 0x63f   : > { %v1973_v38 = vperm.slane %v1969_v36, %v3506_v7  ;;  %v1959_v39 = vperm.slane %v1955_v35, %v3515_v20 }
 0x641   : > { %v1974_v42 = vrot.slane %v1973_v38, 4  ;;  %v1960_v44 = vrot.slane %v1959_v39, 4  ;;  %v1985_v47 = vshrl.u32 %v1959_v39, 16 }
 0x642   : > { %v2986_v40 = vpop.trf.xlu2 }
 0x643   : > { %v1963_v41 = vsel %vm801_vm8, %v1962_v37, %v2986_v40  ;;  %v1961_v53 = vsel %vm801_vm8, 0, %v1960_v44 }
 0x644   : > { %v1967_v43 = vperm.slane %v1963_v41, %v3506_v7  ;;  %v1991_v56 = vshrl.u32 %v1961_v53, 16 }
 0x646   : > { %v1975_v45 = vsel %vm801_vm8, %v1974_v42, %v1967_v43 }
 0x647   : > { %v1979_v46 = vperm.slane %v1975_v45, %v3515_v20 }
 0x649   : > { %v1980_v48 = vrot.slane %v1979_v46, 4  ;;  %v1984_v49 = vpack.i.b16 %v1979_v46, %v1959_v39  ;;  %v1986_v51 = vshrl.u32 %v1979_v46, 16 }
 0x64b   : > { %2758 = vmatmul.msk.bf16.vlgmr.msrb.gmra.mxu0 %vm1464_vm10, %v1984_v49  ;;  %v1987_v55 = vpack.i.b16 %v1986_v51, %v1985_v47  ;;  %v1981_v58 = vsel %vm801_vm8, 0, %v1980_v48 }
 0x64c   : > { %v1990_v61 = vpack.i.b16 %v1981_v58, %v1961_v53  ;;  %v1992_v63 = vshrl.u32 %v1981_v58, 16 }
 0x64d   : > { %2759 = vmatmul.msk.bf16.vlgmr.msrb.gmra.mxu1 %vm1464_vm10, %v1987_v55 }
 0x64e   : > { %2760 = vmatmul.msk.bf16.vlgmr.msra.gmra.mxu2 %vm1464_vm10, %v1990_v61  ;;  %v1993_v2 = vpack.i.b16 %v1992_v63, %v1991_v56 }
 0x650   : > { %2761 = vmatmul.msk.bf16.vlgmr.msra.gmra.mxu3 %vm1464_vm10, %v1993_v2 }
 0x6c8   : > { %v2009_v3 = vpop.f32.mrf.mxu0 }
 0x6ca   : > { %v2028_v4 = vpop.f32.mrf.mxu1 }
 0x6d0   : > { %v2011_v59 = vpop.f32.mrf.mxu0 }
 0x6d1   : > { %v2047_v1 = vpop.f32.mrf.mxu2 }
 0x6d2   : > { %v2987_v0 = vpack.i.bf16 %v2009_v3, %v2047_v1  ;;  %v2030_v6 = vpop.f32.mrf.mxu1 }
 0x6d3   : > { %v2066_v9 = vpop.f32.mrf.mxu3 }
 0x6d4   : > { %v2994_v11 = vpack.i.bf16 %v2028_v4, %v2066_v9  ;;  %2988 = vxpose.xlu0.b32.start.end [1/1] (short) (narrow) %v2987_v0, 8 }
 0x6d6   : > { %2995 = vxpose.xlu1.b32.start.end [1/1] (short) (narrow) %v2994_v11, 8 }
 0x6d9   : > { %v2049_v54 = vpop.f32.mrf.mxu2 }
 0x6db   : > { %v2068_v12 = vpop.f32.mrf.mxu3 }
 0x778   : > { %v2989_v50 = vpop.trf.xlu0 }
 0x779   : > { %v2993_v13 = vunpack.i.h.bf16 %v2989_v50  ;;  %v2990_v60 = vunpack.i.l.bf16 %v2989_v50 }
 0x77a   : > { %v2996_v14 = vpop.trf.xlu1 }
 0x77b   : > { %v2200_v57 = vrot.slane %v2993_v13, 4  ;;  %v2198_v15 = vrot.slane %v2990_v60, 4  ;;  %v3000_v16 = vunpack.i.h.bf16 %v2996_v14  ;;  %v2997_v52 = vunpack.i.l.bf16 %v2996_v14 }
 0x77d   : > { %v2199_v17 = vsel %vm801_vm8, %v2198_v15, %v2993_v13  ;;  %v2201_v18 = vsel %vm801_vm8, %v2990_v60, %v2200_v57  ;;  %v2212_v62 = vrot.slane %v3000_v16, 4  ;;  %v2210_v22 = vrot.slane %v2997_v52, 4 }
 0x77e   : > { %v2205_v19 = vperm.slane %v2199_v17, %v3506_v7  ;;  %v2209_v21 = vperm.slane %v2201_v18, %v3506_v7 }
 0x77f   : > { %v2213_v23 = vsel %vm801_vm8, %v2997_v52, %v2212_v62  ;;  %v2211_v5 = vsel %vm801_vm8, %v2210_v22, %v3000_v16  ;;  %v2810_v16 = vld [vmem:[#allocation5 + $0x8] sm:$0xff] }
 0x780   : > { %v2224_v24 = vrot.slane %v2205_v19, 4  ;;  %v2236_v25 = vrot.slane %v2209_v21, 4  ;;  %v2221_v26 = vperm.slane %v2213_v23, %v3506_v7  ;;  %v2217_v27 = vperm.slane %v2211_v5, %v3506_v7  ;;  %2355 = vmatpush.bf16.msra.mxu0 %v2810_v16  ;;  %v3005_v23 = vld [vmem:[%s3875_s11] ss:$0 sm:$0xff] }
 0x781   : > { %v3036_v5 = vld [vmem:[%s3457_s22] sm:$0xff] }
 0x782   : > { %v2234_v8 = vrot.slane %v2221_v26, 4  ;;  %v2237_v28 = vsel %vm801_vm8, %v2221_v26, %v2236_v25  ;;  %v2222_v29 = vrot.slane %v2217_v27, 4  ;;  %v2225_v30 = vsel %vm801_vm8, %v2217_v27, %v2224_v24 }
 0x783   : > { %v2245_v31 = vperm.slane %v2237_v28, %v3515_v20  ;;  %v2233_v32 = vperm.slane %v2225_v30, %v3515_v20 }
 0x784   : > { %v2235_v33 = vsel %vm801_vm8, %v2234_v8, %v2209_v21  ;;  %v2223_v34 = vsel %vm801_vm8, %v2222_v29, %v2205_v19 }
 0x785   : > { %v2241_v35 = vperm.slane %v2235_v33, %v3515_v20  ;;  %v2252_v36 = vrot.slane %v2245_v31, 4  ;;  %v2229_v37 = vperm.slane %v2223_v34, %v3515_v20  ;;  %v2248_v38 = vrot.slane %v2233_v32, 4  ;;  %v2812_v33 = vld [vmem:[#allocation7 + $0x8] sm:$0xff]  ;;  %v2811_v34 = vld [vmem:[#allocation7] sm:$0xff] }
 0x786   : > { %2425 = vmatpush.bf16.msra.mxu1 %v2812_v33 }
 0x787   : > { %v2250_v39 = vrot.slane %v2241_v35, 4  ;;  %v2253_v40 = vsel %vm801_vm8, 0.0, %v2252_v36  ;;  %v2265_v41 = vsel %vm801_vm8, %v2252_v36, %v2241_v35  ;;  %v2249_v42 = vsel %vm801_vm8, 0.0, %v2248_v38 }
 0x788   : > { %v2246_v43 = vrot.slane %v2229_v37, 4  ;;  %v2254_v44 = vsel %vm801_vm8, %v2248_v38, %v2229_v37  ;;  %v2269_v45 = vperm.slane %v2265_v41, %v3506_v7  ;;  %v2259_v48 = vrot.slane %v2249_v42, 4 }
 0x789   : > { %v2251_v46 = vsel %vm801_vm8, 0.0, %v2250_v39  ;;  %v2258_v47 = vperm.slane %v2254_v44, %v3506_v7  ;;  %v2270_v49 = vrot.slane %v2253_v40, 4  ;;  %v3006_v44 = vld [vmem:[%s3921_s4] ss:$0 sm:$0xff] }
 0x78a   : > { %v2247_v51 = vsel %vm801_vm8, 0.0, %v2246_v43  ;;  %v2290_v53 = vrot.slane %v2269_v45, 4  ;;  %2426 = vmatpush.bf16.msra.mxu1 %v2811_v34 }
 0x78b   : > { %v2260_v55 = vsel %vm801_vm8, %v2259_v48, %v2247_v51  ;;  %v2271_v58 = vsel %vm801_vm8, %v2270_v49, %v2251_v46  ;;  %v2278_v61 = vrot.slane %v2258_v47, 4  ;;  %v3008_v51 = vld [vmem:[%s3877_s13] ss:$0 sm:$0xff] }
 0x78c   : > { %v2264_v56 = vperm.slane %v2260_v55, %v3506_v7  ;;  %v2275_v63 = vperm.slane %v2271_v58, %v3506_v7 }
 0x78e   : > { %v2279_v2 = vsel %vm801_vm8, %v2264_v56, %v2278_v61  ;;  %v2291_v3 = vsel %vm801_vm8, %v2275_v63, %v2290_v53  ;;  %v2276_v4 = vrot.slane %v2264_v56, 4  ;;  %v2288_v59 = vrot.slane %v2275_v63, 4 }
 0x78f   : > { %v2287_v1 = vperm.slane %v2279_v2, %v3515_v20  ;;  %v2299_v0 = vperm.slane %v2291_v3, %v3515_v20 }
 0x790   : > { %v2277_v6 = vsel %vm801_vm8, %v2276_v4, %v2258_v47  ;;  %v2289_v9 = vsel %vm801_vm8, %v2288_v59, %v2269_v45 }
 0x791   : > { %v2306_v11 = vrot.slane %v2287_v1, 4  ;;  %v2304_v54 = vrot.slane %v2299_v0, 4  ;;  %v2283_v12 = vperm.slane %v2277_v6, %v3515_v20  ;;  %v2295_v7 = vperm.slane %v2289_v9, %v3515_v20  ;;  %v2809_v20 = vld [vmem:[#allocation5] sm:$0xff] }
 0x792   : > { %2356 = vmatpush.bf16.msra.mxu0 %v2809_v20 }
 0x793   : > { %v2307_v50 = vsel %vm801_vm8, %v2299_v0, %v2306_v11  ;;  %v2305_v13 = vsel %vm801_vm8, %v2304_v54, %v2287_v1  ;;  %v2300_v60 = vrot.slane %v2295_v7, 4  ;;  %v2302_v14 = vrot.slane %v2283_v12, 4  ;;  %v2816_v1 = vld [vmem:[%s3878_s14 + $0x18] sm:$0xff]  ;;  %v2815_v11 = vld [vmem:[%s3878_s14 + $0x10] sm:$0xff] }
 0x794   : > { %2317 = vrot.lane.b32.xlu1 %v2307_v50, %s3259_s0  ;;  %2313 = vrot.lane.b32.xlu0 %v2305_v13, %s3260_s30  ;;  %v2814_v50 = vld [vmem:[%s3878_s14 + $0x8] sm:$0xff]  ;;  %s3141_s0 = sshra.s32 %s2569_s21, 4  ;;  %s3142_s0 = int_to_ptr.hbm [resolvable:$true] %s3141_s0 }
 0x795   : > { %v2303_v57 = vsel %vm801_vm8, %v2295_v7, %v2302_v14  ;;  %v2301_v15 = vsel %vm801_vm8, %v2300_v60, %v2283_v12  ;;  %2521 = vmatpush.bf16.msrb.mxu2 %v2816_v1  ;;  %v2813_v14 = vld [vmem:[%s3878_s14] sm:$0xff]  ;;  %s3143_s30 = scalar_lea.hbm %s3142_s0, 32  ;;  %p3148_p5 = scmp.lt.s32.totalorder %s3142_s0, %s3924_s18 }
 0x796   : > { %2309 = vrot.lane.b32.xlu2 %v2303_v57, %s3893_s20  ;;  %p3144_p1 = scmp.ne.s32.totalorder %s3142_s0, %s3143_s30  ;;  %p3149_p6 = scmp.lt.s32.totalorder %s3147_s19, %s3143_s30 }
 0x798   : > { %p3145_p2 = pnand %p3144_p1, %p3393_p4  ;;  %p3150_p7 = por %p3149_p6, %p3148_p5 }
 0x799   : > { %2522 = vmatpush.bf16.msrb.mxu2 %v2815_v11 }
 0x79a   : > { %p3146_p3 = pneg %p3145_p2 }
 0x79c   : > { %p3151_p9 = pnand %p3150_p7, %p3146_p3 }
 0x79d   : > { %2523 = vmatpush.bf16.msrb.mxu2 %v2814_v50 }
 0x7a1   : > { %2524 = vmatpush.bf16.msrb.mxu2 %v2813_v14 }
 0x7f0   : > { %v2310_v52 = vpop.permute.xlu2 %2309 }
 0x7f1   : > { %v2320_v17 = vsel %vm1464_vm10, %v2301_v15, %v2310_v52 }
 0x806   : > { %v2318_v18 = vpop.permute.xlu1 %2317  ;;  %v2314_v62 = vpop.permute.xlu0 %2313 }
 0x807   : > { %v2322_v19 = vsel %vm2321_vm11, %v2320_v17, %v2314_v62 }
 0x808   : > { %v2324_v21 = vsel %vm2323_vm12, %v2322_v19, %v2318_v18 }
 0x809   : > { %v2325_v22 = vpack.c.bf16 %v2324_v21, %v2324_v21 }
 0x80b   : > { %2770 = vmatmul.msk.bf16.vlgmr.msra.gmra.mxu0 %vm652_vm0, %v2325_v22 }
 0x888   : > { %v2358_v24 = vpop.f32.mrf.mxu0 }
 0x889   : > { %v2359_v25 = vadd.f32 %v3005_v23, %v2358_v24 }
 0x88b   : > { %v3774_v26 = vadd.f32 %v3036_v5, %v2359_v25 }
 0x88d   : > { %v2363_v27 = vsel %vm652_vm0, %v3774_v26, 0.0 }
 0x88e   : > { %2364 = vadd.xlane.f32.xlu2 %v2363_v27 }
 0x890   : > { %v2360_v8 = vpop.f32.mrf.mxu0 }
 0x901   : > { %v2365_v28 = vpop.xlane.xlu2 %2364 }
 0x902   : > { %v2366_v29 = vmul.f32 %v2365_v28, %v3462_v10 }
 0x904   : > { %v2367_v30 = vsub.f32 %v3774_v26, %v2366_v29 }
 0x906   : > { %v2368_v31 = vmul.f32 %v2367_v30, %v2367_v30 }
 0x908   : > { %v2369_v32 = vsel %vm652_vm0, %v2368_v31, 0.0 }
 0x909   : > { %2370 = vadd.xlane.f32.xlu1 %v2369_v32 }
 0x97c   : > { %v2371_v35 = vpop.xlane.xlu1 %2370 }
 0x97d   : > { %v2372_v36 = vmul.f32 %v2371_v35, %v3462_v10  ;;  %v3007_v10 = vld [vmem:[%s3869_s5] ss:$0 sm:$0xff] }
 0x97f   : > { %v2373_v37 = vadd.f32 1e-06, %v2372_v36 }
 0x981   : > { %3032 = vrsqrt.f32 %v2373_v37  ;;  %vm2380_vm14 = vweird.f32 %v2373_v37 }
 0x987   : > { %v3033_v38 = vpop.eup %3032 }
 0x988   : > { %v2375_v39 = vmul.f32 %v3033_v38, %v2373_v37  ;;  %vm2381_vm13 = vweird.f32 %v3033_v38 }
 0x989   : > { %vm2382_vm15 = vmor %vm2380_vm14, %vm2381_vm13 }
 0x98a   : > { %v2376_v40 = vmul.f32 %v3033_v38, %v2375_v39 }
 0x98c   : > { %v2377_v41 = vmul.f32 0.5, %v2376_v40 }
 0x98e   : > { %v2378_v42 = vsub.f32 1.5, %v2377_v41 }
 0x990   : > { %v2379_v43 = vmul.f32 %v3033_v38, %v2378_v42 }
 0x992   : > { %v2383_v45 = vsel %vm2382_vm15, %v3033_v38, %v2379_v43 }
 0x993   : > { %v2384_v46 = vmul.f32 %v2383_v45, %v2367_v30 }
 0x995   : > { %v2389_v47 = vmul.f32 %v3006_v44, %v2384_v46 }
 0x997   : > { %v2394_v48 = vadd.f32 %v3007_v10, %v2389_v47 }
 0x999   : > { %v2395_v49 = vpack.c.bf16 %v2394_v48, %v2394_v48 }
 0x99b   : > { %2779 = vmatmul.msk.bf16.vlgmr.msra.gmra.mxu1 %vm652_vm0, %v2395_v49 }
 0xa18   : > { %v2428_v53 = vpop.f32.mrf.mxu1 }
 0xa19   : > { %v2429_v55 = vadd.f32 %v3008_v51, %v2428_v53 }
 0xa1b   : > { %v2433_v58 = vmul.f32 0.70710677, %v2429_v55  ;;  %v2432_v32 = vmul.f32 0.5, %v2429_v55 }
 0xa1d   : > { %v2434_v61 = vmul.f32 %v2433_v58, %v2433_v58 }
 0xa1f   : > { %v2435_v56 = vmin.f32 %v2434_v61, 16.0 }
 0xa20   : > { %v2430_v63 = vpop.f32.mrf.mxu1 }
 0xa21   : > { %v2436_v2 = vmul.f32 2.1237322e-06, %v2435_v56  ;;  %v2447_v3 = vmul.f32 3.8918573e-05, %v2435_v56 }
 0xa23   : > { %v2437_v4 = vadd.f32 0.00028619796, %v2436_v2  ;;  %v2448_v59 = vadd.f32 0.001143296, %v2447_v3 }
 0xa25   : > { %v2438_v0 = vmul.f32 %v2437_v4, %v2435_v56  ;;  %v2449_v6 = vmul.f32 %v2448_v59, %v2435_v56 }
 0xa27   : > { %v2450_v9 = vadd.f32 0.014752088, %v2449_v6  ;;  %v2439_v54 = vadd.f32 0.0036580483, %v2438_v0 }
 0xa29   : > { %v2451_v12 = vmul.f32 %v2450_v9, %v2435_v56  ;;  %v2440_v13 = vmul.f32 %v2439_v54, %v2435_v56 }
 0xa2b   : > { %v2452_v7 = vadd.f32 0.112945676, %v2451_v12  ;;  %v2441_v15 = vadd.f32 0.05243302, %v2440_v13 }
 0xa2d   : > { %v2453_v60 = vmul.f32 %v2452_v7, %v2435_v56  ;;  %v2442_v52 = vmul.f32 %v2441_v15, %v2435_v56 }
 0xa2f   : > { %v2454_v57 = vadd.f32 0.4994258, %v2453_v60  ;;  %v2443_v17 = vadd.f32 0.18741608, %v2442_v52 }
 0xa31   : > { %v2455_v16 = vmul.f32 %v2454_v57, %v2435_v56  ;;  %v2444_v62 = vmul.f32 %v2443_v17, %v2435_v56 }
 0xa33   : > { %v2456_v20 = vadd.f32 1.0, %v2455_v16  ;;  %v2445_v23 = vadd.f32 1.1283791, %v2444_v62 }
 0xa35   : > { %3034 = vrcp.f32 %v2456_v20  ;;  %v2468_v22 = vand.u32 2147483648, %v2456_v20  ;;  %v2466_v25 = vand.u32 2147483647, %v2456_v20  ;;  %vm2462_vm2 = vweird.f32 %v2456_v20 }
 0xa36   : > { %v2446_v8 = vmul.f32 %v2445_v23, %v2433_v58 }
 0xa37   : > { %v2469_v27 = vor.u32 1.1754944e-38, %v2468_v22  ;;  %vm2467_vm4 = vcmp.eq.f32.partialorder %v2466_v25, 8.507059e+37 }
 0xa3b   : > { %v3035_v18 = vpop.eup %3034 }
 0xa3c   : > { %v2458_v19 = vmul.f32 %v3035_v18, %v2456_v20  ;;  %vm2463_vm1 = vweird.f32 %v3035_v18 }
 0xa3d   : > { %vm2464_vm3 = vmor %vm2462_vm2, %vm2463_vm1 }
 0xa3e   : > { %v2459_v21 = vsub.f32 1.0, %v2458_v19 }
 0xa40   : > { %v2460_v24 = vmul.f32 %v3035_v18, %v2459_v21 }
 0xa42   : > { %v2461_v5 = vadd.f32 %v3035_v18, %v2460_v24 }
 0xa44   : > { %v2465_v28 = vsel %vm2464_vm3, %v3035_v18, %v2461_v5 }
 0xa45   : > { %v2470_v29 = vsel %vm2467_vm4, %v2469_v27, %v2465_v28 }
 0xa46   : > { %v2471_v30 = vmul.f32 %v2470_v29, %v2446_v8 }
 0xa48   : > { %v2780_v31 = vclamps-f32 %v2471_v30, 1.0 }
 0xa4a   : > { %v2474_v33 = vadd.f32 1.0, %v2780_v31 }
 0xa4c   : > { %v2475_v34 = vmul.f32 %v2474_v33, %v2432_v32 }
 0xa4e   : > { %v2476_v35 = vpack.c.bf16 %v2475_v34, %v2475_v34 }
 0xa50   : > { %2797 = vmatmul.msk.bf16.vlgmr.msrb.gmra.mxu2 %vm2513_vm5, %v2476_v35 }
 0xa51   : > { %3154 = shalt.err (!%p3151_p9)
}
 0xa52   : > { %s3262_s16 = smov 128   ;;  %s3925_s17 = smov 8  }
 0xa53   : > { %2831 = dma.vmem_to_hbm [thread:$0]  (%p3393_p4), %s2567_s15, 512, %s2569_s21, %s2538_s23, %s3262_s16, %s3262_s16, %s3925_s17  }
 0xa54   : > { %s2732_s26 = sshll.u32 %s3687_s24, 3  ;;  %s2800_s29 = sshll.u32 %s3237_s27, 3 }
 0xa55   : > { %s3926_s10 = sld [smem:[#allocation29_spill]]  ;;  %s630_s19 = scalar_lea.vmem [#allocation8], %s2732_s26 }
 0xa56   : > { %s3927_s0 = sld [smem:[#allocation30_spill]]  ;;  %s2551_s3 = sshll.u32 %s630_s19, 4  ;;  %s2552_s3 = int_to_ptr.vmem [resolvable:$true] %s2551_s3 }
 0xa57   : > { %s2533_s27 = scalar_lea.sflag [#allocation4], %s3687_s24 }
 0xa5b   : > { %v3009_v36 = vld [vmem:[%s3926_s10] ss:$0 sm:$0xff] }
 0xa5c   : > { %s2549_s30 = scalar_lea.hbm %s3927_s0, %s2800_s29  ;;  %s3175_s17 = scalar_lea.hbm %s3927_s0, 16 }
 0xa5d   : > { %s2553_s4 = sshll.u32 %s2549_s30, 4  ;;  %s2554_s4 = int_to_ptr.hbm [resolvable:$true] %s2553_s4 }
 0xa5e   : > { %s3169_s15 = sshra.s32 %s2554_s4, 4  ;;  %s3170_s15 = int_to_ptr.hbm [resolvable:$true] %s3169_s15 }
 0xa5f   : > { %s3171_s21 = scalar_lea.hbm %s3170_s15, 8  ;;  %p3176_p13 = scmp.lt.s32.totalorder %s3170_s15, %s3927_s0 }
 0xa60   : > { %p3172_p10 = scmp.ne.s32.totalorder %s3170_s15, %s3171_s21  ;;  %p3177_p0 = scmp.lt.s32.totalorder %s3175_s17, %s3171_s21 }
 0xa62   : > { %p3173_p11 = pnand %p3172_p10, %p3393_p4  ;;  %p3178_p1 = por %p3177_p0, %p3176_p13 }
 0xa64   : > { %p3174_p12 = pneg %p3173_p11 }
 0xa66   : > { %p3179_p2 = pnand %p3178_p1, %p3174_p12 }
 0xad3   : > { %v2526_v37 = vpop.f32.mrf.mxu2 }
 0xad4   : > { %v2527_v38 = vadd.f32 %v3009_v36, %v2526_v37 }
 0xad6   : > { %v2530_v39 = vadd.f32 %v2527_v38, %v3774_v26 }
 0xad8   : > { %2531 = vst.msk [vmem:[%s630_s19] sm:$0xff] %vm652_vm0, %v2530_v39 }
 0xad9   : > { %3182 = shalt.err (!%p3179_p2)
}
 0xada   : > { %2830 = dma.vmem_to_hbm [thread:$0]  (%p3393_p4), %s2552_s3, 128, %s2554_s4, %s2533_s27  }
 0xadb   : > { %v2528_v26 = vpop.f32.mrf.mxu2 }
 0xadc PF: > { %s3928_s24 = sld [smem:[#allocation18_spill]] }
 0xadd   : > { %s3929_s1 = sld [smem:[#allocation15_spill]] }
 0xae2   : > { %p2857_p3 = scmp.ge.s32.totalorder %s3928_s24, 2 }
 0xae3   : > { %s2583_s10 = sand.u32 1, %s3929_s1  }
 0xae4   : > { %p2845_p5 = pnand %p2857_p3, %p3400_p8  ;;  %s2584_s2 = scalar_lea.sflag [#allocation4], %s2583_s10 }
 0xae6   : > { %p2846_p6 = pneg %p2845_p5 }
 0xae8   : > { %3216 = dma.done.wait (%p2846_p6), %s2584_s2, 128  }
 0xae9   : > { %3218 = vsyncadd (%p2846_p6), %s2584_s2, 4294967168  ;;  %s2594_s20 = scalar_lea.sflag [#allocation10], %s2583_s10 }
 0xaea   : > { %3220 = dma.done.wait (%p2846_p6), %s2594_s20, 512  }
 0xaeb   : > { %3222 = vsyncadd (%p2846_p6), %s2594_s20, 4294966784  ;;  %s36_s29 = sadd.s32 1, %s3928_s24   ;;  %s3931_s3 = sld [smem:[#allocation16_spill]] }
 0xaec   : > { %p33_p7 = scmp.ge.s32.totalorder %s36_s29, 4   ;;  %s3932_s26 = sld [smem:[#allocation22_spill]] }
 0xaed   : > { %s3933_s27 = sld [smem:[#allocation17_spill]]  ;;  %s3935_s24 = smov %s3229_s25 }
 0xaee   : > { %s3934_s28 = sld [smem:[#allocation19_spill]]  ;;  %35 = sbr.rel (!%p33_p7) target bundleno = 18 (0x12), region = 152 }
 0xaf1   : > { %s3936_s25 = smov %s3931_s3 }
 0xaf3   :  { %2600 = vsyncpa [#allocation3], 1 }
 0xaf4   :  { %2602 = vsyncpa [#allocation3 + $0x1], 1 }
 0xaf5   :  { %2603 = vsyncpa [#allocation6], 1 }
 0xaf6   :  { %2604 = vsyncpa [#allocation4], 1 }
 0xaf7   :  { %2606 = vsyncpa [#allocation4 + $0x1], 1 }
 0xaf8   :  { %2607 = vsyncpa [#allocation10], 1 }
 0xaf9   :  { %2609 = vsyncpa [#allocation10 + $0x1], 1 }

// kernel: tpu_custom_call.1
= control target key start
LH: loop header
LB: loop body
LE: loop exit
PB: predicated region body
PF: predicated region fallthrough
CT: control target
= control target key end

     0   :  { %s3864_s0 = inlined_call_operand.vmem [shape: f32[2,8,32], index: 0, kind: input, shape index: {}]   ;;  %s3865_s1 = inlined_call_operand.vmem [shape: f32[2,8,32], index: 1, kind: input, shape index: {}]   ;;  %s3866_s2 = inlined_call_operand.vmem [shape: f32[1,32], index: 2, kind: input, shape index: {}]   ;;  %s3867_s3 = inlined_call_operand.vmem [shape: f32[1,32], index: 3, kind: input, shape index: {}]   ;;  %s3868_s4 = inlined_call_operand.vmem [shape: f32[1,32], index: 4, kind: input, shape index: {}]   ;;  %s3869_s5 = inlined_call_operand.vmem [shape: f32[1,32], index: 5, kind: input, shape index: {}]   ;;  %s3870_s6 = inlined_call_operand.vmem [shape: bf16[32,32], index: 6, kind: input, shape index: {}]   ;;  %s3871_s7 = inlined_call_operand.vmem [shape: f32[1,32], index: 7, kind: input, shape index: {}]   ;;  %s3872_s8 = inlined_call_operand.hbm [shape: bf16[32,64], index: 8, kind: input, shape index: {}]   ;;  %s3873_s9 = inlined_call_operand.vmem [shape: f32[1,64], index: 9, kind: input, shape index: {}]   ;;  %s3874_s10 = inlined_call_operand.hbm [shape: bf16[32,32], index: 10, kind: input, shape index: {}]   ;;  %s3875_s11 = inlined_call_operand.vmem [shape: f32[1,32], index: 11, kind: input, shape index: {}]   ;;  %s3876_s12 = inlined_call_operand.hbm [shape: bf16[32,64], index: 12, kind: input, shape index: {}]   ;;  %s3877_s13 = inlined_call_operand.vmem [shape: f32[1,64], index: 13, kind: input, shape index: {}]   ;;  %s3878_s14 = inlined_call_operand.vmem [shape: bf16[64,32], index: 14, kind: input, shape index: {}]   ;;  %s3879_s15 = inlined_call_operand.vmem [shape: f32[1,32], index: 15, kind: input, shape index: {}]   ;;  %s3880_s16 = inlined_call_operand.hbm [shape: f32[2,8,32], index: 16, kind: output, shape index: {0}]   ;;  %s3881_s17 = inlined_call_operand.hbm [shape: f32[2,4,8,8], index: 17, kind: output, shape index: {1}]  }
   0x1   :  { %3894 = sst [smem:[#allocation23_spill]] %s3864_s0 }
   0x2   :  { %3895 = sst [smem:[#allocation24_spill]] %s3865_s1 }
   0x3   :  { %3896 = sst [smem:[#allocation25_spill]] %s3866_s2 }
   0x4   :  { %3897 = sst [smem:[#allocation26_spill]] %s3867_s3 }
   0x5   :  { %3898 = sst [smem:[#allocation27_spill]] %s3868_s4 }
   0x6   :  { %3899 = sst [smem:[#allocation28_spill]] %s3874_s10 }
   0x7   :  { %3900 = sst [smem:[#allocation29_spill]] %s3879_s15 }
   0x8   :  { %3901 = sst [smem:[#allocation30_spill]] %s3880_s16 }
   0x9   :  { %3902 = sst [smem:[#allocation31_spill]] %s3881_s17 }
   0xa   :  { %23 = vsyncpa [#allocation3], 0 }
   0xb   :  { %24 = vsyncpa [#allocation6], 0 }
   0xc   :  { %25 = vsyncpa [#allocation4], 0 }
   0xd   :  { %27 = vsyncpa [#allocation4 + $0x1], 0 }
   0xe   :  { %28 = vsyncpa [#allocation10], 0 }
   0xf   :  { %30 = vsyncpa [#allocation10 + $0x1], 0  ;;  %s3353_s24 = smov 0   ;;  %s3355_s25 = smov 0  }
  0x10   :  { %s3357_s26 = smov 0   ;;  %s3359_s27 = smov 0  }
  0x11   :  { %s3361_s28 = smov 0   ;;  %s3363_s29 = smov 0  }
  0x12 LB: > { %3903 = sst [smem:[#allocation15_spill]] %s3225_s24  ;;  %s2721_s0 = sadd.s32 4294967295, %s3245_s29   ;;  %s3245_s29 = sphi %s3363_s29, %s36_s29   ;;  %s3241_s28 = sphi %s3361_s28, %s3934_s28   ;;  %s3237_s27 = sphi %s3359_s27, %s3933_s27   ;;  %s3233_s26 = sphi %s3357_s26, %s3932_s26   ;;  %s3229_s25 = sphi %s3355_s25, %s3936_s25   ;;  %s3225_s24 = sphi %s3353_s24, %s3935_s24  }
  0x13   : > { %3904 = sst [smem:[#allocation16_spill]] %s3233_s26  ;;  %s2722_s30 = sadd.s32 4294967294, %s3245_s29  }
  0x14   : > { %3905 = sst [smem:[#allocation17_spill]] %s3241_s28  ;;  %s48_s18 = sadd.s32 1, %s3241_s28 }
  0x15   : > { %3906 = sst [smem:[#allocation18_spill]] %s3245_s29  ;;  %s405_s19 = sadd.s32 1, %s3233_s26 }
  0x16   : > { %p50_p0 = scmp.ge.s32.totalorder %s48_s18, 2  ;;  %p415_p1 = scmp.ne.s32.totalorder %s3233_s26, %s3229_s25 }
  0x17   : > { %p416_p2 = scmp.eq.s32.totalorder %s2721_s0, 1  ;;  %p421_p3 = scmp.ne.s32.totalorder %s3229_s25, %s3225_s24 }
  0x18   : > { %s3938_s18 = smov (%p50_p0, %s48_s18), 0  ;;  %p422_p5 = scmp.eq.s32.totalorder %s2722_s30, 1 }
  0x19   : > { %3907 = sst [smem:[#allocation19_spill]] %s3938_s18  ;;  %p3393_p4 = por %p416_p2, %p415_p1 }
  0x1a   : > { %s400_s20 = ssub.s32 %s3241_s28, %s3938_s18  ;;  %p2723_p6 = scmp.ge.s32.totalorder %s3245_s29, 1 }
  0x1b   : > { %s3908_s1 = scalar_select %p3393_p4, 1, 0 }
  0x1c   : > { %p403_p7 = scmp.eq.s32.totalorder %s400_s20, 0  ;;  %p3400_p8 = por %p422_p5, %p421_p3 }
  0x1d   : > { %3909 = sst [smem:[#allocation20_spill]] %s3908_s1  ;;  %p457_p9 = scmp.lt.s32.totalorder %s3245_s29, 3 }
  0x1e   : > { %s3910_s21 = scalar_select %p3400_p8, 1, 0 }
  0x1f   : > { %s3406_s22 = scalar_select %p403_p7, %s3233_s26, %s405_s19  }
  0x20   : > { %3911 = sst [smem:[#allocation21_spill]] %s3910_s21  ;;  %p3408_p10 = pnand %p2723_p6, %p457_p9 }
  0x21   : > { %3912 = sst [smem:[#allocation22_spill]] %s3406_s22  ;;  %p3412_p11 = scmp.eq.s32.totalorder %s2721_s0, 0 }
  0x22   : > { %p2834_p12 = pneg %p3408_p10  ;;  %s3915_s10 = sld [smem:[#allocation28_spill]] }
  0x23   : > { %s3247_s28 = smov [#allocation5]   ;;  %s3248_s22 = smov 64  }
  0x24   : > { %p3423_p13 = pnand %p3412_p11, %p2834_p12  ;;  %s505_s0 = sshll.u32 %s3247_s28, 4  ;;  %s506_s0 = int_to_ptr.vmem [resolvable:$true] %s505_s0 }
  0x25   : > { %s3249_s26 = smov 4   ;;  %s486_s30 = sshll.u32 %s3872_s8, 4  ;;  %s487_s30 = int_to_ptr.hbm [resolvable:$true] %s486_s30 }
  0x26   : > { %s3250_s20 = smov [#allocation2]   ;;  %s520_s17 = sshll.u32 %s3876_s12, 4  ;;  %s521_s17 = int_to_ptr.hbm [resolvable:$true] %s520_s17 }
  0x27   : > { %s3251_s28 = smov [#allocation7]  }
  0x28   : > { %s503_s18 = sshll.u32 %s3915_s10, 4  ;;  %s488_s10 = sshll.u32 %s3250_s20, 4  ;;  %s504_s18 = int_to_ptr.hbm [resolvable:$true] %s503_s18  ;;  %s489_s10 = int_to_ptr.vmem [resolvable:$true] %s488_s10 }
  0x29   : > { %2840 = dma.hbm_to_vmem [thread:$0]  (!%p3423_p13), %s504_s18, 256, %s506_s0, [#allocation6], %s3248_s22, %s3248_s22, %s3249_s26  }
  0x2a   : > { %2837 = dma.hbm_to_vmem [thread:$0]  (!%p3423_p13), %s487_s30, 256, %s489_s10, [#allocation3], %s3248_s22, %s3248_s22, %s3249_s26  }
  0x2b   : > { %s522_s1 = sshll.u32 %s3251_s28, 4  ;;  %564 = sbr.rel (%p3408_p10) target bundleno = 2780 (0xadc), region = 84  ;;  %s523_s1 = int_to_ptr.vmem [resolvable:$true] %s522_s1 }
  0x2c   : > { %2843 = dma.hbm_to_vmem [thread:$0]  (!%p3423_p13), %s521_s17, 256, %s523_s1, [#allocation6], %s3248_s22, %s3248_s22, %s3249_s26  }
  0x30   : > { %3208 = dma.done.wait (%p3412_p11), [#allocation3], 256  }
  0x31   : > { %3210 = vsyncadd (%p3412_p11), [#allocation3], 4294967040 }
  0x32   : > { %3212 = dma.done.wait (%p3412_p11), [#allocation6], 512  }
  0x33   : > { %3214 = vsyncadd (%p3412_p11), [#allocation6], 4294966784  ;;  %p638_p0 = scmp.lt.s32.totalorder %s3237_s27, 1  ;;  %s3917_s26 = sld [smem:[#allocation24_spill]]  ;;  %vm652_vm0 = vcmask 261120   ;;  %v3252_v4 = vmov 32.0  }
  0x34   : > { %s3918_s21 = sld [smem:[#allocation23_spill]]  ;;  %3010 = vrcp.f32 %v3252_v4  ;;  %v2806_v21 = vld [vmem:[%s3870_s6 + $0x8] sm:$0xff]  ;;  %v2805_v23 = vld [vmem:[%s3870_s6] sm:$0xff]  ;;  %s3254_s18 = smov 120   ;;  %vm801_vm8 = vcmask 1047556   ;;  %vm1468_vm9 = vcmask 1043456  }
  0x35   : > { %s639_s10 = scalar_select %p638_p0, %s3237_s27, 1  ;;  %v2808_v22 = vld [vmem:[#allocation2 + $0x8] sm:$0xff]  ;;  %746 = vmatpush.bf16.msra.mxu0 %v2806_v21  ;;  %v2807_v24 = vld [vmem:[#allocation2] sm:$0xff]  ;;  %vm1464_vm10 = vcmask 64512   ;;  %vm2321_vm11 = vcmask 130048   ;;  %vm2323_vm12 = vcmask 195584  }
  0x36   : > { %783 = vmatpush.bf16.msra.mxu1 %v2808_v22  ;;  %s3919_s2 = sld [smem:[#allocation25_spill]]  ;;  %v3004_v55 = vld [vmem:[%s3873_s9] ss:$0 sm:$0xff]  ;;  %s3255_s1 = smov 104  }
  0x37   : > { %s2734_s15 = sshll.u32 %s639_s10, 3  ;;  %s3920_s3 = sld [smem:[#allocation26_spill]]  ;;  %v3003_v56 = vld [vmem:[%s3871_s7] ss:$0 sm:$0xff] }
  0x38   : > { %s3687_s24 = sand.u32 1, %s3229_s25   ;;  %s3259_s0 = smov 24  }
  0x39   : > { %s648_s29 = scalar_lea.vmem %s3917_s26, %s2734_s15  ;;  %747 = vmatpush.bf16.msra.mxu0 %v2805_v23  ;;  %s2733_s23 = sshll.u32 %s3687_s24, 5 }
  0x3a   : > { %s3457_s22 = scalar_lea.vmem %s3918_s21, %s2734_s15  ;;  %v651_v0 = vld [vmem:[%s648_s29] sm:$0xff]  ;;  %v3011_v5 = vpop.eup %3010  ;;  %784 = vmatpush.bf16.msra.mxu1 %v2807_v24  ;;  %s3253_s29 = smov 112  }
  0x3b   : > { %v650_v1 = vld [vmem:[%s3457_s22] sm:$0xff]  ;;  %v692_v2 = vsel %vm652_vm0, %v651_v0, 0.0  ;;  %v657_v6 = vmul.f32 32.0, %v3011_v5  ;;  %vm661_vm1 = vweird.f32 %v3011_v5  ;;  %s3258_s21 = smov 96   ;;  %s3692_s19 = scalar_lea.vmem [#allocation9], %s2733_s23 }
  0x3c   : > { %v653_v3 = vsel %vm652_vm0, %v650_v1, 0.0  ;;  %693 = vadd.xlane.f32.xlu0 %v692_v2  ;;  %v3001_v43 = vld [vmem:[%s3919_s2] ss:$0 sm:$0xff]  ;;  %v3256_v2 = vmov 1983009808   ;;  %s3260_s30 = smov 16  }
  0x3d   : > { %654 = vadd.xlane.f32.xlu1 %v653_v3  ;;  %v658_v7 = vsub.f32 1.0, %v657_v6  ;;  %v3002_v46 = vld [vmem:[%s3920_s3] ss:$0 sm:$0xff]  ;;  %v806_v3 = vunpack.c.l.s4 %v3256_v2  ;;  %s3893_s20 = smov 8   ;;  %s3921_s4 = sld [smem:[#allocation27_spill]] }
  0x3e   : > { %s2566_s15 = sshll.u32 %s3692_s19, 4  ;;  %s2817_s16 = sshll.u32 %s3237_s27, 5  ;;  %s2567_s15 = int_to_ptr.vmem [resolvable:$true] %s2566_s15 }
  0x3f   : > { %v659_v8 = vmul.f32 %v3011_v5, %v658_v7  ;;  %v3506_v7 = vunpack.c.0.s8 %v806_v3  ;;  %s2538_s23 = scalar_lea.sflag [#allocation10], %s3687_s24 }
  0x41   : > { %v660_v9 = vadd.f32 %v3011_v5, %v659_v8 }
  0x43   : > { %v3462_v10 = vsel %vm661_vm1, %v3011_v5, %v660_v9 }
  0xaf   : > { %v694_v11 = vpop.xlane.xlu0 %693 }
  0xb0   : > { %v655_v12 = vpop.xlane.xlu1 %654  ;;  %v695_v13 = vmul.f32 %v694_v11, %v3462_v10  ;;  %v3257_v11 = vmov 1934713408  }
  0xb1   : > { %v663_v14 = vmul.f32 %v3462_v10, %v655_v12  ;;  %v830_v12 = vunpack.c.l.s4 %v3257_v11 }
  0xb2   : > { %v696_v15 = vsub.f32 %v651_v0, %v695_v13 }
  0xb3   : > { %v664_v16 = vsub.f32 %v650_v1, %v663_v14 }
  0xb4   : > { %v697_v17 = vmul.f32 %v696_v15, %v696_v15 }
  0xb5   : > { %v665_v18 = vmul.f32 %v664_v16, %v664_v16 }
  0xb6   : > { %v698_v19 = vsel %vm652_vm0, %v697_v17, 0.0 }
  0xb7   : > { %v666_v20 = vsel %vm652_vm0, %v665_v18, 0.0  ;;  %699 = vadd.xlane.f32.xlu0 %v698_v19 }
  0xb8   : > { %667 = vadd.xlane.f32.xlu1 %v666_v20  ;;  %v3515_v20 = vunpack.c.0.s8 %v830_v12 }
 0x12a   : > { %v700_v25 = vpop.xlane.xlu0 %699 }
 0x12b   : > { %v668_v26 = vpop.xlane.xlu1 %667  ;;  %v701_v27 = vmul.f32 %v700_v25, %v3462_v10 }
 0x12c   : > { %v669_v28 = vmul.f32 %v668_v26, %v3462_v10 }
 0x12d   : > { %v702_v29 = vadd.f32 1e-06, %v701_v27 }
 0x12e   : > { %v670_v30 = vadd.f32 1e-06, %v669_v28 }
 0x12f   : > { %3012 = vrsqrt.f32 %v702_v29  ;;  %vm709_vm5 = vweird.f32 %v702_v29 }
 0x130   : > { %3014 = vrsqrt.f32 %v670_v30  ;;  %vm677_vm3 = vweird.f32 %v670_v30 }
 0x135   : > { %v3013_v31 = vpop.eup %3012 }
 0x136   : > { %v3015_v32 = vpop.eup %3014  ;;  %v704_v33 = vmul.f32 %v3013_v31, %v702_v29  ;;  %vm710_vm2 = vweird.f32 %v3013_v31 }
 0x137   : > { %v672_v34 = vmul.f32 %v3015_v32, %v670_v30  ;;  %vm678_vm4 = vweird.f32 %v3015_v32  ;;  %vm711_vm6 = vmor %vm709_vm5, %vm710_vm2  ;;  %vm2513_vm5 = vcmask 523264  }
 0x138   : > { %v705_v35 = vmul.f32 %v3013_v31, %v704_v33  ;;  %vm679_vm7 = vmor %vm677_vm3, %vm678_vm4 }
 0x139   : > { %v673_v36 = vmul.f32 %v3015_v32, %v672_v34 }
 0x13a   : > { %v706_v37 = vmul.f32 0.5, %v705_v35 }
 0x13b   : > { %v674_v38 = vmul.f32 0.5, %v673_v36 }
 0x13c   : > { %v707_v39 = vsub.f32 1.5, %v706_v37 }
 0x13d   : > { %v675_v40 = vsub.f32 1.5, %v674_v38 }
 0x13e   : > { %v708_v41 = vmul.f32 %v3013_v31, %v707_v39 }
 0x13f   : > { %v676_v42 = vmul.f32 %v3015_v32, %v675_v40 }
 0x140   : > { %v712_v44 = vsel %vm711_vm6, %v3013_v31, %v708_v41 }
 0x141   : > { %v680_v45 = vsel %vm679_vm7, %v3015_v32, %v676_v42  ;;  %v713_v47 = vmul.f32 %v712_v44, %v696_v15 }
 0x142   : > { %v681_v48 = vmul.f32 %v680_v45, %v664_v16 }
 0x143   : > { %v714_v49 = vmul.f32 %v3001_v43, %v713_v47 }
 0x144   : > { %v686_v50 = vmul.f32 %v3001_v43, %v681_v48 }
 0x145   : > { %v715_v51 = vadd.f32 %v3002_v46, %v714_v49 }
 0x146   : > { %v691_v52 = vadd.f32 %v3002_v46, %v686_v50 }
 0x147   : > { %v753_v53 = vpack.c.bf16 %v715_v51, %v715_v51 }
 0x148   : > { %v716_v54 = vpack.c.bf16 %v691_v52, %v691_v52 }
 0x149   : > { %2753 = vmatmul.msk.bf16.vlgmr.msra.gmra.mxu1 %vm652_vm0, %v753_v53 }
 0x14a   : > { %2744 = vmatmul.msk.bf16.vlgmr.msra.gmra.mxu0 %vm652_vm0, %v716_v54 }
 0x1c6   : > { %v786_v57 = vpop.f32.mrf.mxu1 }
 0x1c7   : > { %v749_v58 = vpop.f32.mrf.mxu0  ;;  %v3490_v59 = vadd.f32 %v3004_v55, %v786_v57 }
 0x1c8   : > { %v3492_v60 = vadd.f32 %v3003_v56, %v749_v58 }
 0x1c9   : > { %869 = vrot.lane.b32.xlu0 %v3490_v59, %s3253_s29  ;;  %v877_v14 = vrot.slane %v3490_v59, 4 }
 0x1ca   : > { %v2924_v61 = vpack.i.bf16 %v3492_v60, %v3490_v59 }
 0x1cc   : > { %2925 = vrot.lane.b32.xlu2 %v2924_v61, %s3254_s18 }
 0x1ce   : > { %v788_v62 = vpop.f32.mrf.mxu1 }
 0x1cf   : > { %v751_v63 = vpop.f32.mrf.mxu0 }
 0x1d1   : > { %794 = vrot.lane.b32.xlu0 %v3492_v60, %s3253_s29  ;;  %s3923_s29 = sld [smem:[#allocation31_spill]] }
 0x1d4   : > { %872 = vrot.lane.b32.xlu2 %v3490_v59, %s3255_s1 }
 0x1d7   : > { %s3924_s18 = smov %s3923_s29 }
 0x1dc   : > { %797 = vrot.lane.b32.xlu2 %v3492_v60, %s3255_s1  ;;  %s2565_s1 = scalar_lea.hbm %s3923_s29, %s2817_s16 }
 0x226   : > { %v3500_v0 = vpop.permute.xlu2 %2925 }
 0x227   : > { %v3503_v1 = vunpack.i.l.bf16 %v3500_v0 }
 0x229   : > { %v889_v5 = vrot.slane %v3503_v1, 4 }
 0x22e   : > { %v873_v4 = vpop.permute.xlu2 %872 }
 0x22f   : > { %v887_v6 = vrot.slane %v873_v4, 4  ;;  %v890_v8 = vsel %vm801_vm8, %v873_v4, %v889_v5 }
 0x230   : > { %v898_v13 = vperm.slane %v890_v8, %v3506_v7 }
 0x231   : > { %v888_v9 = vsel %vm801_vm8, %v887_v6, %v3503_v1 }
 0x232   : > { %v894_v15 = vperm.slane %v888_v9, %v3506_v7  ;;  %v911_v21 = vrot.slane %v898_v13, 4 }
 0x234   : > { %v899_v24 = vrot.slane %v894_v15, 4 }
 0x236   : > { %v3534_v52 = vpop.permute.xlu2 %797 }
 0x23b   : > { %v870_v16 = vpop.permute.xlu0 %869 }
 0x23c   : > { %v875_v17 = vrot.slane %v870_v16, 4  ;;  %v878_v18 = vsel %vm801_vm8, %v870_v16, %v877_v14  ;;  %v2958_v19 = vpack.i.bf16 %v870_v16, %v873_v4 }
 0x23d   : > { %v886_v22 = vperm.slane %v878_v18, %v3506_v7 }
 0x23e   : > { %v876_v23 = vsel %vm801_vm8, %v875_v17, %v3490_v59 }
 0x23f   : > { %v882_v25 = vperm.slane %v876_v23, %v3506_v7  ;;  %v913_v26 = vrot.slane %v886_v22, 4  ;;  %v912_v27 = vsel %vm801_vm8, %v911_v21, %v886_v22 }
 0x240   : > { %v918_v28 = vperm.slane %v912_v27, %v3515_v20 }
 0x241   : > { %v914_v29 = vsel %vm801_vm8, %v898_v13, %v913_v26  ;;  %v900_v30 = vsel %vm801_vm8, %v899_v24, %v882_v25  ;;  %v901_v40 = vrot.slane %v882_v25, 4 }
 0x242   : > { %v927_v31 = vrot.slane %v918_v28, 4  ;;  %v922_v32 = vperm.slane %v914_v29, %v3515_v20  ;;  %v906_v33 = vperm.slane %v900_v30, %v3515_v20  ;;  %v935_v36 = vpack.c.bf16 %v918_v28, %v918_v28 }
 0x243   : > { %v902_v46 = vsel %vm801_vm8, %v894_v15, %v901_v40  ;;  %v3536_v54 = vpop.permute.xlu0 %794 }
 0x244   : > { %v928_v34 = vsel %vm801_vm8, 0.0, %v927_v31  ;;  %v929_v35 = vrot.slane %v922_v32, 4  ;;  %v923_v38 = vrot.slane %v906_v33, 4  ;;  %v937_v41 = vpack.c.bf16 %v922_v32, %v922_v32 }
 0x245   : > { %v936_v37 = vpack.c.bf16 %v928_v34, %v928_v34  ;;  %v931_v44 = vpack.c.bf16 %v906_v33, %v906_v33  ;;  %v910_v47 = vperm.slane %v902_v46, %v3515_v20 }
 0x246   : > { %v930_v39 = vsel %vm801_vm8, 0.0, %v929_v35  ;;  %v924_v43 = vsel %vm801_vm8, 0.0, %v923_v38 }
 0x247   : > { %2932 = vxpose.binary.xlu1.c.b16.start.end [1/2] (short) (narrow) %v936_v37, %v935_v36, 16  ;;  %v938_v42 = vpack.c.bf16 %v930_v39, %v930_v39  ;;  %v932_v45 = vpack.c.bf16 %v924_v43, %v924_v43  ;;  %v925_v48 = vrot.slane %v910_v47, 4  ;;  %v933_v50 = vpack.c.bf16 %v910_v47, %v910_v47 }
 0x249   : > { %2929 = vxpose.binary.xlu0.c.b16.start.end [1/2] (short) (narrow) %v938_v42, %v937_v41, 16  ;;  %v926_v49 = vsel %vm801_vm8, 0.0, %v925_v48 }
 0x24a   : > { %2935 = vxpose.binary.xlu2.c.b16.start.end [1/2] (short) (narrow) %v932_v45, %v931_v44, 16  ;;  %v934_v51 = vpack.c.bf16 %v926_v49, %v926_v49 }
 0x25a   : > { %2938 = vxpose.binary.xlu2.c.b16.start.end [1/2] (short) (narrow) %v934_v51, %v933_v50, 16 }
 0x2c3   : > { %2959 = vrot.lane.b32.xlu2 %v2958_v19, %s3258_s21 }
 0x2eb   : > { %v2936_v53 = vpop.trf.xlu2 }
 0x2f3   : > { %v2937_v55 = vpop.trf.xlu2  ;;  %v2933_v56 = vpop.trf.xlu1 }
 0x2f4   : > { %v1196_v62 = vrot.slane %v2933_v56, 4 }
 0x2f5   : > { %v2930_v57 = vpop.trf.xlu0 }
 0x2f6   : > { %v1202_v58 = vrot.slane %v2930_v57, 4  ;;  %v1197_v5 = vsel %vm801_vm8, %v1196_v62, %v2936_v53  ;;  %v2928_v62 = vunpack.i.h.bf16 %v3500_v0 }
 0x2f7   : > { %v1201_v11 = vperm.slane %v1197_v5, %v3506_v7 }
 0x2f9   : > { %v1210_v28 = vrot.slane %v1201_v11, 4 }
 0x2fb   : > { %v2939_v61 = vpop.trf.xlu2  ;;  %v2934_v3 = vpop.trf.xlu1 }
 0x2fc   : > { %v1203_v63 = vsel %vm801_vm8, %v1202_v58, %v2939_v61  ;;  %v1224_v6 = vrot.slane %v2934_v3, 4  ;;  %v803_v58 = vrot.slane %v3492_v60, 4 }
 0x2fd   : > { %v1207_v2 = vperm.slane %v1203_v63, %v3506_v7  ;;  %v2931_v4 = vpop.trf.xlu0  ;;  %v800_v63 = vrot.slane %v3536_v54, 4 }
 0x2fe   : > { %v1230_v8 = vrot.slane %v2931_v4, 4  ;;  %v1225_v13 = vsel %vm801_vm8, %v1224_v6, %v2937_v55  ;;  %v2953_v55 = vpack.i.bf16 %v3490_v59, %v3503_v1  ;;  %v815_v4 = vrot.slane %v2928_v62, 4 }
 0x2ff   : > { %v1208_v9 = vrot.slane %v1207_v2, 4  ;;  %v1229_v17 = vperm.slane %v1225_v13, %v3506_v7  ;;  %v1211_v30 = vsel %vm801_vm8, %v1207_v2, %v1210_v28  ;;  %v804_v2 = vsel %vm801_vm8, %v3536_v54, %v803_v58 }
 0x300   : > { %v1219_v32 = vperm.slane %v1211_v30, %v3515_v20  ;;  %v812_v3 = vperm.slane %v804_v2, %v3506_v7  ;;  %v802_v59 = vsel %vm801_vm8, %v800_v63, %v3492_v60  ;;  %v813_v1 = vrot.slane %v3534_v52, 4 }
 0x301   : > { %v1209_v15 = vsel %vm801_vm8, %v1208_v9, %v1201_v11  ;;  %v1238_v27 = vrot.slane %v1229_v17, 4  ;;  %v816_v5 = vsel %vm801_vm8, %v3534_v52, %v815_v4 }
 0x302   : > { %v1215_v19 = vperm.slane %v1209_v15, %v3515_v20  ;;  %v1272_v34 = vshrl.u32 %v1219_v32, 16  ;;  %v1222_v46 = vrot.slane %v1219_v32, 4  ;;  %v839_v0 = vrot.slane %v812_v3, 4 }
 0x303   : > { %v2940_v12 = vpop.trf.xlu2  ;;  %v824_v9 = vperm.slane %v816_v5, %v3506_v7  ;;  %v814_v11 = vsel %vm801_vm8, %v813_v1, %v2928_v62 }
 0x304   : > { %v1231_v14 = vsel %vm801_vm8, %v1230_v8, %v2940_v12  ;;  %v1256_v23 = vshrl.u32 %v1215_v19, 16  ;;  %v1220_v38 = vrot.slane %v1215_v19, 4  ;;  %v1223_v48 = vsel %vm801_vm8, 0, %v1222_v46 }
 0x305   : > { %v1235_v16 = vperm.slane %v1231_v14, %v3506_v7  ;;  %v1280_v50 = vshrl.u32 %v1223_v48, 16  ;;  %v808_v8 = vperm.slane %v802_v59, %v3506_v7  ;;  %v840_v12 = vsel %vm801_vm8, %v824_v9, %v839_v0 }
 0x306   : > { %v1221_v40 = vsel %vm801_vm8, 0, %v1220_v38  ;;  %v820_v13 = vperm.slane %v814_v11, %v3506_v7  ;;  %v848_v60 = vperm.slane %v840_v12, %v3515_v20  ;;  %v837_v15 = vrot.slane %v824_v9, 4 }
 0x307   : > { %v1236_v18 = vrot.slane %v1235_v16, 4  ;;  %v1239_v29 = vsel %vm801_vm8, %v1235_v16, %v1238_v27  ;;  %v1264_v42 = vshrl.u32 %v1221_v40, 16  ;;  %v827_v54 = vrot.slane %v808_v8, 4 }
 0x308   : > { %v1247_v31 = vperm.slane %v1239_v29, %v3515_v20  ;;  %v838_v52 = vsel %vm801_vm8, %v837_v15, %v812_v3  ;;  %v863_v30 = vpack.c.bf16 %v848_v60, %v848_v60 }
 0x309   : > { %v1237_v21 = vsel %vm801_vm8, %v1236_v18, %v1229_v17  ;;  %v828_v16 = vsel %vm801_vm8, %v820_v13, %v827_v54  ;;  %v855_v18 = vrot.slane %v848_v60, 4 }
 0x30a   : > { %v1243_v22 = vperm.slane %v1237_v21, %v3515_v20  ;;  %v1273_v33 = vshrl.u32 %v1247_v31, 16  ;;  %v1270_v35 = vpack.i.b16 %v1247_v31, %v1219_v32  ;;  %v1250_v45 = vrot.slane %v1247_v31, 4 }
 0x30b   : > { %v836_v17 = vperm.slane %v828_v16, %v3515_v20  ;;  %v844_v21 = vperm.slane %v838_v52, %v3515_v20 }
 0x30c   : > { %v1257_v24 = vshrl.u32 %v1243_v22, 16  ;;  %v1254_v25 = vpack.i.b16 %v1243_v22, %v1215_v19  ;;  %v1274_v36 = vpack.i.b16 %v1273_v33, %v1272_v34  ;;  %v1248_v37 = vrot.slane %v1243_v22, 4 }
 0x30d   : > { %v1251_v47 = vsel %vm801_vm8, 0, %v1250_v45  ;;  %v825_v19 = vrot.slane %v820_v13, 4  ;;  %v853_v27 = vrot.slane %v844_v21, 4 }
 0x30e   : > { %v1258_v26 = vpack.i.b16 %v1257_v24, %v1256_v23  ;;  %v1249_v39 = vsel %vm801_vm8, 0, %v1248_v37  ;;  %v1281_v49 = vshrl.u32 %v1251_v47, 16  ;;  %v1278_v51 = vpack.i.b16 %v1251_v47, %v1223_v48 }
 0x30f   : > { %v1265_v41 = vshrl.u32 %v1249_v39, 16  ;;  %v1262_v43 = vpack.i.b16 %v1249_v39, %v1221_v40  ;;  %v826_v22 = vsel %vm801_vm8, %v825_v19, %v808_v8  ;;  %v851_v23 = vrot.slane %v836_v17, 4 }
 0x310   : > { %2941 = vxpose.binary.xlu1.c.b16.start.end [1/2] (short) (narrow) %v1258_v26, %v1254_v25, 16  ;;  %v1282_v53 = vpack.i.b16 %v1281_v49, %v1280_v50  ;;  %v856_v24 = vsel %vm801_vm8, 0.0, %v855_v18  ;;  %v832_v26 = vperm.slane %v826_v22, %v3515_v20  ;;  %v854_v32 = vsel %vm801_vm8, 0.0, %v853_v27 }
 0x311   : > { %v1266_v44 = vpack.i.b16 %v1265_v41, %v1264_v42  ;;  %v864_v28 = vpack.c.bf16 %v856_v24, %v856_v24  ;;  %v852_v29 = vsel %vm801_vm8, 0.0, %v851_v23  ;;  %v1022_v37 = vrot.slane %v863_v30, 4 }
 0x312   : > { %v849_v31 = vrot.slane %v832_v26, 4  ;;  %v860_v33 = vpack.c.bf16 %v852_v29, %v852_v29  ;;  %v862_v39 = vpack.c.bf16 %v854_v32, %v854_v32  ;;  %v861_v42 = vpack.c.bf16 %v844_v21, %v844_v21 }
 0x313   : > { %v1042_v34 = vrot.slane %v864_v28, 4  ;;  %v857_v48 = vpack.c.bf16 %v832_v26, %v832_v26 }
 0x314   : > { %v850_v41 = vsel %vm801_vm8, 0.0, %v849_v31  ;;  %v1036_v50 = vrot.slane %v862_v39, 4 }
 0x315   : > { %v1043_v45 = vsel %vm801_vm8, %v1042_v34, %v860_v33  ;;  %v858_v49 = vpack.c.bf16 %v850_v41, %v850_v41 }
 0x316   : > { %v1047_v58 = vperm.slane %v1043_v45, %v3506_v7 }
 0x317   : > { %v1037_v3 = vsel %vm801_vm8, %v1036_v50, %v858_v49 }
 0x318   : > { %v1048_v59 = vrot.slane %v1047_v58, 4  ;;  %v1041_v9 = vperm.slane %v1037_v3, %v3506_v7 }
 0x31a   : > { %v1049_v13 = vsel %vm801_vm8, %v1048_v59, %v1041_v9 }
 0x31b   : > { %v1053_v16 = vperm.slane %v1049_v13, %v3515_v20 }
 0x31d   : > { %v1060_v26 = vshrl.u32 %v1053_v16, 16 }
 0x320   : > { %2944 = vxpose.binary.xlu1.c.b16.start.end [1/2] (short) (narrow) %v1274_v36, %v1270_v35, 16  ;;  %v859_v36 = vpack.c.bf16 %v836_v17, %v836_v17 }
 0x322   : > { %v1023_v47 = vsel %vm801_vm8, %v1022_v37, %v859_v36  ;;  %v2960_v36 = vpop.permute.xlu2 %2959 }
 0x323   : > { %v2961_v39 = vunpack.i.l.bf16 %v2960_v36 }
 0x330   : > { %2947 = vxpose.binary.xlu1.c.b16.start.end [1/2] (short) (narrow) %v1266_v44, %v1262_v43, 16 }
 0x340   : > { %2950 = vxpose.binary.xlu1.c.b16.start.end [1/2] (short) (narrow) %v1282_v53, %v1278_v51, 16  ;;  %v1015_v51 = vrot.slane %v861_v42, 4 }
 0x342   : > { %v1017_v4 = vsel %vm801_vm8, %v1015_v51, %v857_v48 }
 0x343   : > { %v1021_v11 = vperm.slane %v1017_v4, %v3506_v7 }
 0x39a   : > { %2954 = vrot.lane.b32.xlu1 %v2953_v55, %s3258_s21  ;;  %s2568_s21 = sshll.u32 %s2565_s1, 4  ;;  %s2569_s21 = int_to_ptr.hbm [resolvable:$true] %s2568_s21 }
 0x3bc   : > { %v2942_v56 = vpop.trf.xlu1 }
 0x3c4   : > { %v3561_v57 = vpop.trf.xlu1 }
 0x3cc   : > { %v2945_v61 = vpop.trf.xlu1 }
 0x3cd   : > { %v1412_v35 = vrot.slane %v2945_v61, 4 }
 0x3cf   : > { %v1413_v43 = vsel %vm801_vm8, %v1412_v35, %v2942_v56  ;;  %v1027_v56 = vperm.slane %v1023_v47, %v3506_v7 }
 0x3d0   : > { %v1417_v53 = vperm.slane %v1413_v43, %v3506_v7 }
 0x3d1   : > { %v1028_v0 = vrot.slane %v1027_v56, 4 }
 0x3d3   : > { %v1029_v60 = vsel %vm801_vm8, %v1028_v0, %v1021_v11 }
 0x3d4   : > { %v2946_v6 = vpop.trf.xlu1  ;;  %v1033_v17 = vperm.slane %v1029_v60, %v3515_v20 }
 0x3d5   : > { %v1432_v61 = vrot.slane %v2946_v6, 4 }
 0x3d6   : > { %v1058_v31 = vpack.i.b16 %v1053_v16, %v1033_v17  ;;  %v1059_v32 = vshrl.u32 %v1033_v17, 16  ;;  %v1034_v42 = vrot.slane %v1033_v17, 4 }
 0x3d7   : > { %v1433_v1 = vsel %vm801_vm8, %v1432_v61, %v3561_v57 }
 0x3d8   : > { %v1437_v54 = vperm.slane %v1433_v1, %v3506_v7  ;;  %v1061_v35 = vpack.i.b16 %v1060_v26, %v1059_v32  ;;  %v1035_v58 = vsel %vm801_vm8, 0, %v1034_v42 }
 0x3d9   : > { %v1065_v1 = vshrl.u32 %v1035_v58, 16 }
 0x3dc   : > { %v2948_v14 = vpop.trf.xlu1 }
 0x3e4   : > { %v2949_v25 = vpop.trf.xlu1 }
 0x3ec   : > { %v2951_v38 = vpop.trf.xlu1 }
 0x3ed   : > { %v1418_v40 = vrot.slane %v2951_v38, 4  ;;  %v2962_v38 = vunpack.i.h.bf16 %v2960_v36 }
 0x3ef   : > { %v1419_v44 = vsel %vm801_vm8, %v1418_v40, %v2948_v14  ;;  %v1054_v40 = vrot.slane %v1053_v16, 4  ;;  %v951_v43 = vrot.slane %v2962_v38, 4 }
 0x3f0   : > { %v1423_v46 = vperm.slane %v1419_v44, %v3506_v7  ;;  %v963_v44 = vrot.slane %v2961_v39, 4 }
 0x3f1   : > { %v1055_v47 = vsel %vm801_vm8, 0, %v1054_v40 }
 0x3f2   : > { %v1424_v55 = vrot.slane %v1423_v46, 4  ;;  %v1064_v59 = vpack.i.b16 %v1055_v47, %v1035_v58 }
 0x3f4   : > { %v2952_v62 = vpop.trf.xlu1  ;;  %v1425_v63 = vsel %vm801_vm8, %v1424_v55, %v1417_v53 }
 0x3f5   : > { %v1438_v2 = vrot.slane %v2952_v62, 4  ;;  %v1429_v8 = vperm.slane %v1425_v63, %v3515_v20  ;;  %v1066_v62 = vshrl.u32 %v1055_v47, 16 }
 0x3f7   : > { %v1439_v5 = vsel %vm801_vm8, %v1438_v2, %v2949_v25  ;;  %v1430_v14 = vrot.slane %v1429_v8, 4  ;;  %v1455_v52 = vshrl.u32 %v1429_v8, 16  ;;  %v1067_v9 = vpack.i.b16 %v1066_v62, %v1065_v1 }
 0x3f8   : > { %v1443_v6 = vperm.slane %v1439_v5, %v3506_v7 }
 0x3f9   : > { %v1431_v21 = vsel %vm801_vm8, 0, %v1430_v14 }
 0x3fa   : > { %v1444_v12 = vrot.slane %v1443_v6, 4  ;;  %v1461_v28 = vshrl.u32 %v1431_v21, 16 }
 0x3fc   : > { %v1445_v57 = vsel %vm801_vm8, %v1444_v12, %v1437_v54 }
 0x3fd   : > { %v1449_v15 = vperm.slane %v1445_v57, %v3515_v20 }
 0x3ff   : > { %v1454_v18 = vpack.i.b16 %v1449_v15, %v1429_v8  ;;  %v1456_v19 = vshrl.u32 %v1449_v15, 16  ;;  %v1450_v22 = vrot.slane %v1449_v15, 4 }
 0x401   : > { %v1470_v23 = vsel %vm1468_vm9, %v1454_v18, 0  ;;  %v1457_v24 = vpack.i.b16 %v1456_v19, %v1455_v52  ;;  %v1451_v25 = vsel %vm801_vm8, 0, %v1450_v22 }
 0x402   : > { %1479 = vmatpush.bf16.msra.mxu2 %v1470_v23  ;;  %v1460_v27 = vpack.i.b16 %v1451_v25, %v1431_v21  ;;  %v1462_v29 = vshrl.u32 %v1451_v25, 16 }
 0x403   : > { %v1489_v30 = vsel %vm1468_vm9, %v1457_v24, 0 }
 0x404   : > { %1498 = vmatpush.bf16.msra.mxu3 %v1489_v30  ;;  %v1508_v33 = vsel %vm1468_vm9, %v1460_v27, 0  ;;  %v1463_v34 = vpack.i.b16 %v1462_v29, %v1461_v28 }
 0x405   : > { %2754 = vmatmul.msk.bf16.vlgmr.msra.gmra.mxu2 %vm1464_vm10, %v1058_v31 }
 0x406   : > { %1517 = vmatpush.bf16.msrb.mxu2 %v1508_v33  ;;  %v1527_v37 = vsel %vm1468_vm9, %v1463_v34, 0 }
 0x407   : > { %2755 = vmatmul.msk.bf16.vlgmr.msra.gmra.mxu3 %vm1464_vm10, %v1061_v35 }
 0x408   : > { %1536 = vmatpush.bf16.msrb.mxu3 %v1527_v37 }
 0x40c   : > { %v2955_v41 = vpop.permute.xlu1 %2954 }
 0x40d   : > { %v2957_v45 = vunpack.i.h.bf16 %v2955_v41  ;;  %v2956_v46 = vunpack.i.l.bf16 %v2955_v41 }
 0x40f   : > { %v952_v48 = vsel %vm801_vm8, %v951_v43, %v2957_v45  ;;  %v953_v49 = vrot.slane %v2957_v45, 4  ;;  %v964_v50 = vsel %vm801_vm8, %v963_v44, %v2956_v46  ;;  %v965_v51 = vrot.slane %v2956_v46, 4 }
 0x410   : > { %v958_v53 = vperm.slane %v952_v48, %v3506_v7  ;;  %v970_v55 = vperm.slane %v964_v50, %v3506_v7 }
 0x411   : > { %v954_v61 = vsel %vm801_vm8, %v2962_v38, %v953_v49  ;;  %v966_v56 = vsel %vm801_vm8, %v2961_v39, %v965_v51 }
 0x412   : > { %v962_v63 = vperm.slane %v954_v61, %v3506_v7  ;;  %v977_v2 = vrot.slane %v958_v53, 4  ;;  %v974_v3 = vperm.slane %v966_v56, %v3506_v7  ;;  %v975_v4 = vrot.slane %v970_v55, 4 }
 0x414   : > { %v989_v5 = vrot.slane %v962_v63, 4  ;;  %v987_v8 = vrot.slane %v974_v3, 4  ;;  %v976_v0 = vsel %vm801_vm8, %v975_v4, %v958_v53  ;;  %v978_v6 = vsel %vm801_vm8, %v970_v55, %v977_v2 }
 0x415   : > { %2756 = vmatmul.msk.bf16.vlgmr.msrb.gmra.mxu2 %vm1464_vm10, %v1064_v59  ;;  %v982_v11 = vperm.slane %v976_v0, %v3515_v20  ;;  %v986_v36 = vperm.slane %v978_v6, %v3515_v20 }
 0x416   : > { %v988_v54 = vsel %vm801_vm8, %v987_v8, %v962_v63  ;;  %v990_v12 = vsel %vm801_vm8, %v974_v3, %v989_v5 }
 0x417   : > { %2757 = vmatmul.msk.bf16.vlgmr.msrb.gmra.mxu3 %vm1464_vm10, %v1067_v9  ;;  %v999_v13 = vrot.slane %v982_v11, 4  ;;  %v994_v60 = vperm.slane %v988_v54, %v3515_v20  ;;  %v1007_v15 = vpack.c.bf16 %v982_v11, %v982_v11  ;;  %v998_v37 = vperm.slane %v990_v12, %v3515_v20 }
 0x418   : > { %v1001_v38 = vrot.slane %v986_v36, 4  ;;  %v1009_v42 = vpack.c.bf16 %v986_v36, %v986_v36 }
 0x419   : > { %v1000_v14 = vsel %vm801_vm8, 0.0, %v999_v13  ;;  %v1003_v57 = vrot.slane %v994_v60, 4  ;;  %v1011_v17 = vpack.c.bf16 %v994_v60, %v994_v60  ;;  %v1005_v39 = vrot.slane %v998_v37, 4 }
 0x41a   : > { %v1008_v16 = vpack.c.bf16 %v1000_v14, %v1000_v14  ;;  %v1002_v40 = vsel %vm801_vm8, 0.0, %v1001_v38  ;;  %v1013_v44 = vpack.c.bf16 %v998_v37, %v998_v37 }
 0x41b   : > { %v1004_v52 = vsel %vm801_vm8, 0.0, %v1003_v57  ;;  %v1006_v41 = vsel %vm801_vm8, 0.0, %v1005_v39  ;;  %v1010_v43 = vpack.c.bf16 %v1002_v40, %v1002_v40 }
 0x41c   : > { %2966 = vxpose.binary.xlu0.c.b16.start.end [1/2] (short) (narrow) %v1008_v16, %v1007_v15, 16  ;;  %v1012_v18 = vpack.c.bf16 %v1004_v52, %v1004_v52  ;;  %v1014_v45 = vpack.c.bf16 %v1006_v41, %v1006_v41 }
 0x41e   : > { %2963 = vxpose.binary.xlu1.c.b16.start.end [1/2] (short) (narrow) %v1012_v18, %v1011_v17, 16 }
 0x488   : > { %v1481_v19 = vpop.f32.mrf.mxu2 }
 0x489   : > { %v1542_v21 = vmul.f32 0.35355338, %v1481_v19 }
 0x48a   : > { %v1500_v22 = vpop.f32.mrf.mxu3 }
 0x48b   : > { %v1543_v23 = vmul.f32 0.35355338, %v1500_v22  ;;  %v1546_v24 = vsel %vm1464_vm10, %v1542_v21, -inf }
 0x48d   : > { %1547 = vmax.xlane.f32.xlu0 %v1546_v24  ;;  %v1549_v25 = vsel %vm1464_vm10, %v1543_v23, -inf }
 0x48e   : > { %1550 = vmax.xlane.f32.xlu2 %v1549_v25 }
 0x490   : > { %v1483_v26 = vpop.f32.mrf.mxu2 }
 0x492   : > { %v1502_v27 = vpop.f32.mrf.mxu3 }
 0x498   : > { %v1519_v28 = vpop.f32.mrf.mxu2 }
 0x499   : > { %v1544_v29 = vmul.f32 0.35355338, %v1519_v28 }
 0x49a   : > { %v1538_v30 = vpop.f32.mrf.mxu3 }
 0x49b   : > { %v1545_v31 = vmul.f32 0.35355338, %v1538_v30  ;;  %v1552_v32 = vsel %vm1464_vm10, %v1544_v29, -inf }
 0x49c   : > { %1553 = vmax.xlane.f32.xlu0 %v1552_v32 }
 0x49d   : > { %v1555_v33 = vsel %vm1464_vm10, %v1545_v31, -inf }
 0x49e   : > { %1556 = vmax.xlane.f32.xlu2 %v1555_v33 }
 0x4a0   : > { %v1521_v34 = vpop.f32.mrf.mxu2 }
 0x4a2   : > { %v1540_v35 = vpop.f32.mrf.mxu3 }
 0x4c5   : > { %2972 = vxpose.binary.xlu0.c.b16.start.end [1/2] (short) (narrow) %v1010_v43, %v1009_v42, 16 }
 0x4c7   : > { %2969 = vxpose.binary.xlu2.c.b16.start.end [1/2] (short) (narrow) %v1014_v45, %v1013_v44, 16 }
 0x4c8   : > { %v2967_v49 = vpop.trf.xlu0 }
 0x4ca   : > { %v2964_v9 = vpop.trf.xlu1 }
 0x4cb   : > { %v1726_v11 = vrot.slane %v2964_v9, 4 }
 0x4cd   : > { %v1727_v12 = vsel %vm801_vm8, %v1726_v11, %v2967_v49 }
 0x4ce   : > { %v1731_v14 = vperm.slane %v1727_v12, %v3506_v7 }
 0x4d0   : > { %v2968_v53 = vpop.trf.xlu0  ;;  %v1740_v52 = vrot.slane %v1731_v14, 4 }
 0x4d2   : > { %v2965_v13 = vpop.trf.xlu1 }
 0x4d3   : > { %v1754_v57 = vrot.slane %v2965_v13, 4 }
 0x4d5   : > { %v1755_v19 = vsel %vm801_vm8, %v1754_v57, %v2968_v53 }
 0x4d6   : > { %v1759_v24 = vperm.slane %v1755_v19, %v3506_v7 }
 0x4d8   : > { %v1768_v30 = vrot.slane %v1759_v24, 4 }
 0x500   : > { %v1548_v56 = vpop.xlane.xlu0 %1547 }
 0x501   : > { %v1551_v46 = vpop.xlane.xlu2 %1550  ;;  %v1558_v3 = vsub.f32 %v1542_v21, %v1548_v56 }
 0x502   : > { %v1559_v47 = vsub.f32 %v1543_v23, %v1551_v46 }
 0x503   : > { %v1562_v59 = vmul.f32 1.442695, %v1558_v3 }
 0x504   : > { %v1564_v48 = vmul.f32 1.442695, %v1559_v47 }
 0x506   : > { %3016 = vpow2.f32 %v1564_v48 }
 0x50c   : > { %v3651_v50 = vpop.eup %3016 }
 0x50d   : > { %v1573_v51 = vsel %vm1464_vm10, %v3651_v50, 0.0 }
 0x50e   : > { %1574 = vadd.xlane.f32.xlu1 %v1573_v51 }
 0x50f   : > { %v1554_v2 = vpop.xlane.xlu0 %1553 }
 0x510   : > { %v1560_v4 = vsub.f32 %v1544_v29, %v1554_v2 }
 0x511   : > { %v1557_v55 = vpop.xlane.xlu2 %1556 }
 0x512   : > { %v1561_v58 = vsub.f32 %v1545_v31, %v1557_v55  ;;  %v1566_v1 = vmul.f32 1.442695, %v1560_v4 }
 0x514   : > { %v1568_v61 = vmul.f32 1.442695, %v1561_v58 }
 0x516   : > { %3018 = vpow2.f32 %v1568_v61 }
 0x517   : > { %3020 = vpow2.f32 %v1562_v59 }
 0x518   : > { %3022 = vpow2.f32 %v1566_v1 }
 0x51c   : > { %v3655_v62 = vpop.eup %3018 }
 0x51d   : > { %v1579_v63 = vsel %vm1464_vm10, %v3655_v62, 0.0  ;;  %v3659_v5 = vpop.eup %3020 }
 0x51e   : > { %1580 = vadd.xlane.f32.xlu1 %v1579_v63  ;;  %v3661_v8 = vpop.eup %3022  ;;  %v1570_v0 = vsel %vm1464_vm10, %v3659_v5, 0.0 }
 0x51f   : > { %v1576_v6 = vsel %vm1464_vm10, %v3661_v8, 0.0 }
 0x536   : > { %1571 = vadd.xlane.f32.xlu0 %v1570_v0 }
 0x538   : > { %1577 = vadd.xlane.f32.xlu2 %v1576_v6 }
 0x568   : > { %v2970_v54 = vpop.trf.xlu2 }
 0x569   : > { %v1732_v60 = vrot.slane %v2970_v54, 4 }
 0x570   : > { %v2971_v18 = vpop.trf.xlu2 }
 0x571   : > { %v2973_v15 = vpop.trf.xlu0  ;;  %v1760_v23 = vrot.slane %v2971_v18, 4 }
 0x572   : > { %v1733_v16 = vsel %vm801_vm8, %v1732_v60, %v2973_v15 }
 0x573   : > { %v1737_v17 = vperm.slane %v1733_v16, %v3506_v7 }
 0x575   : > { %v1738_v21 = vrot.slane %v1737_v17, 4  ;;  %v1741_v22 = vsel %vm801_vm8, %v1737_v17, %v1740_v52 }
 0x576   : > { %v1749_v26 = vperm.slane %v1741_v22, %v3515_v20 }
 0x577   : > { %v1739_v25 = vsel %vm801_vm8, %v1738_v21, %v1731_v14 }
 0x578   : > { %v1745_v27 = vperm.slane %v1739_v25, %v3515_v20  ;;  %v1752_v32 = vrot.slane %v1749_v26, 4  ;;  %v1802_v38 = vshrl.u32 %v1749_v26, 16 }
 0x579   : > { %v2974_v28 = vpop.trf.xlu0 }
 0x57a   : > { %v1761_v29 = vsel %vm801_vm8, %v1760_v23, %v2974_v28  ;;  %v1750_v35 = vrot.slane %v1745_v27, 4  ;;  %v1753_v41 = vsel %vm801_vm8, 0, %v1752_v32  ;;  %v1786_v9 = vshrl.u32 %v1745_v27, 16 }
 0x57b   : > { %v1765_v31 = vperm.slane %v1761_v29, %v3506_v7  ;;  %v1810_v49 = vshrl.u32 %v1753_v41, 16 }
 0x57c   : > { %v1751_v45 = vsel %vm801_vm8, 0, %v1750_v35 }
 0x57d   : > { %v1766_v33 = vrot.slane %v1765_v31, 4  ;;  %v1769_v34 = vsel %vm801_vm8, %v1765_v31, %v1768_v30  ;;  %v1794_v61 = vshrl.u32 %v1751_v45, 16 }
 0x57e   : > { %v1777_v36 = vperm.slane %v1769_v34, %v3515_v20 }
 0x57f   : > { %v1767_v37 = vsel %vm801_vm8, %v1766_v33, %v1759_v24 }
 0x580   : > { %v1773_v39 = vperm.slane %v1767_v37, %v3515_v20  ;;  %v1803_v40 = vshrl.u32 %v1777_v36, 16  ;;  %v1780_v42 = vrot.slane %v1777_v36, 4  ;;  %v1800_v44 = vpack.i.b16 %v1777_v36, %v1749_v26 }
 0x581   : > { %v1575_v43 = vpop.xlane.xlu1 %1574 }
 0x582   : > { %3024 = vrcp.f32 %v1575_v43  ;;  %v1804_v46 = vpack.i.b16 %v1803_v40, %v1802_v38  ;;  %v1781_v47 = vsel %vm801_vm8, 0, %v1780_v42  ;;  %v1778_v48 = vrot.slane %v1773_v39, 4 }
 0x583   : > { %v1811_v51 = vshrl.u32 %v1781_v47, 16  ;;  %v1808_v55 = vpack.i.b16 %v1781_v47, %v1753_v41  ;;  %v1787_v6 = vshrl.u32 %v1773_v39, 16  ;;  %v1784_v11 = vpack.i.b16 %v1773_v39, %v1745_v27 }
 0x584   : > { %2981 = vxpose.binary.xlu0.c.b16.start.end [1/2] (short) (narrow) %v1804_v46, %v1800_v44, 16  ;;  %v1779_v53 = vsel %vm801_vm8, 0, %v1778_v48 }
 0x585   : > { %v1812_v58 = vpack.i.b16 %v1811_v51, %v1810_v49  ;;  %v1795_v56 = vshrl.u32 %v1779_v53, 16  ;;  %v1792_v63 = vpack.i.b16 %v1779_v53, %v1751_v45  ;;  %v1788_v54 = vpack.i.b16 %v1787_v6, %v1786_v9 }
 0x587   : > { %2975 = vxpose.binary.xlu1.c.b16.start.end [1/2] (short) (narrow) %v1812_v58, %v1808_v55, 16  ;;  %v1796_v2 = vpack.i.b16 %v1795_v56, %v1794_v61 }
 0x588   : > { %v3025_v3 = vpop.eup %3024 }
 0x589   : > { %2978 = vxpose.binary.xlu2.c.b16.start.end [1/2] (short) (narrow) %v1796_v2, %v1792_v63, 16  ;;  %v1587_v4 = vmul.f32 %v3025_v3, %v3651_v50 }
 0x58b   : > { %v1595_v59 = vpack.c.bf16 %v1587_v4, %v1587_v4  ;;  %1591 = vst.msk [vmem:[%s3692_s19 + $0x8] sm:$0xff] %vm1464_vm10, %v1587_v4 }
 0x58d   : > { %v2017_v1 = vsel %vm1464_vm10, %v1595_v59, 0 }
 0x58e   : > { %2026 = vmatpush.bf16.xpose.msrb.mxu1 %v2017_v1 }
 0x591   : > { %v1581_v0 = vpop.xlane.xlu1 %1580 }
 0x592   : > { %3026 = vrcp.f32 %v1581_v0 }
 0x598   : > { %v3027_v12 = vpop.eup %3026 }
 0x599   : > { %2984 = vxpose.binary.xlu2.c.b16.start.end [1/2] (short) (narrow) %v1788_v54, %v1784_v11, 16  ;;  %v1589_v50 = vmul.f32 %v3027_v12, %v3655_v62 }
 0x59b   : > { %v1597_v13 = vpack.c.bf16 %v1589_v50, %v1589_v50  ;;  %1593 = vst.msk [vmem:[%s3692_s19 + $0x18] sm:$0xff] %vm1464_vm10, %v1589_v50 }
 0x59d   : > { %v2055_v60 = vsel %vm1464_vm10, %v1597_v13, 0 }
 0x59e   : > { %2064 = vmatpush.bf16.xpose.msra.mxu3 %v2055_v60 }
 0x5a9   : > { %v1572_v14 = vpop.xlane.xlu0 %1571 }
 0x5aa   : > { %3028 = vrcp.f32 %v1572_v14 }
 0x5ab   : > { %v1578_v57 = vpop.xlane.xlu2 %1577 }
 0x5ac   : > { %3030 = vrcp.f32 %v1578_v57 }
 0x5b0   : > { %v3029_v15 = vpop.eup %3028 }
 0x5b1   : > { %v1586_v16 = vmul.f32 %v3029_v15, %v3659_v5 }
 0x5b2   : > { %v3031_v52 = vpop.eup %3030 }
 0x5b3   : > { %v1594_v17 = vpack.c.bf16 %v1586_v16, %v1586_v16  ;;  %v1588_v18 = vmul.f32 %v3031_v52, %v3661_v8  ;;  %1590 = vst.msk [vmem:[%s3692_s19] sm:$0xff] %vm1464_vm10, %v1586_v16 }
 0x5b5   : > { %v1998_v62 = vsel %vm1464_vm10, %v1594_v17, 0  ;;  %v1596_v19 = vpack.c.bf16 %v1588_v18, %v1588_v18  ;;  %1592 = vst.msk [vmem:[%s3692_s19 + $0x10] sm:$0xff] %vm1464_vm10, %v1588_v18  ;;  %s3147_s19 = scalar_lea.hbm %s3924_s18, 64 }
 0x5b6   : > { %2007 = vmatpush.bf16.xpose.msrb.mxu0 %v1998_v62 }
 0x5b7   : > { %v2036_v21 = vsel %vm1464_vm10, %v1596_v19, 0 }
 0x5b8   : > { %2045 = vmatpush.bf16.xpose.msra.mxu2 %v2036_v21 }
 0x62a   : > { %v2979_v22 = vpop.trf.xlu2 }
 0x630   : > { %v2982_v24 = vpop.trf.xlu0 }
 0x631   : > { %v1942_v27 = vrot.slane %v2982_v24, 4 }
 0x632   : > { %v2980_v23 = vpop.trf.xlu2 }
 0x633   : > { %v2976_v25 = vpop.trf.xlu1 }
 0x634   : > { %v1948_v5 = vrot.slane %v2976_v25, 4 }
 0x636   : > { %v1949_v26 = vsel %vm801_vm8, %v1948_v5, %v2979_v22 }
 0x637   : > { %v1953_v8 = vperm.slane %v1949_v26, %v3506_v7 }
 0x638   : > { %v2983_v34 = vpop.trf.xlu0 }
 0x639   : > { %v1954_v31 = vrot.slane %v1953_v8, 4  ;;  %v1962_v37 = vrot.slane %v2983_v34, 4 }
 0x63a   : > { %v2985_v28 = vpop.trf.xlu2 }
 0x63b   : > { %v1943_v29 = vsel %vm801_vm8, %v1942_v27, %v2985_v28  ;;  %v2977_v30 = vpop.trf.xlu1 }
 0x63c   : > { %v1947_v32 = vperm.slane %v1943_v29, %v3506_v7  ;;  %v1968_v33 = vrot.slane %v2977_v30, 4 }
 0x63e   : > { %v1955_v35 = vsel %vm801_vm8, %v1954_v31, %v1947_v32  ;;  %v1969_v36 = vsel %vm801_vm8, %v1968_v33, %v2980_v23 }
 0x63f   : > { %v1973_v38 = vperm.slane %v1969_v36, %v3506_v7  ;;  %v1959_v39 = vperm.slane %v1955_v35, %v3515_v20 }
 0x641   : > { %v1974_v42 = vrot.slane %v1973_v38, 4  ;;  %v1960_v44 = vrot.slane %v1959_v39, 4  ;;  %v1985_v47 = vshrl.u32 %v1959_v39, 16 }
 0x642   : > { %v2986_v40 = vpop.trf.xlu2 }
 0x643   : > { %v1963_v41 = vsel %vm801_vm8, %v1962_v37, %v2986_v40  ;;  %v1961_v53 = vsel %vm801_vm8, 0, %v1960_v44 }
 0x644   : > { %v1967_v43 = vperm.slane %v1963_v41, %v3506_v7  ;;  %v1991_v56 = vshrl.u32 %v1961_v53, 16 }
 0x646   : > { %v1975_v45 = vsel %vm801_vm8, %v1974_v42, %v1967_v43 }
 0x647   : > { %v1979_v46 = vperm.slane %v1975_v45, %v3515_v20 }
 0x649   : > { %v1980_v48 = vrot.slane %v1979_v46, 4  ;;  %v1984_v49 = vpack.i.b16 %v1979_v46, %v1959_v39  ;;  %v1986_v51 = vshrl.u32 %v1979_v46, 16 }
 0x64b   : > { %2758 = vmatmul.msk.bf16.vlgmr.msrb.gmra.mxu0 %vm1464_vm10, %v1984_v49  ;;  %v1987_v55 = vpack.i.b16 %v1986_v51, %v1985_v47  ;;  %v1981_v58 = vsel %vm801_vm8, 0, %v1980_v48 }
 0x64c   : > { %v1990_v61 = vpack.i.b16 %v1981_v58, %v1961_v53  ;;  %v1992_v63 = vshrl.u32 %v1981_v58, 16 }
 0x64d   : > { %2759 = vmatmul.msk.bf16.vlgmr.msrb.gmra.mxu1 %vm1464_vm10, %v1987_v55 }
 0x64e   : > { %2760 = vmatmul.msk.bf16.vlgmr.msra.gmra.mxu2 %vm1464_vm10, %v1990_v61  ;;  %v1993_v2 = vpack.i.b16 %v1992_v63, %v1991_v56 }
 0x650   : > { %2761 = vmatmul.msk.bf16.vlgmr.msra.gmra.mxu3 %vm1464_vm10, %v1993_v2 }
 0x6c8   : > { %v2009_v3 = vpop.f32.mrf.mxu0 }
 0x6ca   : > { %v2028_v4 = vpop.f32.mrf.mxu1 }
 0x6d0   : > { %v2011_v59 = vpop.f32.mrf.mxu0 }
 0x6d1   : > { %v2047_v1 = vpop.f32.mrf.mxu2 }
 0x6d2   : > { %v2987_v0 = vpack.i.bf16 %v2009_v3, %v2047_v1  ;;  %v2030_v6 = vpop.f32.mrf.mxu1 }
 0x6d3   : > { %v2066_v9 = vpop.f32.mrf.mxu3 }
 0x6d4   : > { %v2994_v11 = vpack.i.bf16 %v2028_v4, %v2066_v9  ;;  %2988 = vxpose.xlu0.b32.start.end [1/1] (short) (narrow) %v2987_v0, 8 }
 0x6d6   : > { %2995 = vxpose.xlu1.b32.start.end [1/1] (short) (narrow) %v2994_v11, 8 }
 0x6d9   : > { %v2049_v54 = vpop.f32.mrf.mxu2 }
 0x6db   : > { %v2068_v12 = vpop.f32.mrf.mxu3 }
 0x778   : > { %v2989_v50 = vpop.trf.xlu0 }
 0x779   : > { %v2993_v13 = vunpack.i.h.bf16 %v2989_v50  ;;  %v2990_v60 = vunpack.i.l.bf16 %v2989_v50 }
 0x77a   : > { %v2996_v14 = vpop.trf.xlu1 }
 0x77b   : > { %v2200_v57 = vrot.slane %v2993_v13, 4  ;;  %v2198_v15 = vrot.slane %v2990_v60, 4  ;;  %v3000_v16 = vunpack.i.h.bf16 %v2996_v14  ;;  %v2997_v52 = vunpack.i.l.bf16 %v2996_v14 }
 0x77d   : > { %v2199_v17 = vsel %vm801_vm8, %v2198_v15, %v2993_v13  ;;  %v2201_v18 = vsel %vm801_vm8, %v2990_v60, %v2200_v57  ;;  %v2212_v62 = vrot.slane %v3000_v16, 4  ;;  %v2210_v22 = vrot.slane %v2997_v52, 4 }
 0x77e   : > { %v2205_v19 = vperm.slane %v2199_v17, %v3506_v7  ;;  %v2209_v21 = vperm.slane %v2201_v18, %v3506_v7 }
 0x77f   : > { %v2213_v23 = vsel %vm801_vm8, %v2997_v52, %v2212_v62  ;;  %v2211_v5 = vsel %vm801_vm8, %v2210_v22, %v3000_v16  ;;  %v2810_v16 = vld [vmem:[#allocation5 + $0x8] sm:$0xff] }
 0x780   : > { %v2224_v24 = vrot.slane %v2205_v19, 4  ;;  %v2236_v25 = vrot.slane %v2209_v21, 4  ;;  %v2221_v26 = vperm.slane %v2213_v23, %v3506_v7  ;;  %v2217_v27 = vperm.slane %v2211_v5, %v3506_v7  ;;  %2355 = vmatpush.bf16.msra.mxu0 %v2810_v16  ;;  %v3005_v23 = vld [vmem:[%s3875_s11] ss:$0 sm:$0xff] }
 0x781   : > { %v3036_v5 = vld [vmem:[%s3457_s22] sm:$0xff] }
 0x782   : > { %v2234_v8 = vrot.slane %v2221_v26, 4  ;;  %v2237_v28 = vsel %vm801_vm8, %v2221_v26, %v2236_v25  ;;  %v2222_v29 = vrot.slane %v2217_v27, 4  ;;  %v2225_v30 = vsel %vm801_vm8, %v2217_v27, %v2224_v24 }
 0x783   : > { %v2245_v31 = vperm.slane %v2237_v28, %v3515_v20  ;;  %v2233_v32 = vperm.slane %v2225_v30, %v3515_v20 }
 0x784   : > { %v2235_v33 = vsel %vm801_vm8, %v2234_v8, %v2209_v21  ;;  %v2223_v34 = vsel %vm801_vm8, %v2222_v29, %v2205_v19 }
 0x785   : > { %v2241_v35 = vperm.slane %v2235_v33, %v3515_v20  ;;  %v2252_v36 = vrot.slane %v2245_v31, 4  ;;  %v2229_v37 = vperm.slane %v2223_v34, %v3515_v20  ;;  %v2248_v38 = vrot.slane %v2233_v32, 4  ;;  %v2812_v33 = vld [vmem:[#allocation7 + $0x8] sm:$0xff]  ;;  %v2811_v34 = vld [vmem:[#allocation7] sm:$0xff] }
 0x786   : > { %2425 = vmatpush.bf16.msra.mxu1 %v2812_v33 }
 0x787   : > { %v2250_v39 = vrot.slane %v2241_v35, 4  ;;  %v2253_v40 = vsel %vm801_vm8, 0.0, %v2252_v36  ;;  %v2265_v41 = vsel %vm801_vm8, %v2252_v36, %v2241_v35  ;;  %v2249_v42 = vsel %vm801_vm8, 0.0, %v2248_v38 }
 0x788   : > { %v2246_v43 = vrot.slane %v2229_v37, 4  ;;  %v2254_v44 = vsel %vm801_vm8, %v2248_v38, %v2229_v37  ;;  %v2269_v45 = vperm.slane %v2265_v41, %v3506_v7  ;;  %v2259_v48 = vrot.slane %v2249_v42, 4 }
 0x789   : > { %v2251_v46 = vsel %vm801_vm8, 0.0, %v2250_v39  ;;  %v2258_v47 = vperm.slane %v2254_v44, %v3506_v7  ;;  %v2270_v49 = vrot.slane %v2253_v40, 4  ;;  %v3006_v44 = vld [vmem:[%s3921_s4] ss:$0 sm:$0xff] }
 0x78a   : > { %v2247_v51 = vsel %vm801_vm8, 0.0, %v2246_v43  ;;  %v2290_v53 = vrot.slane %v2269_v45, 4  ;;  %2426 = vmatpush.bf16.msra.mxu1 %v2811_v34 }
 0x78b   : > { %v2260_v55 = vsel %vm801_vm8, %v2259_v48, %v2247_v51  ;;  %v2271_v58 = vsel %vm801_vm8, %v2270_v49, %v2251_v46  ;;  %v2278_v61 = vrot.slane %v2258_v47, 4  ;;  %v3008_v51 = vld [vmem:[%s3877_s13] ss:$0 sm:$0xff] }
 0x78c   : > { %v2264_v56 = vperm.slane %v2260_v55, %v3506_v7  ;;  %v2275_v63 = vperm.slane %v2271_v58, %v3506_v7 }
 0x78e   : > { %v2279_v2 = vsel %vm801_vm8, %v2264_v56, %v2278_v61  ;;  %v2291_v3 = vsel %vm801_vm8, %v2275_v63, %v2290_v53  ;;  %v2276_v4 = vrot.slane %v2264_v56, 4  ;;  %v2288_v59 = vrot.slane %v2275_v63, 4 }
 0x78f   : > { %v2287_v1 = vperm.slane %v2279_v2, %v3515_v20  ;;  %v2299_v0 = vperm.slane %v2291_v3, %v3515_v20 }
 0x790   : > { %v2277_v6 = vsel %vm801_vm8, %v2276_v4, %v2258_v47  ;;  %v2289_v9 = vsel %vm801_vm8, %v2288_v59, %v2269_v45 }
 0x791   : > { %v2306_v11 = vrot.slane %v2287_v1, 4  ;;  %v2304_v54 = vrot.slane %v2299_v0, 4  ;;  %v2283_v12 = vperm.slane %v2277_v6, %v3515_v20  ;;  %v2295_v7 = vperm.slane %v2289_v9, %v3515_v20  ;;  %v2809_v20 = vld [vmem:[#allocation5] sm:$0xff] }
 0x792   : > { %2356 = vmatpush.bf16.msra.mxu0 %v2809_v20 }
 0x793   : > { %v2307_v50 = vsel %vm801_vm8, %v2299_v0, %v2306_v11  ;;  %v2305_v13 = vsel %vm801_vm8, %v2304_v54, %v2287_v1  ;;  %v2300_v60 = vrot.slane %v2295_v7, 4  ;;  %v2302_v14 = vrot.slane %v2283_v12, 4  ;;  %v2816_v1 = vld [vmem:[%s3878_s14 + $0x18] sm:$0xff]  ;;  %v2815_v11 = vld [vmem:[%s3878_s14 + $0x10] sm:$0xff] }
 0x794   : > { %2317 = vrot.lane.b32.xlu1 %v2307_v50, %s3259_s0  ;;  %2313 = vrot.lane.b32.xlu0 %v2305_v13, %s3260_s30  ;;  %v2814_v50 = vld [vmem:[%s3878_s14 + $0x8] sm:$0xff]  ;;  %s3141_s0 = sshra.s32 %s2569_s21, 4  ;;  %s3142_s0 = int_to_ptr.hbm [resolvable:$true] %s3141_s0 }
 0x795   : > { %v2303_v57 = vsel %vm801_vm8, %v2295_v7, %v2302_v14  ;;  %v2301_v15 = vsel %vm801_vm8, %v2300_v60, %v2283_v12  ;;  %2521 = vmatpush.bf16.msrb.mxu2 %v2816_v1  ;;  %v2813_v14 = vld [vmem:[%s3878_s14] sm:$0xff]  ;;  %s3143_s30 = scalar_lea.hbm %s3142_s0, 32  ;;  %p3148_p5 = scmp.lt.s32.totalorder %s3142_s0, %s3924_s18 }
 0x796   : > { %2309 = vrot.lane.b32.xlu2 %v2303_v57, %s3893_s20  ;;  %p3144_p1 = scmp.ne.s32.totalorder %s3142_s0, %s3143_s30  ;;  %p3149_p6 = scmp.lt.s32.totalorder %s3147_s19, %s3143_s30 }
 0x798   : > { %p3145_p2 = pnand %p3144_p1, %p3393_p4  ;;  %p3150_p7 = por %p3149_p6, %p3148_p5 }
 0x799   : > { %2522 = vmatpush.bf16.msrb.mxu2 %v2815_v11 }
 0x79a   : > { %p3146_p3 = pneg %p3145_p2 }
 0x79c   : > { %p3151_p9 = pnand %p3150_p7, %p3146_p3 }
 0x79d   : > { %2523 = vmatpush.bf16.msrb.mxu2 %v2814_v50 }
 0x7a1   : > { %2524 = vmatpush.bf16.msrb.mxu2 %v2813_v14 }
 0x7f0   : > { %v2310_v52 = vpop.permute.xlu2 %2309 }
 0x7f1   : > { %v2320_v17 = vsel %vm1464_vm10, %v2301_v15, %v2310_v52 }
 0x806   : > { %v2318_v18 = vpop.permute.xlu1 %2317  ;;  %v2314_v62 = vpop.permute.xlu0 %2313 }
 0x807   : > { %v2322_v19 = vsel %vm2321_vm11, %v2320_v17, %v2314_v62 }
 0x808   : > { %v2324_v21 = vsel %vm2323_vm12, %v2322_v19, %v2318_v18 }
 0x809   : > { %v2325_v22 = vpack.c.bf16 %v2324_v21, %v2324_v21 }
 0x80b   : > { %2770 = vmatmul.msk.bf16.vlgmr.msra.gmra.mxu0 %vm652_vm0, %v2325_v22 }
 0x888   : > { %v2358_v24 = vpop.f32.mrf.mxu0 }
 0x889   : > { %v2359_v25 = vadd.f32 %v3005_v23, %v2358_v24 }
 0x88b   : > { %v3774_v26 = vadd.f32 %v3036_v5, %v2359_v25 }
 0x88d   : > { %v2363_v27 = vsel %vm652_vm0, %v3774_v26, 0.0 }
 0x88e   : > { %2364 = vadd.xlane.f32.xlu2 %v2363_v27 }
 0x890   : > { %v2360_v8 = vpop.f32.mrf.mxu0 }
 0x901   : > { %v2365_v28 = vpop.xlane.xlu2 %2364 }
 0x902   : > { %v2366_v29 = vmul.f32 %v2365_v28, %v3462_v10 }
 0x904   : > { %v2367_v30 = vsub.f32 %v3774_v26, %v2366_v29 }
 0x906   : > { %v2368_v31 = vmul.f32 %v2367_v30, %v2367_v30 }
 0x908   : > { %v2369_v32 = vsel %vm652_vm0, %v2368_v31, 0.0 }
 0x909   : > { %2370 = vadd.xlane.f32.xlu1 %v2369_v32 }
 0x97c   : > { %v2371_v35 = vpop.xlane.xlu1 %2370 }
 0x97d   : > { %v2372_v36 = vmul.f32 %v2371_v35, %v3462_v10  ;;  %v3007_v10 = vld [vmem:[%s3869_s5] ss:$0 sm:$0xff] }
 0x97f   : > { %v2373_v37 = vadd.f32 1e-06, %v2372_v36 }
 0x981   : > { %3032 = vrsqrt.f32 %v2373_v37  ;;  %vm2380_vm14 = vweird.f32 %v2373_v37 }
 0x987   : > { %v3033_v38 = vpop.eup %3032 }
 0x988   : > { %v2375_v39 = vmul.f32 %v3033_v38, %v2373_v37  ;;  %vm2381_vm13 = vweird.f32 %v3033_v38 }
 0x989   : > { %vm2382_vm15 = vmor %vm2380_vm14, %vm2381_vm13 }
 0x98a   : > { %v2376_v40 = vmul.f32 %v3033_v38, %v2375_v39 }
 0x98c   : > { %v2377_v41 = vmul.f32 0.5, %v2376_v40 }
 0x98e   : > { %v2378_v42 = vsub.f32 1.5, %v2377_v41 }
 0x990   : > { %v2379_v43 = vmul.f32 %v3033_v38, %v2378_v42 }
 0x992   : > { %v2383_v45 = vsel %vm2382_vm15, %v3033_v38, %v2379_v43 }
 0x993   : > { %v2384_v46 = vmul.f32 %v2383_v45, %v2367_v30 }
 0x995   : > { %v2389_v47 = vmul.f32 %v3006_v44, %v2384_v46 }
 0x997   : > { %v2394_v48 = vadd.f32 %v3007_v10, %v2389_v47 }
 0x999   : > { %v2395_v49 = vpack.c.bf16 %v2394_v48, %v2394_v48 }
 0x99b   : > { %2779 = vmatmul.msk.bf16.vlgmr.msra.gmra.mxu1 %vm652_vm0, %v2395_v49 }
 0xa18   : > { %v2428_v53 = vpop.f32.mrf.mxu1 }
 0xa19   : > { %v2429_v55 = vadd.f32 %v3008_v51, %v2428_v53 }
 0xa1b   : > { %v2433_v58 = vmul.f32 0.70710677, %v2429_v55  ;;  %v2432_v32 = vmul.f32 0.5, %v2429_v55 }
 0xa1d   : > { %v2434_v61 = vmul.f32 %v2433_v58, %v2433_v58 }
 0xa1f   : > { %v2435_v56 = vmin.f32 %v2434_v61, 16.0 }
 0xa20   : > { %v2430_v63 = vpop.f32.mrf.mxu1 }
 0xa21   : > { %v2436_v2 = vmul.f32 2.1237322e-06, %v2435_v56  ;;  %v2447_v3 = vmul.f32 3.8918573e-05, %v2435_v56 }
 0xa23   : > { %v2437_v4 = vadd.f32 0.00028619796, %v2436_v2  ;;  %v2448_v59 = vadd.f32 0.001143296, %v2447_v3 }
 0xa25   : > { %v2438_v0 = vmul.f32 %v2437_v4, %v2435_v56  ;;  %v2449_v6 = vmul.f32 %v2448_v59, %v2435_v56 }
 0xa27   : > { %v2450_v9 = vadd.f32 0.014752088, %v2449_v6  ;;  %v2439_v54 = vadd.f32 0.0036580483, %v2438_v0 }
 0xa29   : > { %v2451_v12 = vmul.f32 %v2450_v9, %v2435_v56  ;;  %v2440_v13 = vmul.f32 %v2439_v54, %v2435_v56 }
 0xa2b   : > { %v2452_v7 = vadd.f32 0.112945676, %v2451_v12  ;;  %v2441_v15 = vadd.f32 0.05243302, %v2440_v13 }
 0xa2d   : > { %v2453_v60 = vmul.f32 %v2452_v7, %v2435_v56  ;;  %v2442_v52 = vmul.f32 %v2441_v15, %v2435_v56 }
 0xa2f   : > { %v2454_v57 = vadd.f32 0.4994258, %v2453_v60  ;;  %v2443_v17 = vadd.f32 0.18741608, %v2442_v52 }
 0xa31   : > { %v2455_v16 = vmul.f32 %v2454_v57, %v2435_v56  ;;  %v2444_v62 = vmul.f32 %v2443_v17, %v2435_v56 }
 0xa33   : > { %v2456_v20 = vadd.f32 1.0, %v2455_v16  ;;  %v2445_v23 = vadd.f32 1.1283791, %v2444_v62 }
 0xa35   : > { %3034 = vrcp.f32 %v2456_v20  ;;  %v2468_v22 = vand.u32 2147483648, %v2456_v20  ;;  %v2466_v25 = vand.u32 2147483647, %v2456_v20  ;;  %vm2462_vm2 = vweird.f32 %v2456_v20 }
 0xa36   : > { %v2446_v8 = vmul.f32 %v2445_v23, %v2433_v58 }
 0xa37   : > { %v2469_v27 = vor.u32 1.1754944e-38, %v2468_v22  ;;  %vm2467_vm4 = vcmp.eq.f32.partialorder %v2466_v25, 8.507059e+37 }
 0xa3b   : > { %v3035_v18 = vpop.eup %3034 }
 0xa3c   : > { %v2458_v19 = vmul.f32 %v3035_v18, %v2456_v20  ;;  %vm2463_vm1 = vweird.f32 %v3035_v18 }
 0xa3d   : > { %vm2464_vm3 = vmor %vm2462_vm2, %vm2463_vm1 }
 0xa3e   : > { %v2459_v21 = vsub.f32 1.0, %v2458_v19 }
 0xa40   : > { %v2460_v24 = vmul.f32 %v3035_v18, %v2459_v21 }
 0xa42   : > { %v2461_v5 = vadd.f32 %v3035_v18, %v2460_v24 }
 0xa44   : > { %v2465_v28 = vsel %vm2464_vm3, %v3035_v18, %v2461_v5 }
 0xa45   : > { %v2470_v29 = vsel %vm2467_vm4, %v2469_v27, %v2465_v28 }
 0xa46   : > { %v2471_v30 = vmul.f32 %v2470_v29, %v2446_v8 }
 0xa48   : > { %v2780_v31 = vclamps-f32 %v2471_v30, 1.0 }
 0xa4a   : > { %v2474_v33 = vadd.f32 1.0, %v2780_v31 }
 0xa4c   : > { %v2475_v34 = vmul.f32 %v2474_v33, %v2432_v32 }
 0xa4e   : > { %v2476_v35 = vpack.c.bf16 %v2475_v34, %v2475_v34 }
 0xa50   : > { %2797 = vmatmul.msk.bf16.vlgmr.msrb.gmra.mxu2 %vm2513_vm5, %v2476_v35 }
 0xa51   : > { %3154 = shalt.err (!%p3151_p9)
}
 0xa52   : > { %s3262_s16 = smov 128   ;;  %s3925_s17 = smov 8  }
 0xa53   : > { %2831 = dma.vmem_to_hbm [thread:$0]  (%p3393_p4), %s2567_s15, 512, %s2569_s21, %s2538_s23, %s3262_s16, %s3262_s16, %s3925_s17  }
 0xa54   : > { %s2732_s26 = sshll.u32 %s3687_s24, 3  ;;  %s2800_s29 = sshll.u32 %s3237_s27, 3 }
 0xa55   : > { %s3926_s10 = sld [smem:[#allocation29_spill]]  ;;  %s630_s19 = scalar_lea.vmem [#allocation8], %s2732_s26 }
 0xa56   : > { %s3927_s0 = sld [smem:[#allocation30_spill]]  ;;  %s2551_s3 = sshll.u32 %s630_s19, 4  ;;  %s2552_s3 = int_to_ptr.vmem [resolvable:$true] %s2551_s3 }
 0xa57   : > { %s2533_s27 = scalar_lea.sflag [#allocation4], %s3687_s24 }
 0xa5b   : > { %v3009_v36 = vld [vmem:[%s3926_s10] ss:$0 sm:$0xff] }
 0xa5c   : > { %s2549_s30 = scalar_lea.hbm %s3927_s0, %s2800_s29  ;;  %s3175_s17 = scalar_lea.hbm %s3927_s0, 16 }
 0xa5d   : > { %s2553_s4 = sshll.u32 %s2549_s30, 4  ;;  %s2554_s4 = int_to_ptr.hbm [resolvable:$true] %s2553_s4 }
 0xa5e   : > { %s3169_s15 = sshra.s32 %s2554_s4, 4  ;;  %s3170_s15 = int_to_ptr.hbm [resolvable:$true] %s3169_s15 }
 0xa5f   : > { %s3171_s21 = scalar_lea.hbm %s3170_s15, 8  ;;  %p3176_p13 = scmp.lt.s32.totalorder %s3170_s15, %s3927_s0 }
 0xa60   : > { %p3172_p10 = scmp.ne.s32.totalorder %s3170_s15, %s3171_s21  ;;  %p3177_p0 = scmp.lt.s32.totalorder %s3175_s17, %s3171_s21 }
 0xa62   : > { %p3173_p11 = pnand %p3172_p10, %p3393_p4  ;;  %p3178_p1 = por %p3177_p0, %p3176_p13 }
 0xa64   : > { %p3174_p12 = pneg %p3173_p11 }
 0xa66   : > { %p3179_p2 = pnand %p3178_p1, %p3174_p12 }
 0xad3   : > { %v2526_v37 = vpop.f32.mrf.mxu2 }
 0xad4   : > { %v2527_v38 = vadd.f32 %v3009_v36, %v2526_v37 }
 0xad6   : > { %v2530_v39 = vadd.f32 %v2527_v38, %v3774_v26 }
 0xad8   : > { %2531 = vst.msk [vmem:[%s630_s19] sm:$0xff] %vm652_vm0, %v2530_v39 }
 0xad9   : > { %3182 = shalt.err (!%p3179_p2)
}
 0xada   : > { %2830 = dma.vmem_to_hbm [thread:$0]  (%p3393_p4), %s2552_s3, 128, %s2554_s4, %s2533_s27  }
 0xadb   : > { %v2528_v26 = vpop.f32.mrf.mxu2 }
 0xadc PF: > { %s3928_s24 = sld [smem:[#allocation18_spill]] }
 0xadd   : > { %s3929_s1 = sld [smem:[#allocation15_spill]] }
 0xae2   : > { %p2857_p3 = scmp.ge.s32.totalorder %s3928_s24, 2 }
 0xae3   : > { %s2583_s10 = sand.u32 1, %s3929_s1  }
 0xae4   : > { %p2845_p5 = pnand %p2857_p3, %p3400_p8  ;;  %s2584_s2 = scalar_lea.sflag [#allocation4], %s2583_s10 }
 0xae6   : > { %p2846_p6 = pneg %p2845_p5 }
 0xae8   : > { %3216 = dma.done.wait (%p2846_p6), %s2584_s2, 128  }
 0xae9   : > { %3218 = vsyncadd (%p2846_p6), %s2584_s2, 4294967168  ;;  %s2594_s20 = scalar_lea.sflag [#allocation10], %s2583_s10 }
 0xaea   : > { %3220 = dma.done.wait (%p2846_p6), %s2594_s20, 512  }
 0xaeb   : > { %3222 = vsyncadd (%p2846_p6), %s2594_s20, 4294966784  ;;  %s36_s29 = sadd.s32 1, %s3928_s24   ;;  %s3931_s3 = sld [smem:[#allocation16_spill]] }
 0xaec   : > { %p33_p7 = scmp.ge.s32.totalorder %s36_s29, 4   ;;  %s3932_s26 = sld [smem:[#allocation22_spill]] }
 0xaed   : > { %s3933_s27 = sld [smem:[#allocation17_spill]]  ;;  %s3935_s24 = smov %s3229_s25 }
 0xaee   : > { %s3934_s28 = sld [smem:[#allocation19_spill]]  ;;  %35 = sbr.rel (!%p33_p7) target bundleno = 18 (0x12), region = 152 }
 0xaf1   : > { %s3936_s25 = smov %s3931_s3 }
 0xaf3   :  { %2600 = vsyncpa [#allocation3], 1 }
 0xaf4   :  { %2602 = vsyncpa [#allocation3 + $0x1], 1 }
 0xaf5   :  { %2603 = vsyncpa [#allocation6], 1 }
 0xaf6   :  { %2604 = vsyncpa [#allocation4], 1 }
 0xaf7   :  { %2606 = vsyncpa [#allocation4 + $0x1], 1 }
 0xaf8   :  { %2607 = vsyncpa [#allocation10], 1 }
 0xaf9   :  { %2609 = vsyncpa [#allocation10 + $0x1], 1 }

</bundles_post_ra>
